<compile_context>
chip_gen: v5e
topology: v5e:2x2
jax: 0.10.0
libtpu: 0.0.40
codegen_flags: <defaults>
</compile_context>

<pallas_src>
import jax
import jax.numpy as jnp
from jax.experimental import pallas as pl
from jax.experimental.pallas import tpu as pltpu

_LANES = 128
_COL_OFF = 16  # image columns start at this offset (bf16 (16,128)-tile aligned)


def _round_up(x, m):
    return (x + m - 1) // m * m


def _pick_tile_h(H):
    """Largest friendly H-tile that divides H with >= 2 tiles (else whole H)."""
    for th in (32, 16, 8):
        if H % th == 0 and H // th >= 2:
            return th
    return H


def _double_conv_kernel(xm_ref, xp_ref, xn_ref, w1_ref, b1_ref, w2_ref, b2_ref,
                        o_ref, xpad_ref, mid_ref):
    """Fused conv3x3+BN+ReLU -> conv3x3+BN+ReLU for one (batch, H-tile, Cout-tile).

    xm_ref : (1, TH, W, Cin)      current H-tile of the input (bf16)
    xp_ref : (1, 2,  W, Cin)      last 2 rows of the previous H-tile (halo)
    xn_ref : (1, 2,  W, Cin)      first 2 rows of the next H-tile (halo)
    w1_ref : (3, 3, Cin, Cmid)    conv1 weights with BN1 scale folded in (bf16)
    b1_ref : (1, Cmid)            BN1 bias (f32)
    w2_ref : (3, 3, Cmid, Ct)     conv2 weights for this Cout tile (bf16)
    b2_ref : (1, Ct)              BN2 bias for this Cout tile (f32)
    o_ref  : (1, TH, W, Ct)       output tile (f32)
    xpad_ref : (TH+4, W+2*_COL_OFF, Cin)   zero-padded input tile (bf16 VMEM)
    mid_ref  : (TH+2, W+2*_COL_OFF, Cmid)  zero-padded mid activation (bf16 VMEM)
    """
    h = pl.program_id(1)
    nh = pl.num_programs(1)
    co = pl.program_id(2)

    TH = xm_ref.shape[1]
    W = xm_ref.shape[2]
    Cin = xm_ref.shape[3]
    Cmid = w1_ref.shape[3]
    Ct = o_ref.shape[3]
    MR = TH + 2          # mid rows: this tile's output rows + 1 halo row each side
    XR = TH + 4          # padded-input rows
    c0 = _COL_OFF

    # ---------- stage 1: conv1 + bias + ReLU -> mid (once per (n, h) tile) ----
    @pl.when(co == 0)
    def _stage1():
        # Zero only what conv1 reads as padding: the column border strips and,
        # at the image top/bottom, the 2 halo rows.
        zcol = jnp.zeros((XR, c0, Cin), xpad_ref.dtype)
        xpad_ref[:, 0:c0, :] = zcol
        xpad_ref[:, c0 + W:c0 + W + c0, :] = zcol

        xpad_ref[2:TH + 2, c0:c0 + W, :] = xm_ref[0].astype(xpad_ref.dtype)

        zrow2 = jnp.zeros((2, W, Cin), xpad_ref.dtype)

        @pl.when(h > 0)
        def _():
            xpad_ref[0:2, c0:c0 + W, :] = xp_ref[0].astype(xpad_ref.dtype)

        @pl.when(h == 0)
        def _():
            xpad_ref[0:2, c0:c0 + W, :] = zrow2

        @pl.when(h < nh - 1)
        def _():
            xpad_ref[TH + 2:TH + 4, c0:c0 + W, :] = xn_ref[0].astype(xpad_ref.dtype)

        @pl.when(h == nh - 1)
        def _():
            xpad_ref[TH + 2:TH + 4, c0:c0 + W, :] = zrow2

        # 3x3 conv as 9 MXU matmuls: bf16 operands, f32 accumulation.  Column
        # (sublane) reslices are done once per dx; row slices are free.
        acc = jnp.zeros((MR * W, Cmid), jnp.float32)
        for dx in range(3):
            xs = xpad_ref[:, c0 - 1 + dx:c0 - 1 + dx + W, :]
            for dy in range(3):
                patch = xs[dy:dy + MR].reshape(MR * W, Cin)
                acc += jnp.dot(patch, w1_ref[dy, dx],
                               preferred_element_type=jnp.float32)
        m = jnp.maximum(acc + b1_ref[...], 0.0)          # folded-BN bias + ReLU

        # Store mid activation (bf16) and its zero padding for conv2.
        zcol_m = jnp.zeros((MR, c0, Cmid), mid_ref.dtype)
        mid_ref[:, 0:c0, :] = zcol_m
        mid_ref[:, c0 + W:c0 + W + c0, :] = zcol_m
        mid_ref[:, c0:c0 + W, :] = m.reshape(MR, W, Cmid).astype(mid_ref.dtype)

        zrow1 = jnp.zeros((1, W, Cmid), mid_ref.dtype)

        # Mid rows that fall outside the image are conv2's zero padding.
        @pl.when(h == 0)
        def _():
            mid_ref[0:1, c0:c0 + W, :] = zrow1

        @pl.when(h == nh - 1)
        def _():
            mid_ref[MR - 1:MR, c0:c0 + W, :] = zrow1

    # ---------- stage 2: conv2 + bias + ReLU -> out (every Cout tile) ---------
    acc2 = jnp.zeros((TH * W, Ct), jnp.float32)
    for dx in range(3):
        ms = mid_ref[:, c0 - 1 + dx:c0 - 1 + dx + W, :]
        for dy in range(3):
            patch = ms[dy:dy + TH].reshape(TH * W, Cmid)
            acc2 += jnp.dot(patch, w2_ref[dy, dx],
                            preferred_element_type=jnp.float32)
    y = jnp.maximum(acc2 + b2_ref[...], 0.0)
    o_ref[...] = y.reshape(1, TH, W, Ct).astype(o_ref.dtype)


def _fold_bn_into_conv(w_hwio, gamma, beta, mean, var, eps=1e-5):
    """Inference-mode BN folded into the conv: returns (scaled weights, bias)."""
    scale = gamma / jnp.sqrt(var + eps)
    return w_hwio * scale[None, None, None, :], beta - mean * scale


def _pad_to(a, shape):
    return jnp.pad(a, [(0, t - s) for s, t in zip(a.shape, shape)])


@jax.jit
def double_conv_forward(x_nchw, params):
    """Forward pass matching DoubleConv.forward (input/output NCHW, float32)."""
    N, Cin, H, W = x_nchw.shape
    Cmid = params["w1"].shape[3]
    Cout = params["w2"].shape[3]
    assert H % 2 == 0, "image height must be even"

    Cin_p = _round_up(Cin, _LANES)
    Cmid_p = _round_up(Cmid, _LANES)
    Cout_p = _round_up(Cout, _LANES)

    # Fold BN scale into the weights, pad channels lane-dense, cast to bf16.
    w1, b1 = _fold_bn_into_conv(params["w1"], params["gamma1"], params["beta1"],
                                params["mean1"], params["var1"])
    w2, b2 = _fold_bn_into_conv(params["w2"], params["gamma2"], params["beta2"],
                                params["mean2"], params["var2"])
    w1p = _pad_to(w1, (3, 3, Cin_p, Cmid_p)).astype(jnp.bfloat16)
    w2p = _pad_to(w2, (3, 3, Cmid_p, Cout_p)).astype(jnp.bfloat16)
    b1p = _pad_to(b1.reshape(1, Cmid), (1, Cmid_p)).astype(jnp.float32)
    b2p = _pad_to(b2.reshape(1, Cout), (1, Cout_p)).astype(jnp.float32)

    # NCHW -> NHWC (channels on lanes), bf16 activations, channel pad to 128.
    x = jnp.transpose(x_nchw, (0, 2, 3, 1)).astype(jnp.bfloat16)
    x = _pad_to(x, (N, H, W, Cin_p))

    TH = _pick_tile_h(H)
    nH = H // TH
    half = TH // 2            # H-tile index -> 2-row halo-block index conversion
    n2 = H // 2               # number of 2-row blocks along H
    COUT_T = _LANES           # 128-wide output-channel tiles
    nCo = Cout_p // COUT_T

    out = pl.pallas_call(
        _double_conv_kernel,
        out_shape=jax.ShapeDtypeStruct((N, H, W, Cout_p), jnp.float32),
        grid=(N, nH, nCo),
        in_specs=[
            # current H tile of the input
            pl.BlockSpec((1, TH, W, Cin_p), lambda n, h, c: (n, h, 0, 0)),
            # 2-row halos from neighbouring tiles (clamped at edges; the kernel
            # zeroes them there, implementing the conv's zero padding).
            pl.BlockSpec((1, 2, W, Cin_p),
                         lambda n, h, c: (n, jnp.maximum(h * half - 1, 0), 0, 0)),
            pl.BlockSpec((1, 2, W, Cin_p),
                         lambda n, h, c: (n, jnp.minimum((h + 1) * half, n2 - 1), 0, 0)),
            # weights / biases (conv1 resident; conv2 tiled over Cout)
            pl.BlockSpec((3, 3, Cin_p, Cmid_p), lambda n, h, c: (0, 0, 0, 0)),
            pl.BlockSpec((1, Cmid_p), lambda n, h, c: (0, 0)),
            pl.BlockSpec((3, 3, Cmid_p, COUT_T), lambda n, h, c: (0, 0, 0, c)),
            pl.BlockSpec((1, COUT_T), lambda n, h, c: (0, c)),
        ],
        out_specs=pl.BlockSpec((1, TH, W, COUT_T), lambda n, h, c: (n, h, 0, c)),
        scratch_shapes=[
            pltpu.VMEM((TH + 4, W + 2 * _COL_OFF, Cin_p), jnp.bfloat16),
            pltpu.VMEM((TH + 2, W + 2 * _COL_OFF, Cmid_p), jnp.bfloat16),
        ],
        compiler_params=pltpu.CompilerParams(
            dimension_semantics=("parallel", "parallel", "arbitrary")),
    )(x, x, x, w1p, b1p, w2p, b2p)

    out = out[:, :, :, :Cout]                   # drop channel padding
    return jnp.transpose(out, (0, 3, 1, 2))     # NHWC -> NCHW


def init_double_conv_params(key, in_channels, out_channels):
    mid_channels = (in_channels + out_channels) // 2   # matches the module spec
    k1, k2, k3, k4, k5, k6 = jax.random.split(key, 6)

    def conv_w(k, cin, cout):
        fan_in = cin * 9
        return jax.random.normal(k, (3, 3, cin, cout), jnp.float32) * (
            (2.0 / fan_in) ** 0.5)

    return {
        "w1": conv_w(k1, in_channels, mid_channels),
        "gamma1": 1.0 + 0.1 * jax.random.normal(k2, (mid_channels,), jnp.float32),
        "beta1": 0.1 * jax.random.normal(k3, (mid_channels,), jnp.float32),
        "mean1": jnp.zeros((mid_channels,), jnp.float32),
        "var1": jnp.ones((mid_channels,), jnp.float32),
        "w2": conv_w(k4, mid_channels, out_channels),
        "gamma2": 1.0 + 0.1 * jax.random.normal(k5, (out_channels,), jnp.float32),
        "beta2": 0.1 * jax.random.normal(k6, (out_channels,), jnp.float32),
        "mean2": jnp.zeros((out_channels,), jnp.float32),
        "var2": jnp.ones((out_channels,), jnp.float32),
    }


def _reference_forward(x_nchw, params, matmul_dtype=jnp.float32):
    """Pure-JAX reference (lax.conv).  matmul_dtype=bfloat16 mirrors the kernel's
    precision policy (bf16 operands, f32 accumulation)."""
    def stage(x, w, gamma, beta, mean, var):
        wf, b = _fold_bn_into_conv(w, gamma, beta, mean, var)
        y = jax.lax.conv_general_dilated(
            x.astype(matmul_dtype), wf.astype(matmul_dtype),
            window_strides=(1, 1), padding="SAME",
            dimension_numbers=("NCHW", "HWIO", "NCHW"),
            preferred_element_type=jnp.float32)
        return jnp.maximum(y + b[None, :, None, None], 0.0)

    x = stage(x_nchw, params["w1"], params["gamma1"], params["beta1"],
              params["mean1"], params["var1"])
    x = stage(x, params["w2"], params["gamma2"], params["beta2"],
              params["mean2"], params["var2"])
    return x


if __name__ == "__main__":
    key = jax.random.PRNGKey(0)
    kx, kp = jax.random.split(key)

    N, Cin, H, W = 2, 4, 16, 16
    Cout = 8
    x = jax.random.normal(kx, (N, Cin, H, W), jnp.float32)
    params = init_double_conv_params(kp, Cin, Cout)

    out = jax.block_until_ready(double_conv_forward(x, params))
    assert out.shape == (N, Cout, H, W), out.shape

    # Tight check vs. a reference with the kernel's precision policy
    # (bf16 operands, f32 accumulation).
    ref_bf16 = _reference_forward(x, params, matmul_dtype=jnp.bfloat16)
    err_bf16 = float(jnp.max(jnp.abs(out - ref_bf16)))
    assert jnp.allclose(out, ref_bf16, atol=3e-2, rtol=3e-2), err_bf16

    # Loose sanity check vs. the full-f32 module semantics.
    ref_f32 = _reference_forward(x, params, matmul_dtype=jnp.float32)
    err_f32 = float(jnp.max(jnp.abs(out - ref_f32)))
    assert jnp.allclose(out, ref_f32, atol=1e-1, rtol=1e-1), err_f32

    print("KERNEL_OK")
</pallas_src>

<mosaic_0001>
module attributes {stable_mosaic.version = 11 : i64} {
  func.func @_double_conv_kernel(%arg0: i32, %arg1: i32, %arg2: i32, %arg3: memref<1x8x16x128xbf16, #tpu.memory_space<vmem>>, %arg4: memref<1x2x16x128xbf16, #tpu.memory_space<vmem>>, %arg5: memref<1x2x16x128xbf16, #tpu.memory_space<vmem>>, %arg6: memref<3x3x128x128xbf16, #tpu.memory_space<vmem>>, %arg7: memref<1x128xf32, #tpu.memory_space<vmem>>, %arg8: memref<3x3x128x128xbf16, #tpu.memory_space<vmem>>, %arg9: memref<1x128xf32, #tpu.memory_space<vmem>>, %arg10: memref<1x8x16x128xf32, #tpu.memory_space<vmem>>, %arg11: memref<12x48x128xbf16, #tpu.memory_space<vmem>>, %arg12: memref<10x48x128xbf16, #tpu.memory_space<vmem>>) attributes {dimension_semantics = [#tpu.dimension_semantics<parallel>, #tpu.dimension_semantics<parallel>, #tpu.dimension_semantics<arbitrary>], iteration_bounds = array<i64: 2, 2, 1>, scalar_prefetch = 0 : i64, scratch_operands = 2 : i64, tpu.core_type = #tpu.core_type<tc>, window_params = [{transform_indices = @transform_0, window_bounds = array<i64: 1, 8, 16, 128>}, {transform_indices = @transform_1, window_bounds = array<i64: 1, 2, 16, 128>}, {transform_indices = @transform_2, window_bounds = array<i64: 1, 2, 16, 128>}, {pipeline_mode = #tpu.pipeline_mode<synchronous>, transform_indices = @transform_3, window_bounds = array<i64: 3, 3, 128, 128>}, {pipeline_mode = #tpu.pipeline_mode<synchronous>, transform_indices = @transform_4, window_bounds = array<i64: 1, 128>}, {transform_indices = @transform_5, window_bounds = array<i64: 3, 3, 128, 128>}, {transform_indices = @transform_6, window_bounds = array<i64: 1, 128>}, {transform_indices = @transform_7, window_bounds = array<i64: 1, 8, 16, 128>}]} {
    %c0_i32 = arith.constant 0 : i32
    %0 = arith.cmpi eq, %arg2, %c0_i32 : i32
    %1 = arith.extui %0 : i1 to i32
    %c0_i32_0 = arith.constant 0 : i32
    %2 = arith.cmpi ne, %1, %c0_i32_0 : i32
    scf.if %2 {
      %cst_56 = arith.constant 0.000000e+00 : bf16
      %68 = vector.broadcast %cst_56 : bf16 to vector<12x16x128xbf16>
      %c0_57 = arith.constant 0 : index
      %c0_58 = arith.constant 0 : index
      %c0_59 = arith.constant 0 : index
      %69 = vector.load %arg11[%c0_57, %c0_58, %c0_59] : memref<12x48x128xbf16, #tpu.memory_space<vmem>>, vector<12x16x128xbf16>
      tpu.vector_store %arg11[%c0_57, %c0_58, %c0_59], %68 {strides = array<i32>} : memref<12x48x128xbf16, #tpu.memory_space<vmem>>, vector<12x16x128xbf16>,
      %c0_60 = arith.constant 0 : index
      %c32 = arith.constant 32 : index
      %c0_61 = arith.constant 0 : index
      %70 = vector.load %arg11[%c0_60, %c32, %c0_61] : memref<12x48x128xbf16, #tpu.memory_space<vmem>>, vector<12x16x128xbf16>
      tpu.vector_store %arg11[%c0_60, %c32, %c0_61], %68 {strides = array<i32>} : memref<12x48x128xbf16, #tpu.memory_space<vmem>>, vector<12x16x128xbf16>,
      %c0_62 = arith.constant 0 : index
      %c0_63 = arith.constant 0 : index
      %c0_64 = arith.constant 0 : index
      %c0_65 = arith.constant 0 : index
      %71 = vector.load %arg3[%c0_62, %c0_63, %c0_64, %c0_65] : memref<1x8x16x128xbf16, #tpu.memory_space<vmem>>, vector<1x8x16x128xbf16>
      %72 = vector.shape_cast %71 : vector<1x8x16x128xbf16> to vector<8x16x128xbf16>
      %c2_66 = arith.constant 2 : index
      %c16_67 = arith.constant 16 : index
      %c0_68 = arith.constant 0 : index
      %73 = vector.load %arg11[%c2_66, %c16_67, %c0_68] : memref<12x48x128xbf16, #tpu.memory_space<vmem>>, vector<8x16x128xbf16>
      tpu.vector_store %arg11[%c2_66, %c16_67, %c0_68], %72 {strides = array<i32>} : memref<12x48x128xbf16, #tpu.memory_space<vmem>>, vector<8x16x128xbf16>,
      %cst_69 = arith.constant 0.000000e+00 : bf16
      %74 = vector.broadcast %cst_69 : bf16 to vector<2x16x128xbf16>
      %c0_i32_70 = arith.constant 0 : i32
      %75 = arith.cmpi sgt, %arg1, %c0_i32_70 : i32
      %76 = arith.extui %75 : i1 to i32
      %c0_i32_71 = arith.constant 0 : i32
      %77 = arith.cmpi ne, %76, %c0_i32_71 : i32
      scf.if %77 {
        %c0_150 = arith.constant 0 : index
        %c0_151 = arith.constant 0 : index
        %c0_152 = arith.constant 0 : index
        %c0_153 = arith.constant 0 : index
        %163 = vector.load %arg4[%c0_150, %c0_151, %c0_152, %c0_153] : memref<1x2x16x128xbf16, #tpu.memory_space<vmem>>, vector<1x2x16x128xbf16>
        %164 = vector.shape_cast %163 : vector<1x2x16x128xbf16> to vector<2x16x128xbf16>
        %c0_154 = arith.constant 0 : index
        %c16_155 = arith.constant 16 : index
        %c0_156 = arith.constant 0 : index
        %165 = vector.load %arg11[%c0_154, %c16_155, %c0_156] : memref<12x48x128xbf16, #tpu.memory_space<vmem>>, vector<2x16x128xbf16>
        tpu.vector_store %arg11[%c0_154, %c16_155, %c0_156], %164 {strides = array<i32>} : memref<12x48x128xbf16, #tpu.memory_space<vmem>>, vector<2x16x128xbf16>,
      } else {
      }
      %c0_i32_72 = arith.constant 0 : i32
      %78 = arith.cmpi eq, %arg1, %c0_i32_72 : i32
      %79 = arith.extui %78 : i1 to i32
      %c0_i32_73 = arith.constant 0 : i32
      %80 = arith.cmpi ne, %79, %c0_i32_73 : i32
      scf.if %80 {
        %c0_150 = arith.constant 0 : index
        %c16_151 = arith.constant 16 : index
        %c0_152 = arith.constant 0 : index
        %163 = vector.load %arg11[%c0_150, %c16_151, %c0_152] : memref<12x48x128xbf16, #tpu.memory_space<vmem>>, vector<2x16x128xbf16>
        tpu.vector_store %arg11[%c0_150, %c16_151, %c0_152], %74 {strides = array<i32>} : memref<12x48x128xbf16, #tpu.memory_space<vmem>>, vector<2x16x128xbf16>,
      } else {
      }
      %c1_i32 = arith.constant 1 : i32
      %81 = arith.cmpi slt, %arg1, %c1_i32 : i32
      %82 = arith.extui %81 : i1 to i32
      %c0_i32_74 = arith.constant 0 : i32
      %83 = arith.cmpi ne, %82, %c0_i32_74 : i32
      scf.if %83 {
        %c0_150 = arith.constant 0 : index
        %c0_151 = arith.constant 0 : index
        %c0_152 = arith.constant 0 : index
        %c0_153 = arith.constant 0 : index
        %163 = vector.load %arg5[%c0_150, %c0_151, %c0_152, %c0_153] : memref<1x2x16x128xbf16, #tpu.memory_space<vmem>>, vector<1x2x16x128xbf16>
        %164 = vector.shape_cast %163 : vector<1x2x16x128xbf16> to vector<2x16x128xbf16>
        %c10 = arith.constant 10 : index
        %c16_154 = arith.constant 16 : index
        %c0_155 = arith.constant 0 : index
        %165 = vector.load %arg11[%c10, %c16_154, %c0_155] : memref<12x48x128xbf16, #tpu.memory_space<vmem>>, vector<2x16x128xbf16>
        tpu.vector_store %arg11[%c10, %c16_154, %c0_155], %164 {strides = array<i32>} : memref<12x48x128xbf16, #tpu.memory_space<vmem>>, vector<2x16x128xbf16>,
      } else {
      }
      %c1_i32_75 = arith.constant 1 : i32
      %84 = arith.cmpi eq, %arg1, %c1_i32_75 : i32
      %85 = arith.extui %84 : i1 to i32
      %c0_i32_76 = arith.constant 0 : i32
      %86 = arith.cmpi ne, %85, %c0_i32_76 : i32
      scf.if %86 {
        %c10 = arith.constant 10 : index
        %c16_150 = arith.constant 16 : index
        %c0_151 = arith.constant 0 : index
        %163 = vector.load %arg11[%c10, %c16_150, %c0_151] : memref<12x48x128xbf16, #tpu.memory_space<vmem>>, vector<2x16x128xbf16>
        tpu.vector_store %arg11[%c10, %c16_150, %c0_151], %74 {strides = array<i32>} : memref<12x48x128xbf16, #tpu.memory_space<vmem>>, vector<2x16x128xbf16>,
      } else {
      }
      %cst_77 = arith.constant 0.000000e+00 : f32
      %87 = vector.broadcast %cst_77 : f32 to vector<160x128xf32>
      %c0_78 = arith.constant 0 : index
      %c15_79 = arith.constant 15 : index
      %c0_80 = arith.constant 0 : index
      %88 = vector.load %arg11[%c0_78, %c15_79, %c0_80] : memref<12x48x128xbf16, #tpu.memory_space<vmem>>, vector<12x16x128xbf16>
      %89 = vector.extract_strided_slice %88 {offsets = [0, 0, 0], sizes = [10, 16, 128], strides = [1, 1, 1]} : vector<12x16x128xbf16> to vector<10x16x128xbf16>
      %90 = vector.shape_cast %89 : vector<10x16x128xbf16> to vector<160x128xbf16>
      %c0_81 = arith.constant 0 : index
      %c0_82 = arith.constant 0 : index
      %c0_83 = arith.constant 0 : index
      %c0_84 = arith.constant 0 : index
      %91 = vector.load %arg6[%c0_81, %c0_82, %c0_83, %c0_84] : memref<3x3x128x128xbf16, #tpu.memory_space<vmem>>, vector<1x1x128x128xbf16>
      %92 = vector.shape_cast %91 : vector<1x1x128x128xbf16> to vector<128x128xbf16>
      %cst_85 = arith.constant dense<0.000000e+00> : vector<160x128xf32>
      %93 = tpu.matmul %90, %92, %cst_85 {dimension_numbers = #tpu.dot_dimension_numbers<[1], [0], [0], [1], [0, 0, 1, 1], [], []>} : vector<160x128xbf16>, vector<128x128xbf16>, vector<160x128xf32> -> vector<160x128xf32>
      %94 = arith.addf %87, %93 : vector<160x128xf32>
      %95 = vector.extract_strided_slice %88 {offsets = [1, 0, 0], sizes = [10, 16, 128], strides = [1, 1, 1]} : vector<12x16x128xbf16> to vector<10x16x128xbf16>
      %96 = vector.shape_cast %95 : vector<10x16x128xbf16> to vector<160x128xbf16>
      %c1_86 = arith.constant 1 : index
      %c0_87 = arith.constant 0 : index
      %c0_88 = arith.constant 0 : index
      %c0_89 = arith.constant 0 : index
      %97 = vector.load %arg6[%c1_86, %c0_87, %c0_88, %c0_89] : memref<3x3x128x128xbf16, #tpu.memory_space<vmem>>, vector<1x1x128x128xbf16>
      %98 = vector.shape_cast %97 : vector<1x1x128x128xbf16> to vector<128x128xbf16>
      %cst_90 = arith.constant dense<0.000000e+00> : vector<160x128xf32>
      %99 = tpu.matmul %96, %98, %cst_90 {dimension_numbers = #tpu.dot_dimension_numbers<[1], [0], [0], [1], [0, 0, 1, 1], [], []>} : vector<160x128xbf16>, vector<128x128xbf16>, vector<160x128xf32> -> vector<160x128xf32>
      %100 = arith.addf %94, %99 : vector<160x128xf32>
      %101 = vector.extract_strided_slice %88 {offsets = [2, 0, 0], sizes = [10, 16, 128], strides = [1, 1, 1]} : vector<12x16x128xbf16> to vector<10x16x128xbf16>
      %102 = vector.shape_cast %101 : vector<10x16x128xbf16> to vector<160x128xbf16>
      %c2_91 = arith.constant 2 : index
      %c0_92 = arith.constant 0 : index
      %c0_93 = arith.constant 0 : index
      %c0_94 = arith.constant 0 : index
      %103 = vector.load %arg6[%c2_91, %c0_92, %c0_93, %c0_94] : memref<3x3x128x128xbf16, #tpu.memory_space<vmem>>, vector<1x1x128x128xbf16>
      %104 = vector.shape_cast %103 : vector<1x1x128x128xbf16> to vector<128x128xbf16>
      %cst_95 = arith.constant dense<0.000000e+00> : vector<160x128xf32>
      %105 = tpu.matmul %102, %104, %cst_95 {dimension_numbers = #tpu.dot_dimension_numbers<[1], [0], [0], [1], [0, 0, 1, 1], [], []>} : vector<160x128xbf16>, vector<128x128xbf16>, vector<160x128xf32> -> vector<160x128xf32>
      %106 = arith.addf %100, %105 : vector<160x128xf32>
      %c0_96 = arith.constant 0 : index
      %c16_97 = arith.constant 16 : index
      %c0_98 = arith.constant 0 : index
      %107 = vector.load %arg11[%c0_96, %c16_97, %c0_98] : memref<12x48x128xbf16, #tpu.memory_space<vmem>>, vector<12x16x128xbf16>
      %108 = vector.extract_strided_slice %107 {offsets = [0, 0, 0], sizes = [10, 16, 128], strides = [1, 1, 1]} : vector<12x16x128xbf16> to vector<10x16x128xbf16>
      %109 = vector.shape_cast %108 : vector<10x16x128xbf16> to vector<160x128xbf16>
      %c0_99 = arith.constant 0 : index
      %c1_100 = arith.constant 1 : index
      %c0_101 = arith.constant 0 : index
      %c0_102 = arith.constant 0 : index
      %110 = vector.load %arg6[%c0_99, %c1_100, %c0_101, %c0_102] : memref<3x3x128x128xbf16, #tpu.memory_space<vmem>>, vector<1x1x128x128xbf16>
      %111 = vector.shape_cast %110 : vector<1x1x128x128xbf16> to vector<128x128xbf16>
      %cst_103 = arith.constant dense<0.000000e+00> : vector<160x128xf32>
      %112 = tpu.matmul %109, %111, %cst_103 {dimension_numbers = #tpu.dot_dimension_numbers<[1], [0], [0], [1], [0, 0, 1, 1], [], []>} : vector<160x128xbf16>, vector<128x128xbf16>, vector<160x128xf32> -> vector<160x128xf32>
      %113 = arith.addf %106, %112 : vector<160x128xf32>
      %114 = vector.extract_strided_slice %107 {offsets = [1, 0, 0], sizes = [10, 16, 128], strides = [1, 1, 1]} : vector<12x16x128xbf16> to vector<10x16x128xbf16>
      %115 = vector.shape_cast %114 : vector<10x16x128xbf16> to vector<160x128xbf16>
      %c1_104 = arith.constant 1 : index
      %c1_105 = arith.constant 1 : index
      %c0_106 = arith.constant 0 : index
      %c0_107 = arith.constant 0 : index
      %116 = vector.load %arg6[%c1_104, %c1_105, %c0_106, %c0_107] : memref<3x3x128x128xbf16, #tpu.memory_space<vmem>>, vector<1x1x128x128xbf16>
      %117 = vector.shape_cast %116 : vector<1x1x128x128xbf16> to vector<128x128xbf16>
      %cst_108 = arith.constant dense<0.000000e+00> : vector<160x128xf32>
      %118 = tpu.matmul %115, %117, %cst_108 {dimension_numbers = #tpu.dot_dimension_numbers<[1], [0], [0], [1], [0, 0, 1, 1], [], []>} : vector<160x128xbf16>, vector<128x128xbf16>, vector<160x128xf32> -> vector<160x128xf32>
      %119 = arith.addf %113, %118 : vector<160x128xf32>
      %120 = vector.extract_strided_slice %107 {offsets = [2, 0, 0], sizes = [10, 16, 128], strides = [1, 1, 1]} : vector<12x16x128xbf16> to vector<10x16x128xbf16>
      %121 = vector.shape_cast %120 : vector<10x16x128xbf16> to vector<160x128xbf16>
      %c2_109 = arith.constant 2 : index
      %c1_110 = arith.constant 1 : index
      %c0_111 = arith.constant 0 : index
      %c0_112 = arith.constant 0 : index
      %122 = vector.load %arg6[%c2_109, %c1_110, %c0_111, %c0_112] : memref<3x3x128x128xbf16, #tpu.memory_space<vmem>>, vector<1x1x128x128xbf16>
      %123 = vector.shape_cast %122 : vector<1x1x128x128xbf16> to vector<128x128xbf16>
      %cst_113 = arith.constant dense<0.000000e+00> : vector<160x128xf32>
      %124 = tpu.matmul %121, %123, %cst_113 {dimension_numbers = #tpu.dot_dimension_numbers<[1], [0], [0], [1], [0, 0, 1, 1], [], []>} : vector<160x128xbf16>, vector<128x128xbf16>, vector<160x128xf32> -> vector<160x128xf32>
      %125 = arith.addf %119, %124 : vector<160x128xf32>
      %c0_114 = arith.constant 0 : index
      %c17_115 = arith.constant 17 : index
      %c0_116 = arith.constant 0 : index
      %126 = vector.load %arg11[%c0_114, %c17_115, %c0_116] : memref<12x48x128xbf16, #tpu.memory_space<vmem>>, vector<12x16x128xbf16>
      %127 = vector.extract_strided_slice %126 {offsets = [0, 0, 0], sizes = [10, 16, 128], strides = [1, 1, 1]} : vector<12x16x128xbf16> to vector<10x16x128xbf16>
      %128 = vector.shape_cast %127 : vector<10x16x128xbf16> to vector<160x128xbf16>
      %c0_117 = arith.constant 0 : index
      %c2_118 = arith.constant 2 : index
      %c0_119 = arith.constant 0 : index
      %c0_120 = arith.constant 0 : index
      %129 = vector.load %arg6[%c0_117, %c2_118, %c0_119, %c0_120] : memref<3x3x128x128xbf16, #tpu.memory_space<vmem>>, vector<1x1x128x128xbf16>
      %130 = vector.shape_cast %129 : vector<1x1x128x128xbf16> to vector<128x128xbf16>
      %cst_121 = arith.constant dense<0.000000e+00> : vector<160x128xf32>
      %131 = tpu.matmul %128, %130, %cst_121 {dimension_numbers = #tpu.dot_dimension_numbers<[1], [0], [0], [1], [0, 0, 1, 1], [], []>} : vector<160x128xbf16>, vector<128x128xbf16>, vector<160x128xf32> -> vector<160x128xf32>
      %132 = arith.addf %125, %131 : vector<160x128xf32>
      %133 = vector.extract_strided_slice %126 {offsets = [1, 0, 0], sizes = [10, 16, 128], strides = [1, 1, 1]} : vector<12x16x128xbf16> to vector<10x16x128xbf16>
      %134 = vector.shape_cast %133 : vector<10x16x128xbf16> to vector<160x128xbf16>
      %c1_122 = arith.constant 1 : index
      %c2_123 = arith.constant 2 : index
      %c0_124 = arith.constant 0 : index
      %c0_125 = arith.constant 0 : index
      %135 = vector.load %arg6[%c1_122, %c2_123, %c0_124, %c0_125] : memref<3x3x128x128xbf16, #tpu.memory_space<vmem>>, vector<1x1x128x128xbf16>
      %136 = vector.shape_cast %135 : vector<1x1x128x128xbf16> to vector<128x128xbf16>
      %cst_126 = arith.constant dense<0.000000e+00> : vector<160x128xf32>
      %137 = tpu.matmul %134, %136, %cst_126 {dimension_numbers = #tpu.dot_dimension_numbers<[1], [0], [0], [1], [0, 0, 1, 1], [], []>} : vector<160x128xbf16>, vector<128x128xbf16>, vector<160x128xf32> -> vector<160x128xf32>
      %138 = arith.addf %132, %137 : vector<160x128xf32>
      %139 = vector.extract_strided_slice %126 {offsets = [2, 0, 0], sizes = [10, 16, 128], strides = [1, 1, 1]} : vector<12x16x128xbf16> to vector<10x16x128xbf16>
      %140 = vector.shape_cast %139 : vector<10x16x128xbf16> to vector<160x128xbf16>
      %c2_127 = arith.constant 2 : index
      %c2_128 = arith.constant 2 : index
      %c0_129 = arith.constant 0 : index
      %c0_130 = arith.constant 0 : index
      %141 = vector.load %arg6[%c2_127, %c2_128, %c0_129, %c0_130] : memref<3x3x128x128xbf16, #tpu.memory_space<vmem>>, vector<1x1x128x128xbf16>
      %142 = vector.shape_cast %141 : vector<1x1x128x128xbf16> to vector<128x128xbf16>
      %cst_131 = arith.constant dense<0.000000e+00> : vector<160x128xf32>
      %143 = tpu.matmul %140, %142, %cst_131 {dimension_numbers = #tpu.dot_dimension_numbers<[1], [0], [0], [1], [0, 0, 1, 1], [], []>} : vector<160x128xbf16>, vector<128x128xbf16>, vector<160x128xf32> -> vector<160x128xf32>
      %144 = arith.addf %138, %143 : vector<160x128xf32>
      %c0_132 = arith.constant 0 : index
      %c0_133 = arith.constant 0 : index
      %145 = vector.load %arg7[%c0_132, %c0_133] : memref<1x128xf32, #tpu.memory_space<vmem>>, vector<1x128xf32>
      %146 = vector.broadcast %145 : vector<1x128xf32> to vector<160x128xf32>
      %147 = arith.addf %144, %146 : vector<160x128xf32>
      %cst_134 = arith.constant 0.000000e+00 : f32
      %148 = vector.broadcast %cst_134 : f32 to vector<160x128xf32>
      %149 = arith.maximumf %147, %148 : vector<160x128xf32>
      %cst_135 = arith.constant 0.000000e+00 : bf16
      %150 = vector.broadcast %cst_135 : bf16 to vector<10x16x128xbf16>
      %c0_136 = arith.constant 0 : index
      %c0_137 = arith.constant 0 : index
      %c0_138 = arith.constant 0 : index
      %151 = vector.load %arg12[%c0_136, %c0_137, %c0_138] : memref<10x48x128xbf16, #tpu.memory_space<vmem>>, vector<10x16x128xbf16>
      tpu.vector_store %arg12[%c0_136, %c0_137, %c0_138], %150 {strides = array<i32>} : memref<10x48x128xbf16, #tpu.memory_space<vmem>>, vector<10x16x128xbf16>,
      %c0_139 = arith.constant 0 : index
      %c32_140 = arith.constant 32 : index
      %c0_141 = arith.constant 0 : index
      %152 = vector.load %arg12[%c0_139, %c32_140, %c0_141] : memref<10x48x128xbf16, #tpu.memory_space<vmem>>, vector<10x16x128xbf16>
      tpu.vector_store %arg12[%c0_139, %c32_140, %c0_141], %150 {strides = array<i32>} : memref<10x48x128xbf16, #tpu.memory_space<vmem>>, vector<10x16x128xbf16>,
      %153 = vector.shape_cast %149 : vector<160x128xf32> to vector<10x16x128xf32>
      %154 = arith.truncf %153 : vector<10x16x128xf32> to vector<10x16x128xbf16>
      %c0_142 = arith.constant 0 : index
      %c16_143 = arith.constant 16 : index
      %c0_144 = arith.constant 0 : index
      %155 = vector.load %arg12[%c0_142, %c16_143, %c0_144] : memref<10x48x128xbf16, #tpu.memory_space<vmem>>, vector<10x16x128xbf16>
      tpu.vector_store %arg12[%c0_142, %c16_143, %c0_144], %154 {strides = array<i32>} : memref<10x48x128xbf16, #tpu.memory_space<vmem>>, vector<10x16x128xbf16>,
      %cst_145 = arith.constant 0.000000e+00 : bf16
      %156 = vector.broadcast %cst_145 : bf16 to vector<1x16x128xbf16>
      %c0_i32_146 = arith.constant 0 : i32
      %157 = arith.cmpi eq, %arg1, %c0_i32_146 : i32
      %158 = arith.extui %157 : i1 to i32
      %c0_i32_147 = arith.constant 0 : i32
      %159 = arith.cmpi ne, %158, %c0_i32_147 : i32
      scf.if %159 {
        %c0_150 = arith.constant 0 : index
        %c16_151 = arith.constant 16 : index
        %c0_152 = arith.constant 0 : index
        %163 = vector.load %arg12[%c0_150, %c16_151, %c0_152] : memref<10x48x128xbf16, #tpu.memory_space<vmem>>, vector<1x16x128xbf16>
        tpu.vector_store %arg12[%c0_150, %c16_151, %c0_152], %156 {strides = array<i32>} : memref<10x48x128xbf16, #tpu.memory_space<vmem>>, vector<1x16x128xbf16>,
      } else {
      }
      %c1_i32_148 = arith.constant 1 : i32
      %160 = arith.cmpi eq, %arg1, %c1_i32_148 : i32
      %161 = arith.extui %160 : i1 to i32
      %c0_i32_149 = arith.constant 0 : i32
      %162 = arith.cmpi ne, %161, %c0_i32_149 : i32
      scf.if %162 {
        %c9 = arith.constant 9 : index
        %c16_150 = arith.constant 16 : index
        %c0_151 = arith.constant 0 : index
        %163 = vector.load %arg12[%c9, %c16_150, %c0_151] : memref<10x48x128xbf16, #tpu.memory_space<vmem>>, vector<1x16x128xbf16>
        tpu.vector_store %arg12[%c9, %c16_150, %c0_151], %156 {strides = array<i32>} : memref<10x48x128xbf16, #tpu.memory_space<vmem>>, vector<1x16x128xbf16>,
      } else {
      }
    } else {
    }
    %cst = arith.constant 0.000000e+00 : f32
    %3 = vector.broadcast %cst : f32 to vector<128x128xf32>
    %c0 = arith.constant 0 : index
    %c15 = arith.constant 15 : index
    %c0_1 = arith.constant 0 : index
    %4 = vector.load %arg12[%c0, %c15, %c0_1] : memref<10x48x128xbf16, #tpu.memory_space<vmem>>, vector<10x16x128xbf16>
    %5 = vector.extract_strided_slice %4 {offsets = [0, 0, 0], sizes = [8, 16, 128], strides = [1, 1, 1]} : vector<10x16x128xbf16> to vector<8x16x128xbf16>
    %6 = vector.shape_cast %5 : vector<8x16x128xbf16> to vector<128x128xbf16>
    %c0_2 = arith.constant 0 : index
    %c0_3 = arith.constant 0 : index
    %c0_4 = arith.constant 0 : index
    %c0_5 = arith.constant 0 : index
    %7 = vector.load %arg8[%c0_2, %c0_3, %c0_4, %c0_5] : memref<3x3x128x128xbf16, #tpu.memory_space<vmem>>, vector<1x1x128x128xbf16>
    %8 = vector.shape_cast %7 : vector<1x1x128x128xbf16> to vector<128x128xbf16>
    %cst_6 = arith.constant dense<0.000000e+00> : vector<128x128xf32>
    %9 = tpu.matmul %6, %8, %cst_6 {dimension_numbers = #tpu.dot_dimension_numbers<[1], [0], [0], [1], [0, 0, 1, 1], [], []>} : vector<128x128xbf16>, vector<128x128xbf16>, vector<128x128xf32> -> vector<128x128xf32>
    %10 = arith.addf %3, %9 : vector<128x128xf32>
    %11 = vector.extract_strided_slice %4 {offsets = [1, 0, 0], sizes = [8, 16, 128], strides = [1, 1, 1]} : vector<10x16x128xbf16> to vector<8x16x128xbf16>
    %12 = vector.shape_cast %11 : vector<8x16x128xbf16> to vector<128x128xbf16>
    %c1 = arith.constant 1 : index
    %c0_7 = arith.constant 0 : index
    %c0_8 = arith.constant 0 : index
    %c0_9 = arith.constant 0 : index
    %13 = vector.load %arg8[%c1, %c0_7, %c0_8, %c0_9] : memref<3x3x128x128xbf16, #tpu.memory_space<vmem>>, vector<1x1x128x128xbf16>
    %14 = vector.shape_cast %13 : vector<1x1x128x128xbf16> to vector<128x128xbf16>
    %cst_10 = arith.constant dense<0.000000e+00> : vector<128x128xf32>
    %15 = tpu.matmul %12, %14, %cst_10 {dimension_numbers = #tpu.dot_dimension_numbers<[1], [0], [0], [1], [0, 0, 1, 1], [], []>} : vector<128x128xbf16>, vector<128x128xbf16>, vector<128x128xf32> -> vector<128x128xf32>
    %16 = arith.addf %10, %15 : vector<128x128xf32>
    %17 = vector.extract_strided_slice %4 {offsets = [2, 0, 0], sizes = [8, 16, 128], strides = [1, 1, 1]} : vector<10x16x128xbf16> to vector<8x16x128xbf16>
    %18 = vector.shape_cast %17 : vector<8x16x128xbf16> to vector<128x128xbf16>
    %c2 = arith.constant 2 : index
    %c0_11 = arith.constant 0 : index
    %c0_12 = arith.constant 0 : index
    %c0_13 = arith.constant 0 : index
    %19 = vector.load %arg8[%c2, %c0_11, %c0_12, %c0_13] : memref<3x3x128x128xbf16, #tpu.memory_space<vmem>>, vector<1x1x128x128xbf16>
    %20 = vector.shape_cast %19 : vector<1x1x128x128xbf16> to vector<128x128xbf16>
    %cst_14 = arith.constant dense<0.000000e+00> : vector<128x128xf32>
    %21 = tpu.matmul %18, %20, %cst_14 {dimension_numbers = #tpu.dot_dimension_numbers<[1], [0], [0], [1], [0, 0, 1, 1], [], []>} : vector<128x128xbf16>, vector<128x128xbf16>, vector<128x128xf32> -> vector<128x128xf32>
    %22 = arith.addf %16, %21 : vector<128x128xf32>
    %c0_15 = arith.constant 0 : index
    %c16 = arith.constant 16 : index
    %c0_16 = arith.constant 0 : index
    %23 = vector.load %arg12[%c0_15, %c16, %c0_16] : memref<10x48x128xbf16, #tpu.memory_space<vmem>>, vector<10x16x128xbf16>
    %24 = vector.extract_strided_slice %23 {offsets = [0, 0, 0], sizes = [8, 16, 128], strides = [1, 1, 1]} : vector<10x16x128xbf16> to vector<8x16x128xbf16>
    %25 = vector.shape_cast %24 : vector<8x16x128xbf16> to vector<128x128xbf16>
    %c0_17 = arith.constant 0 : index
    %c1_18 = arith.constant 1 : index
    %c0_19 = arith.constant 0 : index
    %c0_20 = arith.constant 0 : index
    %26 = vector.load %arg8[%c0_17, %c1_18, %c0_19, %c0_20] : memref<3x3x128x128xbf16, #tpu.memory_space<vmem>>, vector<1x1x128x128xbf16>
    %27 = vector.shape_cast %26 : vector<1x1x128x128xbf16> to vector<128x128xbf16>
    %cst_21 = arith.constant dense<0.000000e+00> : vector<128x128xf32>
    %28 = tpu.matmul %25, %27, %cst_21 {dimension_numbers = #tpu.dot_dimension_numbers<[1], [0], [0], [1], [0, 0, 1, 1], [], []>} : vector<128x128xbf16>, vector<128x128xbf16>, vector<128x128xf32> -> vector<128x128xf32>
    %29 = arith.addf %22, %28 : vector<128x128xf32>
    %30 = vector.extract_strided_slice %23 {offsets = [1, 0, 0], sizes = [8, 16, 128], strides = [1, 1, 1]} : vector<10x16x128xbf16> to vector<8x16x128xbf16>
    %31 = vector.shape_cast %30 : vector<8x16x128xbf16> to vector<128x128xbf16>
    %c1_22 = arith.constant 1 : index
    %c1_23 = arith.constant 1 : index
    %c0_24 = arith.constant 0 : index
    %c0_25 = arith.constant 0 : index
    %32 = vector.load %arg8[%c1_22, %c1_23, %c0_24, %c0_25] : memref<3x3x128x128xbf16, #tpu.memory_space<vmem>>, vector<1x1x128x128xbf16>
    %33 = vector.shape_cast %32 : vector<1x1x128x128xbf16> to vector<128x128xbf16>
    %cst_26 = arith.constant dense<0.000000e+00> : vector<128x128xf32>
    %34 = tpu.matmul %31, %33, %cst_26 {dimension_numbers = #tpu.dot_dimension_numbers<[1], [0], [0], [1], [0, 0, 1, 1], [], []>} : vector<128x128xbf16>, vector<128x128xbf16>, vector<128x128xf32> -> vector<128x128xf32>
    %35 = arith.addf %29, %34 : vector<128x128xf32>
    %36 = vector.extract_strided_slice %23 {offsets = [2, 0, 0], sizes = [8, 16, 128], strides = [1, 1, 1]} : vector<10x16x128xbf16> to vector<8x16x128xbf16>
    %37 = vector.shape_cast %36 : vector<8x16x128xbf16> to vector<128x128xbf16>
    %c2_27 = arith.constant 2 : index
    %c1_28 = arith.constant 1 : index
    %c0_29 = arith.constant 0 : index
    %c0_30 = arith.constant 0 : index
    %38 = vector.load %arg8[%c2_27, %c1_28, %c0_29, %c0_30] : memref<3x3x128x128xbf16, #tpu.memory_space<vmem>>, vector<1x1x128x128xbf16>
    %39 = vector.shape_cast %38 : vector<1x1x128x128xbf16> to vector<128x128xbf16>
    %cst_31 = arith.constant dense<0.000000e+00> : vector<128x128xf32>
    %40 = tpu.matmul %37, %39, %cst_31 {dimension_numbers = #tpu.dot_dimension_numbers<[1], [0], [0], [1], [0, 0, 1, 1], [], []>} : vector<128x128xbf16>, vector<128x128xbf16>, vector<128x128xf32> -> vector<128x128xf32>
    %41 = arith.addf %35, %40 : vector<128x128xf32>
    %c0_32 = arith.constant 0 : index
    %c17 = arith.constant 17 : index
    %c0_33 = arith.constant 0 : index
    %42 = vector.load %arg12[%c0_32, %c17, %c0_33] : memref<10x48x128xbf16, #tpu.memory_space<vmem>>, vector<10x16x128xbf16>
    %43 = vector.extract_strided_slice %42 {offsets = [0, 0, 0], sizes = [8, 16, 128], strides = [1, 1, 1]} : vector<10x16x128xbf16> to vector<8x16x128xbf16>
    %44 = vector.shape_cast %43 : vector<8x16x128xbf16> to vector<128x128xbf16>
    %c0_34 = arith.constant 0 : index
    %c2_35 = arith.constant 2 : index
    %c0_36 = arith.constant 0 : index
    %c0_37 = arith.constant 0 : index
    %45 = vector.load %arg8[%c0_34, %c2_35, %c0_36, %c0_37] : memref<3x3x128x128xbf16, #tpu.memory_space<vmem>>, vector<1x1x128x128xbf16>
    %46 = vector.shape_cast %45 : vector<1x1x128x128xbf16> to vector<128x128xbf16>
    %cst_38 = arith.constant dense<0.000000e+00> : vector<128x128xf32>
    %47 = tpu.matmul %44, %46, %cst_38 {dimension_numbers = #tpu.dot_dimension_numbers<[1], [0], [0], [1], [0, 0, 1, 1], [], []>} : vector<128x128xbf16>, vector<128x128xbf16>, vector<128x128xf32> -> vector<128x128xf32>
    %48 = arith.addf %41, %47 : vector<128x128xf32>
    %49 = vector.extract_strided_slice %42 {offsets = [1, 0, 0], sizes = [8, 16, 128], strides = [1, 1, 1]} : vector<10x16x128xbf16> to vector<8x16x128xbf16>
    %50 = vector.shape_cast %49 : vector<8x16x128xbf16> to vector<128x128xbf16>
    %c1_39 = arith.constant 1 : index
    %c2_40 = arith.constant 2 : index
    %c0_41 = arith.constant 0 : index
    %c0_42 = arith.constant 0 : index
    %51 = vector.load %arg8[%c1_39, %c2_40, %c0_41, %c0_42] : memref<3x3x128x128xbf16, #tpu.memory_space<vmem>>, vector<1x1x128x128xbf16>
    %52 = vector.shape_cast %51 : vector<1x1x128x128xbf16> to vector<128x128xbf16>
    %cst_43 = arith.constant dense<0.000000e+00> : vector<128x128xf32>
    %53 = tpu.matmul %50, %52, %cst_43 {dimension_numbers = #tpu.dot_dimension_numbers<[1], [0], [0], [1], [0, 0, 1, 1], [], []>} : vector<128x128xbf16>, vector<128x128xbf16>, vector<128x128xf32> -> vector<128x128xf32>
    %54 = arith.addf %48, %53 : vector<128x128xf32>
    %55 = vector.extract_strided_slice %42 {offsets = [2, 0, 0], sizes = [8, 16, 128], strides = [1, 1, 1]} : vector<10x16x128xbf16> to vector<8x16x128xbf16>
    %56 = vector.shape_cast %55 : vector<8x16x128xbf16> to vector<128x128xbf16>
    %c2_44 = arith.constant 2 : index
    %c2_45 = arith.constant 2 : index
    %c0_46 = arith.constant 0 : index
    %c0_47 = arith.constant 0 : index
    %57 = vector.load %arg8[%c2_44, %c2_45, %c0_46, %c0_47] : memref<3x3x128x128xbf16, #tpu.memory_space<vmem>>, vector<1x1x128x128xbf16>
    %58 = vector.shape_cast %57 : vector<1x1x128x128xbf16> to vector<128x128xbf16>
    %cst_48 = arith.constant dense<0.000000e+00> : vector<128x128xf32>
    %59 = tpu.matmul %56, %58, %cst_48 {dimension_numbers = #tpu.dot_dimension_numbers<[1], [0], [0], [1], [0, 0, 1, 1], [], []>} : vector<128x128xbf16>, vector<128x128xbf16>, vector<128x128xf32> -> vector<128x128xf32>
    %60 = arith.addf %54, %59 : vector<128x128xf32>
    %c0_49 = arith.constant 0 : index
    %c0_50 = arith.constant 0 : index
    %61 = vector.load %arg9[%c0_49, %c0_50] : memref<1x128xf32, #tpu.memory_space<vmem>>, vector<1x128xf32>
    %62 = vector.broadcast %61 : vector<1x128xf32> to vector<128x128xf32>
    %63 = arith.addf %60, %62 : vector<128x128xf32>
    %cst_51 = arith.constant 0.000000e+00 : f32
    %64 = vector.broadcast %cst_51 : f32 to vector<128x128xf32>
    %65 = arith.maximumf %63, %64 : vector<128x128xf32>
    %66 = vector.shape_cast %65 : vector<128x128xf32> to vector<1x8x16x128xf32>
    %c0_52 = arith.constant 0 : index
    %c0_53 = arith.constant 0 : index
    %c0_54 = arith.constant 0 : index
    %c0_55 = arith.constant 0 : index
    %67 = vector.load %arg10[%c0_52, %c0_53, %c0_54, %c0_55] : memref<1x8x16x128xf32, #tpu.memory_space<vmem>>, vector<1x8x16x128xf32>
    tpu.vector_store %arg10[%c0_52, %c0_53, %c0_54, %c0_55], %66 {strides = array<i32>} : memref<1x8x16x128xf32, #tpu.memory_space<vmem>>, vector<1x8x16x128xf32>,
    return
  }
  func.func @transform_0(%arg0: i32, %arg1: i32, %arg2: i32) -> (i32, i32, i32, i32) {
    %c0_i32 = arith.constant 0 : i32
    %c0_i32_0 = arith.constant 0 : i32
    %c0_i32_1 = arith.constant 0 : i32
    return %arg0, %arg1, %c0_i32, %c0_i32_0 : i32, i32, i32, i32
  }
  func.func @transform_1(%arg0: i32, %arg1: i32, %arg2: i32) -> (i32, i32, i32, i32) {
    %c4_i32 = arith.constant 4 : i32
    %0 = arith.muli %arg1, %c4_i32 : i32
    %c1_i32 = arith.constant 1 : i32
    %1 = arith.subi %0, %c1_i32 : i32
    %c0_i32 = arith.constant 0 : i32
    %2 = arith.maxsi %1, %c0_i32 : i32
    %c0_i32_0 = arith.constant 0 : i32
    %c0_i32_1 = arith.constant 0 : i32
    %c0_i32_2 = arith.constant 0 : i32
    return %arg0, %2, %c0_i32_0, %c0_i32_1 : i32, i32, i32, i32
  }
  func.func @transform_2(%arg0: i32, %arg1: i32, %arg2: i32) -> (i32, i32, i32, i32) {
    %c1_i32 = arith.constant 1 : i32
    %0 = arith.addi %arg1, %c1_i32 : i32
    %c4_i32 = arith.constant 4 : i32
    %1 = arith.muli %0, %c4_i32 : i32
    %c7_i32 = arith.constant 7 : i32
    %2 = arith.minsi %1, %c7_i32 : i32
    %c0_i32 = arith.constant 0 : i32
    %c0_i32_0 = arith.constant 0 : i32
    %c0_i32_1 = arith.constant 0 : i32
    return %arg0, %2, %c0_i32, %c0_i32_0 : i32, i32, i32, i32
  }
  func.func @transform_3(%arg0: i32, %arg1: i32, %arg2: i32) -> (i32, i32, i32, i32) {
    %c0_i32 = arith.constant 0 : i32
    %c0_i32_0 = arith.constant 0 : i32
    %c0_i32_1 = arith.constant 0 : i32
    %c0_i32_2 = arith.constant 0 : i32
    %c0_i32_3 = arith.constant 0 : i32
    return %c0_i32, %c0_i32_0, %c0_i32_1, %c0_i32_2 : i32, i32, i32, i32
  }
  func.func @transform_4(%arg0: i32, %arg1: i32, %arg2: i32) -> (i32, i32) {
    %c0_i32 = arith.constant 0 : i32
    %c0_i32_0 = arith.constant 0 : i32
    %c0_i32_1 = arith.constant 0 : i32
    return %c0_i32, %c0_i32_0 : i32, i32
  }
  func.func @transform_5(%arg0: i32, %arg1: i32, %arg2: i32) -> (i32, i32, i32, i32) {
    %c0_i32 = arith.constant 0 : i32
    %c0_i32_0 = arith.constant 0 : i32
    %c0_i32_1 = arith.constant 0 : i32
    %c0_i32_2 = arith.constant 0 : i32
    return %c0_i32, %c0_i32_0, %c0_i32_1, %arg2 : i32, i32, i32, i32
  }
  func.func @transform_6(%arg0: i32, %arg1: i32, %arg2: i32) -> (i32, i32) {
    %c0_i32 = arith.constant 0 : i32
    %c0_i32_0 = arith.constant 0 : i32
    return %c0_i32, %arg2 : i32, i32
  }
  func.func @transform_7(%arg0: i32, %arg1: i32, %arg2: i32) -> (i32, i32, i32, i32) {
    %c0_i32 = arith.constant 0 : i32
    %c0_i32_0 = arith.constant 0 : i32
    return %arg0, %arg1, %c0_i32, %arg2 : i32, i32, i32, i32
  }
}

</mosaic_0001>

<bundles_post_ra>
// kernel: double_conv_forward.1
= control target key start
LH: loop header
LB: loop body
LE: loop exit
PB: predicated region body
PF: predicated region fallthrough
CT: control target
= control target key end

     0   :  { %s6217_s24 = smov 0   ;;  %s6219_s25 = smov 0   ;;  %s7620_s0 = inlined_call_operand.vmem [shape: bf16[2,16,16,128], index: 0, kind: input, shape index: {}, may-alias: {0,1,2}]   ;;  %s7621_s1 = inlined_call_operand.vmem [shape: bf16[2,16,16,128], index: 1, kind: input, shape index: {}, may-alias: {0,1,2}]   ;;  %s7622_s2 = inlined_call_operand.vmem [shape: bf16[2,16,16,128], index: 2, kind: input, shape index: {}, may-alias: {0,1,2}]   ;;  %s7623_s3 = inlined_call_operand.vmem [shape: bf16[3,3,128,128], index: 3, kind: input, shape index: {}]   ;;  %s7624_s4 = inlined_call_operand.vmem [shape: f32[1,128], index: 4, kind: input, shape index: {}]   ;;  %s7625_s5 = inlined_call_operand.vmem [shape: bf16[3,3,128,128], index: 5, kind: input, shape index: {}]   ;;  %s7626_s6 = inlined_call_operand.vmem [shape: f32[1,128], index: 6, kind: input, shape index: {}]   ;;  %s7627_s7 = inlined_call_operand.vmem [shape: f32[2,16,16,128], index: 7, kind: output, shape index: {}]  }
   0x1   :  { %s6221_s26 = smov 0   ;;  %s6223_s27 = smov 0  }
   0x2   :  { %s6225_s28 = smov 0  }
   0x3 LB: > { %s32_s29 = sadd.s32 1, %s6162_s26  ;;  %s36_s30 = sadd.s32 1, %s6166_s27  ;;  %s6170_s28 = sphi %s6225_s28, %s17_s28   ;;  %s6166_s27 = sphi %s6223_s27, %s7645_s27   ;;  %s6162_s26 = sphi %s6221_s26, %s7644_s26   ;;  %s6158_s25 = sphi %s6219_s25, %s7643_s25   ;;  %s6154_s24 = sphi %s6217_s24, %s7642_s24  }
   0x4   : > { %p34_p0 = scmp.ge.s32.totalorder %s32_s29, 2  ;;  %p4867_p1 = scmp.ge.s32.totalorder %s6170_s28, 1 }
   0x5   : > { %p353_p2 = scmp.lt.s32.totalorder %s6170_s28, 5 }
   0x6   : > { %s7647_s29 = smov (%p34_p0, %s32_s29), 0  ;;  %s7649_s30 = smov (!%p34_p0, %s36_s30), %s6166_s27 }
   0x7   : > { %p354_p3 = pnand %p4867_p1, %p353_p2  ;;  %p38_p4 = scmp.ge.s32.totalorder %s7649_s30, 2 }
   0x9   : > { %s7651_s30 = smov (%p38_p4, %s7649_s30), 0  ;;  %357 = sbr.rel (%p354_p3) target bundleno = 1330 (0x532), region = 48 }
   0xe   : > { %s4868_s8 = sshll.u32 %s6154_s24, 3  ;;  %p434_p5 = scmp.lt.s32.totalorder %s6158_s25, 1  ;;  %v6172_v0 = vmov 0  }
   0xf   : > { %p436_p6 = scmp.lt.s32.totalorder %s4868_s8, 15  ;;  %s4872_s9 = sshll.u32 %s6154_s24, 2  ;;  %509 = vst [vmem:[#allocation2 + $0x4] sm:$0xf] %v6172_v0 }
  0x10   : > { %s7653_s25 = smov (!%p434_p5, %s6158_s25), 1  ;;  %511 = vst [vmem:[#allocation2 + $0x1c] sm:$0xf] %v6172_v0  ;;  %s4873_s11 = sadd.s32 4294967295, %s4872_s9 }
  0x11   : > { %s7655_s8 = smov (!%p436_p6, %s4868_s8), 15  ;;  %s4870_s10 = sshll.u32 %s7653_s25, 5  ;;  %513 = vst [vmem:[#allocation2 + $0x34] sm:$0xf] %v6172_v0 }
  0x12   : > { %s4869_s12 = sshll.u32 %s7655_s8, 1  ;;  %p446_p7 = scmp.gt.s32.totalorder %s4873_s11, 0  ;;  %515 = vst [vmem:[#allocation2 + $0x4c] sm:$0xf] %v6172_v0 }
  0x13   : > { %s5842_s13 = sadd.s32 4, %s4872_s9  ;;  %s6254_s14 = sadd.s32 %s4870_s10, %s4869_s12  ;;  %517 = vst [vmem:[#allocation2 + $0x64] sm:$0xf] %v6172_v0 }
  0x14   : > { %p465_p8 = scmp.lt.s32.totalorder %s5842_s13, 7  ;;  %s4886_s15 = sshll.u32 %s6254_s14, 3  ;;  %519 = vst [vmem:[#allocation2 + $0x7c] sm:$0xf] %v6172_v0 }
  0x15   : > { %s7657_s11 = smov (!%p446_p7, %s4873_s11), 0  ;;  %s6262_s19 = scalar_lea.vmem %s7627_s7, %s4886_s15  ;;  %521 = vst [vmem:[#allocation2 + $0x94] sm:$0xf] %v6172_v0 }
  0x16   : > { %s7659_s13 = smov (!%p465_p8, %s5842_s13), 7  ;;  %s4874_s16 = sshll.u32 %s7657_s11, 1  ;;  %523 = vst [vmem:[#allocation2 + $0xac] sm:$0xf] %v6172_v0 }
  0x17   : > { %p451_p9 = scmp.lt.s32.totalorder %s4874_s16, 15  ;;  %s4879_s20 = sshll.u32 %s7659_s13, 1  ;;  %525 = vst [vmem:[#allocation2 + $0xc4] sm:$0xf] %v6172_v0 }
  0x18   : > { %p470_p10 = scmp.lt.s32.totalorder %s4879_s20, 15  ;;  %527 = vst [vmem:[#allocation2 + $0xdc] sm:$0xf] %v6172_v0  ;;  %p4887_p11 = scmp.le.s32.totalorder %s6154_s24, 0 }
  0x19   : > { %s7661_s16 = smov (!%p451_p9, %s4874_s16), 15  ;;  %529 = vst [vmem:[#allocation2 + $0xf4] sm:$0xf] %v6172_v0 }
  0x1a   : > { %s7663_s20 = smov (!%p470_p10, %s4879_s20), 15  ;;  %s4875_s21 = sshll.u32 %s7661_s16, 1  ;;  %531 = vst [vmem:[#allocation2 + $0x10c] sm:$0xf] %v6172_v0 }
  0x1b   : > { %s455_s22 = sadd.s32 %s4875_s21, %s4870_s10  ;;  %s4880_s23 = sshll.u32 %s7663_s20, 1  ;;  %532 = vst [vmem:[#allocation2 + $0x10] sm:$0xf] %v6172_v0 }
  0x1c   : > { %s4877_s25 = sshll.u32 %s455_s22, 2  ;;  %s474_s8 = sadd.s32 %s4880_s23, %s4870_s10  ;;  %534 = vst [vmem:[#allocation2 + $0x28] sm:$0xf] %v6172_v0 }
  0x1d   : > { %s6271_s12 = scalar_lea.vmem %s7621_s1, %s4877_s25  ;;  %s4882_s13 = sshll.u32 %s474_s8, 2  ;;  %536 = vst [vmem:[#allocation2 + $0x40] sm:$0xf] %v6172_v0 }
  0x1e   : > { %s6277_s18 = scalar_lea.vmem %s7622_s2, %s4882_s13  ;;  %538 = vst [vmem:[#allocation2 + $0x58] sm:$0xf] %v6172_v0  ;;  %s4871_s10 = sshll.u32 %s6254_s14, 2 }
  0x1f   : > { %540 = vst [vmem:[#allocation2 + $0x70] sm:$0xf] %v6172_v0  ;;  %s442_s21 = scalar_lea.vmem %s7620_s0, %s4871_s10 }
  0x20   : > { %542 = vst [vmem:[#allocation2 + $0x88] sm:$0xf] %v6172_v0  ;;  %v556_v1 = vld [vmem:[%s442_s21] sm:$0xff]   ;;  %v558_v2 = vld [vmem:[%s442_s21 + $0x8] sm:$0xff]   ;;  %v560_v3 = vld [vmem:[%s442_s21 + $0x10] sm:$0xff]  }
  0x21   : > { %544 = vst [vmem:[#allocation2 + $0xa0] sm:$0xf] %v6172_v0  ;;  %v562_v4 = vld [vmem:[%s442_s21 + $0x18] sm:$0xff]   ;;  %v564_v5 = vld [vmem:[%s442_s21 + $0x20] sm:$0xff]   ;;  %v566_v6 = vld [vmem:[%s442_s21 + $0x28] sm:$0xff]  }
  0x22   : > { %546 = vst [vmem:[#allocation2 + $0xb8] sm:$0xf] %v6172_v0  ;;  %v568_v7 = vld [vmem:[%s442_s21 + $0x30] sm:$0xff]   ;;  %v570_v8 = vld [vmem:[%s442_s21 + $0x38] sm:$0xff]  }
  0x23   : > { %548 = vst [vmem:[#allocation2 + $0xd0] sm:$0xf] %v6172_v0 }
  0x24   : > { %550 = vst [vmem:[#allocation2 + $0xe8] sm:$0xf] %v6172_v0 }
  0x25   : > { %552 = vst [vmem:[#allocation2 + $0x100] sm:$0xf] %v6172_v0 }
  0x26   : > { %554 = vst [vmem:[#allocation2 + $0x118] sm:$0xf] %v6172_v0 }
  0x27   : > { %573 = vst [vmem:[#allocation2 + $0x38] sm:$0xff] %v556_v1  }
  0x28   : > { %575 = vst [vmem:[#allocation2 + $0x50] sm:$0xff] %v558_v2  }
  0x29   : > { %577 = vst [vmem:[#allocation2 + $0x68] sm:$0xff] %v560_v3  }
  0x2a   : > { %579 = vst [vmem:[#allocation2 + $0x80] sm:$0xff] %v562_v4   ;;  %592 = sbr.rel (%p4887_p11) target bundleno = 50 (0x32), region = 56 }
  0x2b   : > { %581 = vst [vmem:[#allocation2 + $0x98] sm:$0xff] %v564_v5  }
  0x2c   : > { %583 = vst [vmem:[#allocation2 + $0xb0] sm:$0xff] %v566_v6  }
  0x2d   : > { %585 = vst [vmem:[#allocation2 + $0xc8] sm:$0xff] %v568_v7  }
  0x2e   : > { %587 = vst [vmem:[#allocation2 + $0xe0] sm:$0xff] %v570_v8  }
  0x2f   : > { %v593_v9 = vld [vmem:[%s6271_s12] sm:$0xff]   ;;  %v595_v10 = vld [vmem:[%s6271_s12 + $0x8] sm:$0xff]  }
  0x30   : > { %597 = vst [vmem:[#allocation2 + $0x8] sm:$0xff] %v593_v9  }
  0x31   : > { %599 = vst [vmem:[#allocation2 + $0x20] sm:$0xff] %v595_v10  }
  0x32 PF: > { %p4888_p12 = scmp.ne.s32.totalorder %s6154_s24, 0 }
  0x34   : > { %604 = sbr.rel (%p4888_p12) target bundleno = 62 (0x3e), region = 60 }
  0x39   : > { %v6173_v11 = vmov 0  }
  0x3a   : > { %605 = vst [vmem:[#allocation2 + $0x8] sm:$0xf] %v6173_v11 }
  0x3b   : > { %606 = vst [vmem:[#allocation2 + $0xc] sm:$0xf] %v6173_v11 }
  0x3c   : > { %607 = vst [vmem:[#allocation2 + $0x20] sm:$0xf] %v6173_v11 }
  0x3d   : > { %608 = vst [vmem:[#allocation2 + $0x24] sm:$0xf] %v6173_v11 }
  0x3e PF: > { %p4889_p13 = scmp.ge.s32.totalorder %s6154_s24, 1 }
  0x40   : > { %612 = sbr.rel (%p4889_p13) target bundleno = 72 (0x48), region = 64 }
  0x45   : > { %v613_v12 = vld [vmem:[%s6277_s18] sm:$0xff]   ;;  %v615_v13 = vld [vmem:[%s6277_s18 + $0x8] sm:$0xff]  }
  0x46   : > { %618 = vst [vmem:[#allocation2 + $0xf8] sm:$0xff] %v613_v12  }
  0x47   : > { %620 = vst [vmem:[#allocation2 + $0x110] sm:$0xff] %v615_v13  }
  0x48 PF: > { %p4890_p0 = scmp.ne.s32.totalorder %s6154_s24, 1 }
  0x4a   : > { %625 = sbr.rel (%p4890_p0) target bundleno = 84 (0x54), region = 68 }
  0x4f   : > { %v6174_v14 = vmov 0  }
  0x50   : > { %627 = vst [vmem:[#allocation2 + $0xf8] sm:$0xf] %v6174_v14 }
  0x51   : > { %628 = vst [vmem:[#allocation2 + $0xfc] sm:$0xf] %v6174_v14 }
  0x52   : > { %629 = vst [vmem:[#allocation2 + $0x110] sm:$0xf] %v6174_v14 }
  0x53   : > { %630 = vst [vmem:[#allocation2 + $0x114] sm:$0xf] %v6174_v14 }
  0x54 PF: > { %v5870_v15 = vld [vmem:[%s7623_s3 + $0xf8] sm:$0xff]  ;;  %v5869_v17 = vld [vmem:[%s7623_s3 + $0xf0] sm:$0xff]  ;;  %2729 = vst [vmem:[#allocation3 + $0x4] sm:$0xf] %v6172_v0  ;;  %v5868_v19 = vld [vmem:[%s7623_s3 + $0xe8] sm:$0xff]  ;;  %v7630_v63 = vmov 0 }
  0x55   : > { %v5862_v16 = vld [vmem:[%s7623_s3 + $0x38] sm:$0xff]  ;;  %1033 = vmatpush.bf16.msra.mxu0 %v5870_v15  ;;  %v5861_v18 = vld [vmem:[%s7623_s3 + $0x30] sm:$0xff]  ;;  %v635_v20 = vld [vmem:[#allocation2 + $0x20] sm:$0xf]  ;;  %vm667_vm0 = vsmask.f32 256 }
  0x56   : > { %1144 = vmatpush.bf16.msra.mxu1 %v5862_v16  ;;  %6069 = vmatpush.bf16.msra.mxu3 %v5862_v16  ;;  %v5860_v21 = vld [vmem:[%s7623_s3 + $0x28] sm:$0xff]  ;;  %v636_v22 = vld [vmem:[#allocation2 + $0x24] sm:$0xf]  ;;  %v6331_v23 = vld [vmem:[%s7623_s3 + $0x1b8] sm:$0xff]  ;;  %v698_v26 = vshrl.u32 %v635_v20, 16  ;;  %v701_v40 = vshll.u32 %v635_v20, 16 }
  0x57   : > { %v632_v24 = vld [vmem:[#allocation2 + $0x8] sm:$0xf]  ;;  %v634_v25 = vld [vmem:[#allocation2 + $0x1c] sm:$0x8]  ;;  %v633_v27 = vld [vmem:[#allocation2 + $0xc] sm:$0xf]  ;;  %6077 = vmatpush.bf16.msra.mxu2 %v6331_v23 }
  0x58   : > { %vm668_vm1 = vsmask.f32 4368  ;;  %v707_v28 = vshrl.u32 %v636_v22, 16  ;;  %v631_v29 = vld [vmem:[#allocation2 + $0x4] sm:$0x8]  ;;  %v676_v30 = vshrl.u32 %v632_v24, 16 }
  0x59   : > { %1034 = vmatpush.bf16.msra.mxu0 %v5869_v17  ;;  %v5867_v31 = vld [vmem:[%s7623_s3 + $0xe0] sm:$0xff]  ;;  %v685_v33 = vshrl.u32 %v633_v27, 16  ;;  %v653_v34 = vld [vmem:[#allocation2 + $0xb0] sm:$0xf]  ;;  %v693_v35 = vshrl.u32 %v634_v25, 16  ;;  %v700_v39 = vrot.slane %v698_v26, 7  ;;  %vm6360_vm2 = vmor %vm667_vm0, %vm668_vm1 }
  0x5a   : > { %1145 = vmatpush.bf16.msra.mxu1 %v5861_v18  ;;  %6070 = vmatpush.bf16.msra.mxu3 %v5861_v18  ;;  %v5859_v32 = vld [vmem:[%s7623_s3 + $0x20] sm:$0xff]  ;;  %v652_v36 = vld [vmem:[#allocation2 + $0xac] sm:$0x8]  ;;  %v654_v37 = vld [vmem:[#allocation2 + $0xb4] sm:$0xf]  ;;  %v830_v38 = vshrl.u32 %v653_v34, 16 }
  0x5b   : > { %v710_v41 = vshll.u32 %v636_v22, 16  ;;  %v671_v42 = vshrl.u32 %v631_v29, 16  ;;  %v709_v43 = vrot.slane %v707_v28, 7  ;;  %v678_v44 = vrot.slane %v676_v30, 7  ;;  %v5866_v47 = vld [vmem:[%s7623_s3 + $0xd8] sm:$0xff]  ;;  %v6350_v60 = vld [vmem:[%s7623_s3 + $0x1b0] sm:$0xff] }
  0x5c   : > { %v679_v45 = vshll.u32 %v632_v24, 16  ;;  %v688_v46 = vshll.u32 %v633_v27, 16  ;;  %v5858_v48 = vld [vmem:[%s7623_s3 + $0x18] sm:$0xff]  ;;  %v687_v49 = vrot.slane %v685_v33, 7  ;;  %v825_v50 = vshrl.u32 %v652_v36, 16  ;;  %v5865_v61 = vld [vmem:[%s7623_s3 + $0xd0] sm:$0xff]  ;;  %6078 = vmatpush.bf16.msra.mxu2 %v6350_v60 }
  0x5d   : > { %1035 = vmatpush.bf16.msra.mxu0 %v5868_v19  ;;  %v833_v51 = vshll.u32 %v653_v34, 16  ;;  %v839_v52 = vshrl.u32 %v654_v37, 16  ;;  %v832_v53 = vrot.slane %v830_v38, 7  ;;  %v842_v54 = vshll.u32 %v654_v37, 16  ;;  %2731 = vst [vmem:[#allocation3 + $0x1c] sm:$0xf] %v6172_v0 }
  0x5e   : > { %1146 = vmatpush.bf16.msra.mxu1 %v5860_v21  ;;  %6071 = vmatpush.bf16.msra.mxu3 %v5860_v21  ;;  %v4892_v55 = vrot.slane %v693_v35, 11  ;;  %v703_v56 = vor.u32 %v701_v40, %v700_v39  ;;  %v705_v57 = vrot.slane %v700_v39, 4  ;;  %v4891_v58 = vrot.slane %v671_v42, 11  ;;  %v5857_v62 = vld [vmem:[%s7623_s3 + $0x10] sm:$0xff]  ;;  %v6368_v9 = vld [vmem:[%s7623_s3 + $0x1a8] sm:$0xff]  ;;  %v6392_v22 = vld [vmem:[%s7623_s3 + $0x1a0] sm:$0xff] }
  0x5f   : > { %v841_v59 = vrot.slane %v839_v52, 7  ;;  %v7631_v63 = vsel %vm6360_vm2, 4294967295, %v7630_v63  ;;  %v712_v1 = vor.u32 %v710_v41, %v709_v43  ;;  %v681_v2 = vor.u32 %v679_v45, %v678_v44  ;;  %v5864_v10 = vld [vmem:[%s7623_s3 + $0xc8] sm:$0xff]  ;;  %v638_v12 = vld [vmem:[#allocation2 + $0x38] sm:$0xf] }
  0x60   : > { %7632 = vst [vmem:[#allocation4_spill] sm:$0xff] %v7631_v63  ;;  %v683_v3 = vrot.slane %v678_v44, 4  ;;  %v690_v4 = vor.u32 %v688_v46, %v687_v49  ;;  %v4898_v5 = vrot.slane %v825_v50, 11  ;;  %v835_v6 = vor.u32 %v833_v51, %v832_v53  ;;  %v5856_v13 = vld [vmem:[%s7623_s3 + $0x8] sm:$0xff]  ;;  %v637_v17 = vld [vmem:[#allocation2 + $0x34] sm:$0x8]  ;;  %6079 = vmatpush.bf16.msra.mxu2 %v6368_v9 }
  0x61   : > { %1036 = vmatpush.bf16.msra.mxu0 %v5867_v31  ;;  %v837_v7 = vrot.slane %v832_v53, 4  ;;  %v844_v8 = vor.u32 %v842_v54, %v841_v59  ;;  %v704_v11 = vsel %vm6360_vm2, %v4892_v55, %v703_v56  ;;  %v713_v14 = vsel %vm6360_vm2, %v705_v57, %v712_v1  ;;  %v639_v18 = vld [vmem:[#allocation2 + $0x3c] sm:$0xf]  ;;  %v656_v21 = vld [vmem:[#allocation2 + $0xc8] sm:$0xf]  ;;  %v5863_v31 = vld [vmem:[%s7623_s3 + $0xc0] sm:$0xff] }
  0x62   : > { %1147 = vmatpush.bf16.msra.mxu1 %v5859_v32  ;;  %6072 = vmatpush.bf16.msra.mxu3 %v5859_v32  ;;  %v682_v15 = vsel %vm6360_vm2, %v4891_v58, %v681_v2  ;;  %v691_v16 = vsel %vm6360_vm2, %v683_v3, %v690_v4  ;;  %v836_v19 = vsel %vm6360_vm2, %v4898_v5, %v835_v6  ;;  %v945_v24 = vunpack.c.l.b16 %v704_v11  ;;  %v657_v26 = vld [vmem:[#allocation2 + $0xcc] sm:$0xf]  ;;  %v5855_v32 = vld [vmem:[%s7623_s3] sm:$0xff]  ;;  %v5886_v41 = vld [vmem:[%s7623_s3 + $0x78] sm:$0xff] }
  0x63   : > { %v845_v20 = vsel %vm6360_vm2, %v837_v7, %v844_v8  ;;  %2733 = vst [vmem:[#allocation3 + $0x34] sm:$0xf] %v6172_v0  ;;  %v720_v25 = vshrl.u32 %v638_v12, 16  ;;  %v946_v27 = vunpack.c.l.b16 %v713_v14  ;;  %v1092_v28 = vunpack.c.l.b16 %v682_v15  ;;  %v655_v35 = vld [vmem:[#allocation2 + $0xc4] sm:$0x8]  ;;  %v6410_v42 = vld [vmem:[%s7623_s3 + $0x198] sm:$0xff] }
  0x64   : > { %v1093_v29 = vunpack.c.l.b16 %v691_v16  ;;  %v729_v30 = vshrl.u32 %v639_v18, 16  ;;  %2735 = vst [vmem:[#allocation3 + $0x4c] sm:$0xf] %v6172_v0  ;;  %v957_v33 = vunpack.c.l.b16 %v836_v19  ;;  %v958_v34 = vunpack.c.l.b16 %v845_v20  ;;  %6080 = vmatpush.bf16.msra.mxu2 %v6392_v22  ;;  %v5885_v55 = vld [vmem:[%s7623_s3 + $0x70] sm:$0xff]  ;;  %v646_v2 = vld [vmem:[#allocation2 + $0x7c] sm:$0x8] }
  0x65   : > { %1037 = vmatpush.bf16.msra.mxu0 %v5866_v47  ;;  %v715_v36 = vshrl.u32 %v637_v17, 16  ;;  %v852_v37 = vshrl.u32 %v656_v21, 16  ;;  %v861_v38 = vshrl.u32 %v657_v26, 16  ;;  %2737 = vst [vmem:[#allocation3 + $0x64] sm:$0xf] %v6172_v0  ;;  %v722_v39 = vrot.slane %v720_v25, 7 }
  0x66   : > { %1148 = vmatpush.bf16.msra.mxu1 %v5858_v48  ;;  %6073 = vmatpush.bf16.msra.mxu3 %v5858_v48  ;;  %v723_v40 = vshll.u32 %v638_v12, 16  ;;  %v6412_v43 = vpack.c.b16 %v946_v27, %v945_v24  ;;  %v1094_v44 = vpack.c.b16 %v1093_v29, %v1092_v28  ;;  %v731_v45 = vrot.slane %v729_v30, 7  ;;  %2739 = vst [vmem:[#allocation3 + $0x7c] sm:$0xf] %v6172_v0  ;;  %v6427_v57 = vld [vmem:[%s7623_s3 + $0x190] sm:$0xff]  ;;  %v5884_v5 = vld [vmem:[%s7623_s3 + $0x68] sm:$0xff] }
  0x67   : > { %v732_v46 = vshll.u32 %v639_v18, 16  ;;  %v6415_v47 = vpack.c.b16 %v958_v34, %v957_v33  ;;  %v847_v48 = vshrl.u32 %v655_v35, 16  ;;  %v854_v49 = vrot.slane %v852_v37, 7  ;;  %2741 = vst [vmem:[#allocation3 + $0x94] sm:$0xf] %v6172_v0  ;;  %v6443_v6 = vld [vmem:[%s7623_s3 + $0x188] sm:$0xff] }
  0x68   : > { %v855_v50 = vshll.u32 %v656_v21, 16  ;;  %v863_v51 = vrot.slane %v861_v38, 7  ;;  %v864_v52 = vshll.u32 %v657_v26, 16  ;;  %v4893_v53 = vrot.slane %v715_v36, 11  ;;  %6081 = vmatpush.bf16.msra.mxu2 %v6410_v42  ;;  %v6430_v58 = vld [vmem:[#allocation2 + $0x50] sm:$0xf] }
  0x69   : > { %1038 = vmatpush.bf16.msra.mxu0 %v5865_v61  ;;  %v725_v54 = vor.u32 %v723_v40, %v722_v39  ;;  %v727_v56 = vrot.slane %v722_v39, 4  ;;  %2743 = vst [vmem:[#allocation3 + $0xac] sm:$0xf] %v6172_v0  ;;  %v4899_v59 = vrot.slane %v847_v48, 11  ;;  %v647_v3 = vld [vmem:[#allocation2 + $0x80] sm:$0xf] }
  0x6a   : > { %1149 = vmatpush.bf16.msra.mxu1 %v5857_v62  ;;  %6074 = vmatpush.bf16.msra.mxu3 %v5857_v62  ;;  %v857_v61 = vor.u32 %v855_v50, %v854_v49  ;;  %v859_v62 = vrot.slane %v854_v49, 4  ;;  %v866_v1 = vor.u32 %v864_v52, %v863_v51  ;;  %v648_v7 = vld [vmem:[#allocation2 + $0x84] sm:$0xf]  ;;  %v781_v8 = vshrl.u32 %v646_v2, 16  ;;  %v642_v15 = vld [vmem:[#allocation2 + $0x54] sm:$0xf] }
  0x6b   : > { %v726_v4 = vsel %vm6360_vm2, %v4893_v53, %v725_v54  ;;  %v789_v11 = vshll.u32 %v647_v3, 16  ;;  %v795_v12 = vshrl.u32 %v648_v7, 16  ;;  %v5883_v14 = vld [vmem:[%s7623_s3 + $0x60] sm:$0xff]  ;;  %v742_v21 = vshrl.u32 %v6430_v58, 16  ;;  %v640_v28 = vld [vmem:[#allocation2 + $0x4c] sm:$0x8] }
  0x6c   : > { %6082 = vmatpush.bf16.msra.mxu2 %v6427_v57  ;;  %v6450_v16 = vld [vmem:[#allocation2 + $0xe0] sm:$0xf]  ;;  %v4896_v17 = vrot.slane %v781_v8, 11  ;;  %v858_v19 = vsel %vm6360_vm2, %v4899_v59, %v857_v61  ;;  %v867_v20 = vsel %vm6360_vm2, %v859_v62, %v866_v1  ;;  %v660_v24 = vld [vmem:[#allocation2 + $0xe4] sm:$0xf]  ;;  %v947_v26 = vunpack.c.l.b16 %v726_v4  ;;  %v5882_v49 = vld [vmem:[%s7623_s3 + $0x58] sm:$0xff] }
  0x6d   : > { %1039 = vmatpush.bf16.msra.mxu0 %v5864_v10  ;;  %v797_v25 = vrot.slane %v795_v12, 7  ;;  %v6462_v29 = vld [vmem:[%s7623_s3 + $0x180] sm:$0xff]  ;;  %2745 = vst [vmem:[#allocation3 + $0xc4] sm:$0xf] %v6172_v0  ;;  %v874_v33 = vshrl.u32 %v6450_v16, 16  ;;  %v959_v34 = vunpack.c.l.b16 %v858_v19  ;;  %v960_v35 = vunpack.c.l.b16 %v867_v20  ;;  %v5881_v61 = vld [vmem:[%s7623_s3 + $0x50] sm:$0xff] }
  0x6e   : > { %1150 = vmatpush.bf16.msra.mxu1 %v5856_v13  ;;  %6075 = vmatpush.bf16.msra.mxu3 %v5856_v13  ;;  %v798_v13 = vshll.u32 %v648_v7, 16  ;;  %v658_v36 = vld [vmem:[#allocation2 + $0xdc] sm:$0x8]  ;;  %v883_v37 = vshrl.u32 %v660_v24, 16  ;;  %2747 = vst [vmem:[#allocation3 + $0xdc] sm:$0xf] %v6172_v0 }
  0x6f   : > { %v737_v39 = vshrl.u32 %v640_v28, 16  ;;  %v744_v40 = vrot.slane %v742_v21, 7  ;;  %2748 = vst [vmem:[#allocation3 + $0x10] sm:$0xf] %v6172_v0  ;;  %v754_v48 = vshll.u32 %v642_v15, 16  ;;  %v869_v52 = vshrl.u32 %v658_v36, 16 }
  0x70   : > { %6083 = vmatpush.bf16.msra.mxu2 %v6443_v6  ;;  %v876_v53 = vrot.slane %v874_v33, 7  ;;  %2750 = vst [vmem:[#allocation3 + $0x28] sm:$0xf] %v6172_v0  ;;  %v6482_v54 = vpack.c.b16 %v960_v35, %v959_v34  ;;  %v650_v7 = vld [vmem:[#allocation2 + $0x98] sm:$0xf] }
  0x71   : > { %1040 = vmatpush.bf16.msra.mxu0 %v5863_v31  ;;  %2752 = vst [vmem:[#allocation3 + $0x40] sm:$0xf] %v6172_v0  ;;  %v749_v62 = vrot.slane %v744_v40, 4  ;;  %v4900_v2 = vrot.slane %v869_v52, 11  ;;  %v651_v8 = vld [vmem:[#allocation2 + $0x9c] sm:$0xf] }
  0x72   : > { %1151 = vmatpush.bf16.msra.mxu1 %v5855_v32  ;;  %6076 = vmatpush.bf16.msra.mxu3 %v5855_v32  ;;  %v751_v32 = vshrl.u32 %v642_v15, 16  ;;  %2754 = vst [vmem:[#allocation3 + $0x58] sm:$0xf] %v6172_v0  ;;  %v817_v12 = vshrl.u32 %v651_v8, 16  ;;  %v644_v20 = vld [vmem:[#allocation2 + $0x68] sm:$0xf] }
  0x73   : > { %2756 = vst [vmem:[#allocation3 + $0x70] sm:$0xf] %v6172_v0  ;;  %v645_v21 = vld [vmem:[#allocation2 + $0x6c] sm:$0xf]  ;;  %v643_v34 = vld [vmem:[#allocation2 + $0x64] sm:$0x8] }
  0x74   : > { %1041 = vmatmul.bf16.vlgmr.msra.gmra.mxu0 %v6412_v43  ;;  %6084 = vmatpush.bf16.msra.mxu2 %v6462_v29  ;;  %v753_v51 = vrot.slane %v751_v32, 7  ;;  %2758 = vst [vmem:[#allocation3 + $0x88] sm:$0xf] %v6172_v0  ;;  %v764_v35 = vshrl.u32 %v644_v20, 16  ;;  %vm1913_vm3 = vsmask.f32 3328 }
  0x75   : > { %1294 = vmatpush.bf16.msrb.mxu0 %v6331_v23  ;;  %1152 = vmatmul.bf16.vlgmr.msra.gmra.mxu1 %v1094_v44  ;;  %v734_v23 = vor.u32 %v732_v46, %v731_v45  ;;  %v745_v46 = vshll.u32 %v6430_v58, 16  ;;  %v4894_v58 = vrot.slane %v737_v39, 11  ;;  %2760 = vst [vmem:[#allocation3 + $0xa0] sm:$0xf] %v6172_v0  ;;  %vm1914_vm4 = vsmask.f32 7440 }
  0x76   : > { %1498 = vmatpush.bf16.msrb.mxu3 %v5886_v41  ;;  %v756_v1 = vor.u32 %v754_v48, %v753_v51  ;;  %2762 = vst [vmem:[#allocation3 + $0xb8] sm:$0xf] %v6172_v0  ;;  %vm6695_vm5 = vmor %vm1913_vm3, %vm1914_vm4 }
  0x77   : > { %1187 = vmatmul.bf16.vlgmr.msra.gmra.mxu3 %v6415_v47  ;;  %v735_v10 = vsel %vm6360_vm2, %v727_v56, %v734_v23  ;;  %v886_v56 = vshll.u32 %v660_v24, 16  ;;  %v747_v59 = vor.u32 %v745_v46, %v744_v40  ;;  %2764 = vst [vmem:[#allocation3 + $0xd0] sm:$0xf] %v6172_v0  ;;  %v767_v46 = vshll.u32 %v644_v20, 16 }
  0x78   : > { %v948_v27 = vunpack.c.l.b16 %v735_v10  ;;  %v808_v10 = vshrl.u32 %v650_v7, 16  ;;  %v757_v15 = vsel %vm6360_vm2, %v749_v62, %v756_v1  ;;  %2766 = vst [vmem:[#allocation3 + $0xe8] sm:$0xf] %v6172_v0  ;;  %v661_v62 = vld [vmem:[#allocation2 + $0xf4] sm:$0x8] }
  0x79   : > { %1295 = vmatpush.bf16.msrb.mxu0 %v6350_v60  ;;  %v786_v60 = vshrl.u32 %v647_v3, 16  ;;  %v881_v3 = vrot.slane %v876_v53, 4  ;;  %v950_v28 = vunpack.c.l.b16 %v757_v15  ;;  %v662_v1 = vld [vmem:[#allocation2 + $0xf8] sm:$0xf] }
  0x7a   : > { %1499 = vmatpush.bf16.msrb.mxu3 %v5885_v55  ;;  %v6473_v45 = vpack.c.b16 %v948_v27, %v947_v26  ;;  %v885_v55 = vrot.slane %v883_v37, 7 }
  0x7b   : > { %v788_v18 = vrot.slane %v786_v60, 7 }
  0x7c   : > { %v888_v4 = vor.u32 %v886_v56, %v885_v55 }
  0x7d   : > { %1296 = vmatpush.bf16.msrb.mxu0 %v6368_v9  ;;  %v791_v30 = vor.u32 %v789_v11, %v788_v18  ;;  %v793_v31 = vrot.slane %v788_v18, 4  ;;  %v800_v9 = vor.u32 %v798_v13, %v797_v25  ;;  %v811_v11 = vshll.u32 %v650_v7, 16  ;;  %v5880_v13 = vld [vmem:[%s7623_s3 + $0x48] sm:$0xff] }
  0x7e   : > { %1500 = vmatpush.bf16.msrb.mxu3 %v5884_v5  ;;  %v649_v5 = vld [vmem:[#allocation2 + $0x94] sm:$0x8]  ;;  %v819_v18 = vrot.slane %v817_v12, 7  ;;  %v889_v19 = vsel %vm6360_vm2, %v881_v3, %v888_v4  ;;  %v907_v3 = vshrl.u32 %v661_v62, 16  ;;  %v915_v4 = vshll.u32 %v662_v1, 16 }
  0x7f   : > { %v792_v38 = vsel %vm6360_vm2, %v4896_v17, %v791_v30  ;;  %v801_v41 = vsel %vm6360_vm2, %v793_v31, %v800_v9  ;;  %v803_v60 = vshrl.u32 %v649_v5, 16  ;;  %v810_v17 = vrot.slane %v808_v10, 7  ;;  %v5879_v30 = vld [vmem:[%s7623_s3 + $0x40] sm:$0xff] }
  0x80   : > { %v953_v44 = vunpack.c.l.b16 %v792_v38  ;;  %v954_v50 = vunpack.c.l.b16 %v801_v41  ;;  %v962_v32 = vunpack.c.l.b16 %v889_v19  ;;  %v759_v41 = vshrl.u32 %v643_v34, 16 }
  0x81   : > { %1297 = vmatpush.bf16.msrb.mxu0 %v6392_v22  ;;  %v877_v22 = vshll.u32 %v6450_v16, 16  ;;  %v4897_v16 = vrot.slane %v803_v60, 11  ;;  %v813_v24 = vor.u32 %v811_v11, %v810_v17  ;;  %v815_v25 = vrot.slane %v810_v17, 4  ;;  %v6554_v17 = vld [vmem:[#allocation2 + $0x50] sm:$0xff] }
  0x82   : > { %1501 = vmatpush.bf16.msrb.mxu3 %v5883_v14  ;;  %v6484_v23 = vpack.c.b16 %v954_v50, %v953_v44  ;;  %v820_v14 = vshll.u32 %v651_v8, 16  ;;  %v766_v44 = vrot.slane %v764_v35, 7  ;;  %v4901_v8 = vrot.slane %v907_v3, 11 }
  0x83   : > { %v814_v33 = vsel %vm6360_vm2, %v4897_v16, %v813_v24 }
  0x84   : > { %1317 = vmatmul.bf16.vlgmr.msra.gmra.mxu2 %v6484_v23  ;;  %1046 = vmatmul.bf16.gmra.mxu0 %v6473_v45  ;;  %v822_v26 = vor.u32 %v820_v14, %v819_v18  ;;  %v955_v36 = vunpack.c.l.b16 %v814_v33  ;;  %v769_v50 = vor.u32 %v767_v46, %v766_v44  ;;  %v771_v51 = vrot.slane %v766_v44, 4  ;;  %v665_v18 = vld [vmem:[#allocation2 + $0x110] sm:$0xf]  ;;  %v5894_v46 = vld [vmem:[%s7623_s3 + $0x138] sm:$0xff] }
  0x85   : > { %1298 = vmatpush.bf16.msrb.mxu0 %v6410_v42  ;;  %1157 = vmatmul.bf16.gmra.mxu1 %v6412_v43  ;;  %v879_v42 = vor.u32 %v877_v22, %v876_v53  ;;  %v748_v43 = vsel %vm6360_vm2, %v4894_v58, %v747_v59  ;;  %v5843_v58 = vld [vmem:[#allocation2 + $0x8] sm:$0xff]  ;;  %v6539_v59 = vld [vmem:[#allocation2 + $0x20] sm:$0xff]  ;;  %v1209_v19 = vshrl.u32 %v665_v18, 16 }
  0x86   : > { %1502 = vmatpush.bf16.msrb.mxu3 %v5882_v49  ;;  %v949_v27 = vunpack.c.l.b16 %v748_v43  ;;  %v823_v9 = vsel %vm6360_vm2, %v815_v25, %v822_v26  ;;  %v776_v49 = vshll.u32 %v645_v21, 16  ;;  %v1212_v26 = vshll.u32 %v665_v18, 16 }
  0x87   : > { %1192 = vmatmul.bf16.gmra.mxu3 %v6482_v54  ;;  %v956_v37 = vunpack.c.l.b16 %v823_v9  ;;  %v1211_v25 = vrot.slane %v1209_v19, 7  ;;  %v5899_v19 = vld [vmem:[%s7623_s3 + $0x1e0] sm:$0xff] }
  0x88   : > { %v6522_v39 = vpack.c.b16 %v950_v28, %v949_v27 }
  0x89   : > { %1299 = vmatpush.bf16.msrb.mxu0 %v6427_v57  ;;  %v880_v57 = vsel %vm6360_vm2, %v4900_v2, %v879_v42  ;;  %v970_v38 = vpack.c.b16 %v956_v37, %v955_v36  ;;  %v663_v2 = vld [vmem:[#allocation2 + $0xfc] sm:$0xf]  ;;  %v912_v42 = vshrl.u32 %v662_v1, 16  ;;  %v6562_v36 = vld [vmem:[#allocation2 + $0x68] sm:$0xff] }
  0x8a   : > { %1503 = vmatpush.bf16.msrb.mxu3 %v5881_v61  ;;  %v961_v31 = vunpack.c.l.b16 %v880_v57  ;;  %v6545_v61 = vld [vmem:[#allocation2 + $0x38] sm:$0xff]  ;;  %v921_v5 = vshrl.u32 %v663_v2, 16  ;;  %v924_v7 = vshll.u32 %v663_v2, 16  ;;  %v666_v57 = vld [vmem:[#allocation2 + $0x114] sm:$0xf] }
  0x8b   : > { %v914_v60 = vrot.slane %v912_v42, 7  ;;  %v1218_v20 = vshrl.u32 %v666_v57, 16  ;;  %v1221_v28 = vshll.u32 %v666_v57, 16  ;;  %v5902_v1 = vld [vmem:[%s7623_s3 + $0x1f8] sm:$0xff]  ;;  %v5909_v2 = vld [vmem:[%s7623_s3 + $0xb0] sm:$0xff] }
  0x8c   : > { %v6524_v40 = vpack.c.b16 %v962_v32, %v961_v31  ;;  %v923_v10 = vrot.slane %v921_v5, 7  ;;  %v1214_v31 = vor.u32 %v1212_v26, %v1211_v25  ;;  %v1216_v32 = vrot.slane %v1211_v25, 4  ;;  %1798 = vmatpush.bf16.msrb.mxu1 %v5902_v1  ;;  %v5917_v42 = vld [vmem:[%s7623_s3 + $0x170] sm:$0xff]  ;;  %v1878_v25 = vld [vmem:[#allocation2 + $0xc] sm:$0xf]  ;;  %v5898_v26 = vld [vmem:[%s7623_s3 + $0x1d8] sm:$0xff] }
  0x8d   : > { %1300 = vmatpush.bf16.msrb.mxu0 %v6443_v6  ;;  %v773_v6 = vshrl.u32 %v645_v21, 16  ;;  %v917_v11 = vor.u32 %v915_v4, %v914_v60  ;;  %v919_v12 = vrot.slane %v914_v60, 4  ;;  %v664_v21 = vld [vmem:[#allocation2 + $0x10c] sm:$0x8]  ;;  %v1220_v27 = vrot.slane %v1218_v20, 7  ;;  %v5890_v60 = vld [vmem:[%s7623_s3 + $0x118] sm:$0xff] }
  0x8e   : > { %1504 = vmatpush.bf16.msrb.mxu3 %v5880_v13  ;;  %v926_v43 = vor.u32 %v924_v7, %v923_v10  ;;  %v1204_v24 = vshrl.u32 %v664_v21, 16  ;;  %v5901_v7 = vld [vmem:[%s7623_s3 + $0x1f0] sm:$0xff]  ;;  %v5916_v10 = vld [vmem:[%s7623_s3 + $0x168] sm:$0xff]  ;;  %v5906_v20 = vld [vmem:[%s7623_s3 + $0x98] sm:$0xff] }
  0x8f   : > { %v775_v48 = vrot.slane %v773_v6, 7  ;;  %v918_v13 = vsel %vm6360_vm2, %v4901_v8, %v917_v11  ;;  %v1223_v33 = vor.u32 %v1221_v28, %v1220_v27  ;;  %v5908_v8 = vld [vmem:[%s7623_s3 + $0xa8] sm:$0xff]  ;;  %v5889_v57 = vld [vmem:[%s7623_s3 + $0x110] sm:$0xff]  ;;  %v5914_v21 = vld [vmem:[%s7623_s3 + $0x158] sm:$0xff] }
  0x90   : > { %v963_v14 = vunpack.c.l.b16 %v918_v13  ;;  %1799 = vmatpush.bf16.msrb.mxu1 %v5901_v7  ;;  %v5900_v11 = vld [vmem:[%s7623_s3 + $0x1e8] sm:$0xff] }
  0x91   : > { %1301 = vmatpush.bf16.msrb.mxu0 %v6462_v29  ;;  %v4895_v29 = vrot.slane %v759_v41, 11  ;;  %v778_v52 = vor.u32 %v776_v49, %v775_v48  ;;  %v1224_v9 = vsel %vm6360_vm2, %v1216_v32, %v1223_v33  ;;  %v6566_v41 = vld [vmem:[#allocation2 + $0x80] sm:$0xff]  ;;  %v5904_v1 = vld [vmem:[%s7623_s3 + $0x88] sm:$0xff] }
  0x92   : > { %1505 = vmatpush.bf16.msrb.mxu3 %v5879_v30  ;;  %v4982_v30 = vrot.slane %v1204_v24, 11  ;;  %v1243_v35 = vunpack.c.l.b16 %v1224_v9  ;;  %v1877_v24 = vld [vmem:[#allocation2 + $0x8] sm:$0xf]  ;;  %v1880_v32 = vld [vmem:[#allocation2 + $0x20] sm:$0xf] }
  0x93   : > { %v770_v53 = vsel %vm6360_vm2, %v4895_v29, %v769_v50  ;;  %v779_v22 = vsel %vm6360_vm2, %v771_v51, %v778_v52  ;;  %v5893_v29 = vld [vmem:[%s7623_s3 + $0x130] sm:$0xff]  ;;  %v1917_v27 = vshrl.u32 %v1877_v24, 16  ;;  %v1920_v28 = vshll.u32 %v1877_v24, 16  ;;  %v1881_v33 = vld [vmem:[#allocation2 + $0x24] sm:$0xf]  ;;  %v5888_v9 = vld [vmem:[%s7623_s3 + $0x108] sm:$0xff] }
  0x94   : > { %1322 = vmatmul.bf16.gmra.mxu2 %v970_v38  ;;  %1051 = vmatmul.bf16.gmra.mxu0 %v6522_v39  ;;  %v951_v55 = vunpack.c.l.b16 %v770_v53  ;;  %v952_v56 = vunpack.c.l.b16 %v779_v22  ;;  %v6589_v53 = vld [vmem:[#allocation2 + $0x98] sm:$0xff] }
  0x95   : > { %1162 = vmatmul.bf16.gmra.mxu1 %v6473_v45  ;;  %1648 = vmatpush.bf16.msra.mxu0 %v5894_v46 }
  0x96   : > { %v6534_v0 = vpack.c.b16 %v952_v56, %v951_v55  ;;  %v5910_v55 = vld [vmem:[%s7623_s3 + $0xb8] sm:$0xff]  ;;  %1800 = vmatpush.bf16.msrb.mxu1 %v5900_v11  ;;  %v5887_v11 = vld [vmem:[%s7623_s3 + $0x100] sm:$0xff] }
  0x97   : > { %1197 = vmatmul.bf16.gmra.mxu3 %v6524_v40  ;;  %2261 = vmatpush.bf16.msrb.mxu2 %v5910_v55  ;;  %v5918_v56 = vld [vmem:[%s7623_s3 + $0x178] sm:$0xff]  ;;  %v1950_v55 = vshll.u32 %v1881_v33, 16 }
  0x98   : > { %2433 = vmatpush.bf16.msra.mxu3 %v5918_v56 }
  0x99   : > { %1649 = vmatpush.bf16.msra.mxu0 %v5893_v29 }
  0x9a   : > { %1801 = vmatpush.bf16.msrb.mxu1 %v5899_v19  ;;  %v5896_v19 = vld [vmem:[%s7623_s3 + $0x1c8] sm:$0xff] }
  0x9b   : > { %2262 = vmatpush.bf16.msrb.mxu2 %v5909_v2 }
  0x9c   : > { %2434 = vmatpush.bf16.msra.mxu3 %v5917_v42 }
  0x9e   : > { %1802 = vmatpush.bf16.msrb.mxu1 %v5898_v26 }
  0x9f   : > { %2263 = vmatpush.bf16.msrb.mxu2 %v5908_v8  ;;  %v1954_v8 = vshrl.u32 %v1881_v33, 16 }
  0xa0   : > { %2435 = vmatpush.bf16.msra.mxu3 %v5916_v10  ;;  %v5912_v10 = vld [vmem:[%s7623_s3 + $0x148] sm:$0xff] }
  0xa1   : > { %v1956_v24 = vrot.slane %v1954_v8, 4 }
  0xa4   : > { %1327 = vmatmul.bf16.gmra.mxu2 %v6415_v47  ;;  %1056 = vmatmul.bf16.gmra.mxu0 %v6534_v0 }
  0xa5   : > { %1167 = vmatmul.bf16.gmra.mxu1 %v6522_v39 }
  0xa7   : > { %1506 = vmatmul.bf16.vlgmr.msrb.gmra.mxu3 %v5843_v58  ;;  %v5891_v58 = vld [vmem:[%s7623_s3 + $0x120] sm:$0xff] }
  0xb4   : > { %1332 = vmatmul.bf16.gmra.mxu2 %v6482_v54  ;;  %1061 = vmatmul.bf16.gmra.mxu0 %v6484_v23 }
  0xb5   : > { %1172 = vmatmul.bf16.gmra.mxu1 %v6534_v0 }
  0xb7   : > { %1511 = vmatmul.bf16.gmra.mxu3 %v6539_v59 }
  0xc4   : > { %1337 = vmatmul.bf16.gmra.mxu2 %v6524_v40  ;;  %1066 = vmatmul.bf16.gmra.mxu0 %v970_v38 }
  0xc5   : > { %1177 = vmatmul.bf16.gmra.mxu1 %v6484_v23  ;;  %v927_v23 = vsel %vm6360_vm2, %v919_v12, %v926_v43  ;;  %v5907_v12 = vld [vmem:[%s7623_s3 + $0xa0] sm:$0xff] }
  0xc6   : > { %v964_v15 = vunpack.c.l.b16 %v927_v23  ;;  %2264 = vmatpush.bf16.msrb.mxu2 %v5907_v12  ;;  %v5915_v23 = vld [vmem:[%s7623_s3 + $0x160] sm:$0xff] }
  0xc7   : > { %1516 = vmatmul.bf16.gmra.mxu3 %v6545_v61 }
  0xc8   : > { %v974_v16 = vpack.c.b16 %v964_v15, %v963_v14  ;;  %2436 = vmatpush.bf16.msra.mxu3 %v5915_v23 }
  0xca   : > { %2265 = vmatpush.bf16.msrb.mxu2 %v5906_v20  ;;  %v5903_v20 = vld [vmem:[%s7623_s3 + $0x80] sm:$0xff] }
  0xcc   : > { %2437 = vmatpush.bf16.msra.mxu3 %v5914_v21  ;;  %v1952_v21 = vrot.slane %v1950_v55, 5  ;;  %v5926_v55 = vld [vmem:[%s7623_s3 + $0x238] sm:$0xff] }
  0xd4   : > { %1342 = vmatmul.bf16.gmra.mxu2 %v974_v16  ;;  %1071 = vmatmul.bf16.gmra.mxu0 %v6415_v47  ;;  %v1215_v47 = vsel %vm6360_vm2, %v4982_v30, %v1214_v31  ;;  %v1926_v30 = vshll.u32 %v1878_v25, 16  ;;  %v1930_v31 = vshrl.u32 %v1878_v25, 16 }
  0xd5   : > { %1182 = vmatmul.bf16.gmra.mxu1 %v970_v38  ;;  %v1242_v34 = vunpack.c.l.b16 %v1215_v47 }
  0xd7   : > { %1521 = vmatmul.bf16.gmra.mxu3 %v6554_v17  ;;  %v1244_v6 = vpack.c.b16 %v1243_v35, %v1242_v34  ;;  %v5913_v34 = vld [vmem:[%s7623_s3 + $0x150] sm:$0xff]  ;;  %v1919_v35 = vrot.slane %v1917_v27, 4 }
  0xd8   : > { %2438 = vmatpush.bf16.msra.mxu3 %v5913_v34 }
  0xdc   : > { %2439 = vmatpush.bf16.msra.mxu3 %v5912_v10 }
  0xe4   : > { %1347 = vmatmul.bf16.gmra.mxu2 %v1244_v6  ;;  %1076 = vmatmul.bf16.gmra.mxu0 %v6482_v54  ;;  %v1922_v6 = vrot.slane %v1920_v28, 5  ;;  %v5911_v28 = vld [vmem:[%s7623_s3 + $0x140] sm:$0xff] }
  0xe5   : > { %2440 = vmatpush.bf16.msra.mxu3 %v5911_v28 }
  0xe6   : > { %v1923_v2 = vor.u32 %v1922_v6, %v1919_v35 }
  0xe7   : > { %1526 = vmatmul.bf16.gmra.mxu3 %v6562_v36 }
  0xe8   : > { %v1924_v23 = vrot.slane %v1923_v2, 4 }
  0xf1   : > { %v1042_v37 = vpop.f32.mrf.mxu0 }
  0xf2   : > { %v1153_v38 = vpop.f32.mrf.mxu1 }
  0xf3   : > { %v6568_v44 = vadd.f32 %v1153_v38, %v1042_v37  ;;  %v1928_v37 = vrot.slane %v1926_v30, 5  ;;  %v1932_v38 = vrot.slane %v1930_v31, 4 }
  0xf4   : > { %1081 = vmatmul.bf16.gmra.mxu0 %v6524_v40  ;;  %v5892_v40 = vld [vmem:[%s7623_s3 + $0x128] sm:$0xff] }
  0xf5   : > { %1650 = vmatpush.bf16.msra.mxu0 %v5892_v40  ;;  %v1879_v40 = vld [vmem:[#allocation2 + $0x10] sm:$0x1]  ;;  %v1933_v42 = vor.u32 %v1932_v38, %v1928_v37  ;;  %v1929_v25 = vsel %vm6695_vm5, %v1924_v23, %v1928_v37  ;;  %v5895_v37 = vld [vmem:[%s7623_s3 + $0x1c0] sm:$0xff]  ;;  %v1957_v38 = vor.u32 %v1956_v24, %v1952_v21 }
  0xf6   : > { %v1936_v7 = vshll.u32 %v1879_v40, 16  ;;  %v2173_v30 = vunpack.c.l.b16 %v1929_v25 }
  0xf7   : > { %1531 = vmatmul.bf16.gmra.mxu3 %v6566_v41 }
  0xf9   : > { %v6577_v54 = vpop.f32.mrf.mxu0  ;;  %1651 = vmatpush.bf16.msra.mxu0 %v5891_v58  ;;  %v5897_v58 = vld [vmem:[%s7623_s3 + $0x1d0] sm:$0xff] }
  0xfa   : > { %v6575_v48 = vpop.f32.mrf.mxu3  ;;  %v6579_v49 = vpop.f32.mrf.mxu1  ;;  %1803 = vmatpush.bf16.msrb.mxu1 %v5897_v58 }
  0xfd   : > { %1652 = vmatpush.bf16.msra.mxu0 %v5890_v60 }
  0xfe   : > { %1804 = vmatpush.bf16.msrb.mxu1 %v5896_v19 }
 0x101   : > { %v1047_v51 = vpop.f32.mrf.mxu0  ;;  %1653 = vmatpush.bf16.msra.mxu0 %v5889_v57 }
 0x102   : > { %v6584_v50 = vpop.f32.mrf.mxu3  ;;  %v1158_v52 = vpop.f32.mrf.mxu1  ;;  %1805 = vmatpush.bf16.msrb.mxu1 %v5895_v37 }
 0x103   : > { %v6591_v22 = vadd.f32 %v1158_v52, %v1047_v51  ;;  %v1941_v51 = vshrl.u32 %v1880_v32, 16  ;;  %v1944_v52 = vshll.u32 %v1880_v32, 16 }
 0x104   : > { %1086 = vmatmul.bf16.gmra.mxu0 %v974_v16  ;;  %v6645_v16 = vld [vmem:[#allocation2 + $0xb0] sm:$0xff] }
 0x105   : > { %1654 = vmatpush.bf16.msra.mxu0 %v5888_v9  ;;  %v1943_v60 = vrot.slane %v1941_v51, 4  ;;  %v1946_v57 = vrot.slane %v1944_v52, 5  ;;  %v6714_v9 = vld [vmem:[#allocation2 + $0xc8] sm:$0xff]  ;;  %1806 = vmatmul.bf16.vlgmr.msrb.gmra.mxu1 %v6545_v61 }
 0x107   : > { %1536 = vmatmul.bf16.gmra.mxu3 %v6589_v53  ;;  %v6603_v62 = vpop.f32.mrf.mxu2  ;;  %v1947_v34 = vor.u32 %v1946_v57, %v1943_v60 }
 0x109   : > { %v6616_v4 = vpop.f32.mrf.mxu0  ;;  %1655 = vmatpush.bf16.msra.mxu0 %v5887_v11  ;;  %v1948_v58 = vrot.slane %v1947_v34, 4 }
 0x10a   : > { %v6611_v3 = vpop.f32.mrf.mxu3  ;;  %v6618_v5 = vpop.f32.mrf.mxu1 }
 0x10b   : > { %v1953_v60 = vsel %vm6695_vm5, %v1948_v58, %v1952_v21  ;;  %v6742_v21 = vld [vmem:[#allocation2 + $0xe0] sm:$0xff] }
 0x10c   : > { %v2175_v19 = vunpack.c.l.b16 %v1953_v60  ;;  %v1887_v60 = vld [vmem:[#allocation2 + $0x54] sm:$0xf] }
 0x10f   : > { %v6640_v13 = vpop.f32.mrf.mxu2 }
 0x111   : > { %v1052_v14 = vpop.f32.mrf.mxu0 }
 0x112   : > { %v6638_v43 = vpop.f32.mrf.mxu3  ;;  %v1163_v15 = vpop.f32.mrf.mxu1 }
 0x113   : > { %v6647_v18 = vadd.f32 %v1163_v15, %v1052_v14  ;;  %v1934_v14 = vrot.slane %v1933_v42, 4  ;;  %v1938_v15 = vrot.slane %v1936_v7, 5  ;;  %v1883_v42 = vld [vmem:[#allocation2 + $0x38] sm:$0xf] }
 0x114   : > { %1302 = vmatmul.bf16.vlgmr.msrb.gmra.mxu0 %v6473_v45  ;;  %v5905_v45 = vld [vmem:[%s7623_s3 + $0x90] sm:$0xff]  ;;  %v1965_v11 = vshrl.u32 %v1883_v42, 16  ;;  %v1968_v23 = vshll.u32 %v1883_v42, 16 }
 0x115   : > { %2266 = vmatpush.bf16.msrb.mxu2 %v5905_v45  ;;  %v1939_v26 = vsel %vm6695_vm5, %v1934_v14, %v1938_v15  ;;  %v1882_v45 = vld [vmem:[#allocation2 + $0x28] sm:$0x1]  ;;  %2605 = vmatpush.bf16.msrb.mxu0 %v5926_v55 }
 0x116   : > { %v2174_v31 = vunpack.c.l.b16 %v1939_v26  ;;  %v1960_v40 = vshll.u32 %v1882_v45, 16  ;;  %v1967_v24 = vrot.slane %v1965_v11, 4  ;;  %v1970_v25 = vrot.slane %v1968_v23, 5  ;;  %1811 = vmatmul.bf16.gmra.mxu1 %v6554_v17 }
 0x117   : > { %1541 = vmatmul.bf16.gmra.mxu3 %v6645_v16  ;;  %v6681_v56 = vpop.f32.mrf.mxu2 }
 0x118   : > { %v2193_v6 = vpack.c.b16 %v2174_v31, %v2173_v30  ;;  %v1962_v2 = vrot.slane %v1960_v40, 5  ;;  %v1885_v30 = vld [vmem:[#allocation2 + $0x40] sm:$0x1] }
 0x119   : > { %v6677_v46 = vpop.f32.mrf.mxu0  ;;  %2267 = vmatpush.bf16.msrb.mxu2 %v5904_v1  ;;  %v1958_v1 = vrot.slane %v1957_v38, 4  ;;  %v1984_v37 = vshll.u32 %v1885_v30, 16 }
 0x11a   : > { %v6669_v47 = vpop.f32.mrf.mxu3  ;;  %v6679_v29 = vpop.f32.mrf.mxu1 }
 0x11b   : > { %v1963_v10 = vsel %vm6695_vm5, %v1958_v1, %v1962_v2  ;;  %v1986_v58 = vrot.slane %v1984_v37, 5 }
 0x11d   : > { %2268 = vmatpush.bf16.msrb.mxu2 %v5903_v20  ;;  %v2176_v20 = vunpack.c.l.b16 %v1963_v10 }
 0x11f   : > { %v6723_v52 = vpop.f32.mrf.mxu2  ;;  %v2194_v34 = vpack.c.b16 %v2176_v20, %v2175_v19  ;;  %v2002_v19 = vshrl.u32 %v1887_v60, 16 }
 0x120   : > { %2269 = vmatmul.bf16.vlgmr.msrb.gmra.mxu2 %v2193_v6 }
 0x121   : > { %v1057_v32 = vpop.f32.mrf.mxu0 }
 0x122   : > { %v6709_v27 = vpop.f32.mrf.mxu3  ;;  %v1168_v33 = vpop.f32.mrf.mxu1 }
 0x123   : > { %v1169_v35 = vadd.f32 %v1168_v33, %v1057_v32 }
 0x124   : > { %1307 = vmatmul.bf16.gmra.mxu0 %v6522_v39  ;;  %v1884_v39 = vld [vmem:[#allocation2 + $0x3c] sm:$0xf] }
 0x125   : > { %v6720_v51 = vadd.f32 %v6603_v62, %v1169_v35  ;;  %v1974_v14 = vshll.u32 %v1884_v39, 16  ;;  %v1978_v15 = vshrl.u32 %v1884_v39, 16  ;;  %v1971_v35 = vor.u32 %v1970_v25, %v1967_v24 }
 0x126   : > { %1816 = vmatmul.bf16.gmra.mxu1 %v6562_v36 }
 0x127   : > { %1546 = vmatmul.bf16.gmra.mxu3 %v6714_v9  ;;  %v1328_v57 = vpop.f32.mrf.mxu2  ;;  %v1976_v26 = vrot.slane %v1974_v14, 5  ;;  %v1980_v45 = vrot.slane %v1978_v15, 4  ;;  %v1972_v40 = vrot.slane %v1971_v35, 4  ;;  %v1998_v15 = vshll.u32 %v1887_v60, 16  ;;  %v1889_v60 = vld [vmem:[#allocation2 + $0x68] sm:$0xf] }
 0x129   : > { %v6732_v7 = vpop.f32.mrf.mxu0  ;;  %v1981_v6 = vor.u32 %v1980_v45, %v1976_v26  ;;  %v1977_v10 = vsel %vm6695_vm5, %v1972_v40, %v1976_v26 }
 0x12a   : > { %v6730_v62 = vpop.f32.mrf.mxu3  ;;  %v6734_v8 = vpop.f32.mrf.mxu1  ;;  %v2177_v20 = vunpack.c.l.b16 %v1977_v10  ;;  %v1890_v10 = vld [vmem:[#allocation2 + $0x6c] sm:$0xf] }
 0x12b   : > { %v1982_v55 = vrot.slane %v1981_v6, 4  ;;  %v1888_v6 = vld [vmem:[#allocation2 + $0x58] sm:$0x1] }
 0x12d   : > { %v1987_v11 = vsel %vm6695_vm5, %v1982_v55, %v1986_v58 }
 0x12e   : > { %v2178_v24 = vunpack.c.l.b16 %v1987_v11 }
 0x12f   : > { %v6752_v2 = vpop.f32.mrf.mxu2 }
 0x130   : > { %2274 = vmatmul.bf16.gmra.mxu2 %v2194_v34  ;;  %v6767_v40 = vpack.c.b16 %v2178_v24, %v2177_v20  ;;  %v2013_v20 = vshrl.u32 %v1889_v60, 16 }
 0x131   : > { %v1062_v31 = vpop.f32.mrf.mxu0 }
 0x132   : > { %v6740_v28 = vpop.f32.mrf.mxu3  ;;  %v1173_v32 = vpop.f32.mrf.mxu1 }
 0x133   : > { %v1174_v33 = vadd.f32 %v1173_v32, %v1062_v31  ;;  %v2000_v31 = vrot.slane %v1998_v15, 5  ;;  %v2004_v32 = vrot.slane %v2002_v19, 4 }
 0x134   : > { %1312 = vmatmul.bf16.gmra.mxu0 %v6534_v0  ;;  %v5925_v0 = vld [vmem:[%s7623_s3 + $0x230] sm:$0xff] }
 0x135   : > { %v6745_v38 = vadd.f32 %v6681_v56, %v1174_v33  ;;  %v1886_v56 = vld [vmem:[#allocation2 + $0x50] sm:$0xf]  ;;  %2606 = vmatpush.bf16.msrb.mxu0 %v5925_v0  ;;  %v2005_v0 = vor.u32 %v2004_v32, %v2000_v31 }
 0x136   : > { %v1989_v23 = vshrl.u32 %v1886_v56, 16  ;;  %v1992_v14 = vshll.u32 %v1886_v56, 16  ;;  %v2008_v56 = vshll.u32 %v1888_v6, 16  ;;  %v2015_v6 = vrot.slane %v2013_v20, 4  ;;  %1821 = vmatmul.bf16.gmra.mxu1 %v6566_v41 }
 0x137   : > { %1551 = vmatmul.bf16.gmra.mxu3 %v6742_v21  ;;  %v1333_v37 = vpop.f32.mrf.mxu2 }
 0x138   : > { %v1991_v45 = vrot.slane %v1989_v23, 4  ;;  %v1994_v30 = vrot.slane %v1992_v14, 5  ;;  %v2006_v14 = vrot.slane %v2005_v0, 4  ;;  %v2010_v15 = vrot.slane %v2008_v56, 5 }
 0x139   : > { %v6754_v42 = vpop.f32.mrf.mxu0 }
 0x13a   : > { %v6750_v1 = vpop.f32.mrf.mxu3  ;;  %v6756_v39 = vpop.f32.mrf.mxu1  ;;  %v1995_v58 = vor.u32 %v1994_v30, %v1991_v45  ;;  %v2022_v45 = vshll.u32 %v1890_v10, 16  ;;  %v2026_v30 = vshrl.u32 %v1890_v10, 16  ;;  %v2011_v32 = vsel %vm6695_vm5, %v2006_v14, %v2010_v15  ;;  %v1891_v10 = vld [vmem:[#allocation2 + $0x70] sm:$0x1] }
 0x13b   : > { %v2032_v63 = vshll.u32 %v1891_v10, 16 }
 0x13c   : > { %v1996_v23 = vrot.slane %v1995_v58, 4  ;;  %v2024_v58 = vrot.slane %v2022_v45, 5  ;;  %v2028_v0 = vrot.slane %v2026_v30, 4 }
 0x13d   : > { %v2034_v45 = vrot.slane %v2032_v63, 5 }
 0x13e   : > { %v2029_v15 = vor.u32 %v2028_v0, %v2024_v58 }
 0x140   : > { %2279 = vmatmul.bf16.gmra.mxu2 %v6767_v40 }
 0x141   : > { %v1067_v33 = vpop.f32.mrf.mxu0 }
 0x142   : > { %v6765_v25 = vpop.f32.mrf.mxu3  ;;  %v1178_v35 = vpop.f32.mrf.mxu1 }
 0x143   : > { %7635 = vst [vmem:[#allocation5_spill] sm:$0xff] %v6765_v25  ;;  %v1179_v26 = vadd.f32 %v1178_v35, %v1067_v33  ;;  %v5924_v33 = vld [vmem:[%s7623_s3 + $0x228] sm:$0xff]  ;;  %v6785_v35 = vpop.f32.mrf.mxu2 }
 0x144   : > { %1656 = vmatmul.bf16.vlgmr.msra.gmra.mxu0 %v6539_v59  ;;  %v2016_v59 = vshll.u32 %v1889_v60, 16  ;;  %v2180_v60 = vunpack.c.l.b16 %v2011_v32  ;;  %v1892_v32 = vld [vmem:[#allocation2 + $0x80] sm:$0xf] }
 0x145   : > { %v6769_v55 = vadd.f32 %v1328_v57, %v1179_v26  ;;  %2607 = vmatpush.bf16.msrb.mxu0 %v5924_v33  ;;  %v1893_v33 = vld [vmem:[#allocation2 + $0x84] sm:$0xf]  ;;  %v2037_v0 = vshrl.u32 %v1892_v32, 16 }
 0x146   : > { %v2018_v26 = vrot.slane %v2016_v59, 5  ;;  %v2030_v59 = vrot.slane %v2029_v15, 4  ;;  %v2050_v10 = vshrl.u32 %v1893_v33, 16  ;;  %1826 = vmatmul.bf16.gmra.mxu1 %v6589_v53 }
 0x147   : > { %2441 = vmatmul.bf16.vlgmr.msra.gmra.mxu3 %v2194_v34  ;;  %v2001_v34 = vsel %vm6695_vm5, %v1996_v23, %v2000_v31 }
 0x148   : > { %v2179_v56 = vunpack.c.l.b16 %v2001_v34  ;;  %v2019_v14 = vor.u32 %v2018_v26, %v2015_v6  ;;  %v2035_v63 = vsel %vm6695_vm5, %v2030_v59, %v2034_v45  ;;  %v5923_v59 = vld [vmem:[%s7623_s3 + $0x220] sm:$0xff] }
 0x149   : > { %v1069_v19 = vpop.f32.mrf.mxu0  ;;  %2608 = vmatpush.bf16.msrb.mxu0 %v5923_v59 }
 0x14a   : > { %v6774_v11 = vpop.f32.mrf.mxu3  ;;  %v1180_v57 = vpop.f32.mrf.mxu1  ;;  %v2020_v20 = vrot.slane %v2019_v14, 4 }
 0x14b   : > { %7636 = vst [vmem:[#allocation6_spill] sm:$0xff] %v6774_v11  ;;  %v6776_v24 = vadd.f32 %v1180_v57, %v1069_v19  ;;  %v6789_v11 = vpack.c.b16 %v2180_v60, %v2179_v56  ;;  %v1338_v30 = vpop.f32.mrf.mxu2  ;;  %v2040_v56 = vshll.u32 %v1892_v32, 16  ;;  %v2046_v60 = vshll.u32 %v1893_v33, 16 }
 0x14c   : > { %v2025_v26 = vsel %vm6695_vm5, %v2020_v20, %v2024_v58 }
 0x14d   : > { %v2042_v14 = vrot.slane %v2040_v56, 5  ;;  %v2048_v15 = vrot.slane %v2046_v60, 5 }
 0x150   : > { %2284 = vmatmul.bf16.gmra.mxu2 %v6789_v11 }
 0x151   : > { %v1072_v31 = vpop.f32.mrf.mxu0 }
 0x152   : > { %v6787_v19 = vpop.f32.mrf.mxu3  ;;  %v1183_v23 = vpop.f32.mrf.mxu1 }
 0x153   : > { %v1184_v57 = vadd.f32 %v1183_v23, %v1072_v31  ;;  %v2181_v23 = vunpack.c.l.b16 %v2025_v26  ;;  %v6811_v20 = vpop.f32.mrf.mxu2 }
 0x154   : > { %1661 = vmatmul.bf16.gmra.mxu0 %v6545_v61  ;;  %v1171_v61 = vadd.f32 %v6734_v8, %v6732_v7  ;;  %v1894_v7 = vld [vmem:[#allocation2 + $0x88] sm:$0x1] }
 0x155   : > { %v6791_v25 = vadd.f32 %v1333_v37, %v1184_v57  ;;  %v2039_v57 = vrot.slane %v2037_v0, 4 }
 0x156   : > { %v1360_v31 = vadd.f32 %v6640_v13, %v1171_v61  ;;  %v2056_v61 = vshll.u32 %v1894_v7, 16  ;;  %1831 = vmatmul.bf16.gmra.mxu1 %v6645_v16 }
 0x157   : > { %2446 = vmatmul.bf16.gmra.mxu3 %v6767_v40  ;;  %v2043_v32 = vor.u32 %v2042_v14, %v2039_v57 }
 0x158   : > { %v2058_v0 = vrot.slane %v2056_v61, 5 }
 0x159   : > { %v6800_v37 = vpop.f32.mrf.mxu0 }
 0x15a   : > { %v1522_v34 = vpop.f32.mrf.mxu3 }
 0x15b   : > { %v6798_v6 = vadd.f32 %v1522_v34, %v6720_v51  ;;  %v2182_v51 = vunpack.c.l.b16 %v2035_v63  ;;  %v2052_v34 = vrot.slane %v2050_v10, 4  ;;  %v1895_v10 = vld [vmem:[#allocation2 + $0x98] sm:$0xf] }
 0x15c   : > { %v2061_v57 = vshrl.u32 %v1895_v10, 16  ;;  %v2064_v14 = vshll.u32 %v1895_v10, 16 }
 0x15d   : > { %7637 = vst [vmem:[#allocation7_spill] sm:$0xff] %v6798_v6  ;;  %v6817_v13 = vpack.c.b16 %v2182_v51, %v2181_v23  ;;  %v2053_v33 = vor.u32 %v2052_v34, %v2048_v15 }
 0x15f   : > { %v2054_v63 = vrot.slane %v2053_v33, 4  ;;  %v2066_v33 = vrot.slane %v2064_v14, 5 }
 0x160   : > { %2289 = vmatmul.bf16.gmra.mxu2 %v6817_v13 }
 0x161   : > { %v1077_v58 = vpop.f32.mrf.mxu0  ;;  %v2059_v51 = vsel %vm6695_vm5, %v2054_v63, %v2058_v0 }
 0x162   : > { %v1524_v6 = vpop.f32.mrf.mxu3  ;;  %v1189_v45 = vadd.f32 %v6575_v48, %v1077_v58  ;;  %v2184_v59 = vunpack.c.l.b16 %v2059_v51 }
 0x163   : > { %v6809_v8 = vadd.f32 %v1524_v6, %v1360_v31  ;;  %v2044_v6 = vrot.slane %v2043_v32, 4  ;;  %v1343_v31 = vpop.f32.mrf.mxu2  ;;  %v2063_v32 = vrot.slane %v2061_v57, 4 }
 0x164   : > { %v6819_v26 = vadd.f32 %v1338_v30, %v1189_v45  ;;  %1666 = vmatmul.bf16.gmra.mxu0 %v6554_v17  ;;  %v1896_v30 = vld [vmem:[#allocation2 + $0x9c] sm:$0xf]  ;;  %v1176_v17 = vadd.f32 %v6756_v39, %v6754_v42 }
 0x165   : > { %v2049_v23 = vsel %vm6695_vm5, %v2044_v6, %v2048_v15  ;;  %v2070_v34 = vshll.u32 %v1896_v30, 16  ;;  %v2074_v7 = vshrl.u32 %v1896_v30, 16  ;;  %v1897_v15 = vld [vmem:[#allocation2 + $0xa0] sm:$0x1] }
 0x166   : > { %v2183_v58 = vunpack.c.l.b16 %v2049_v23  ;;  %v2080_v30 = vshll.u32 %v1897_v15, 16  ;;  %v5922_v23 = vld [vmem:[%s7623_s3 + $0x218] sm:$0xff]  ;;  %1836 = vmatmul.bf16.gmra.mxu1 %v6714_v9 }
 0x167   : > { %2451 = vmatmul.bf16.gmra.mxu3 %v6789_v11  ;;  %v2072_v61 = vrot.slane %v2070_v34, 5  ;;  %v2076_v42 = vrot.slane %v2074_v7, 4  ;;  %2609 = vmatpush.bf16.msrb.mxu0 %v5922_v23 }
 0x168   : > { %v6840_v63 = vpack.c.b16 %v2184_v59, %v2183_v58  ;;  %v2082_v14 = vrot.slane %v2080_v30, 5 }
 0x169   : > { %v6828_v60 = vpop.f32.mrf.mxu0  ;;  %v2077_v10 = vor.u32 %v2076_v42, %v2072_v61 }
 0x16a   : > { %v1527_v48 = vpop.f32.mrf.mxu3 }
 0x16b   : > { %v6826_v56 = vadd.f32 %v1527_v48, %v6745_v38  ;;  %v1362_v38 = vadd.f32 %v6723_v52, %v1176_v17  ;;  %v2067_v52 = vor.u32 %v2066_v33, %v2063_v32  ;;  %v1345_v17 = vpop.f32.mrf.mxu2 }
 0x16d   : > { %v2068_v57 = vrot.slane %v2067_v52, 4 }
 0x16f   : > { %v2073_v42 = vsel %vm6695_vm5, %v2068_v57, %v2072_v61 }
 0x170   : > { %2294 = vmatmul.bf16.gmra.mxu2 %v6840_v63 }
 0x171   : > { %v1082_v48 = vpop.f32.mrf.mxu0 }
 0x172   : > { %v1529_v45 = vpop.f32.mrf.mxu3  ;;  %v1194_v6 = vadd.f32 %v6611_v3, %v1082_v48  ;;  %v1898_v3 = vld [vmem:[#allocation2 + $0xb0] sm:$0xf] }
 0x173   : > { %v6837_v39 = vadd.f32 %v1529_v45, %v1362_v38  ;;  %v2085_v38 = vshrl.u32 %v1898_v3, 16  ;;  %v2088_v59 = vshll.u32 %v1898_v3, 16  ;;  %v1348_v30 = vpop.f32.mrf.mxu2  ;;  %v1900_v3 = vld [vmem:[#allocation2 + $0xb8] sm:$0x1] }
 0x174   : > { %v6842_v0 = vadd.f32 %v1343_v31, %v1194_v6  ;;  %1671 = vmatmul.bf16.gmra.mxu0 %v6562_v36  ;;  %v1899_v31 = vld [vmem:[#allocation2 + $0xb4] sm:$0xf]  ;;  %v2078_v36 = vrot.slane %v2077_v10, 4  ;;  %v1364_v10 = vadd.f32 %v6752_v2, %v6776_v24 }
 0x175   : > { %v2094_v45 = vshll.u32 %v1899_v31, 16  ;;  %v2098_v32 = vshrl.u32 %v1899_v31, 16  ;;  %v2087_v15 = vrot.slane %v2085_v38, 4  ;;  %v2090_v6 = vrot.slane %v2088_v59, 5  ;;  %v1185_v59 = vpop.f32.mrf.mxu1 }
 0x176   : > { %v2083_v48 = vsel %vm6695_vm5, %v2078_v36, %v2082_v14  ;;  %v2104_v36 = vshll.u32 %v1900_v3, 16  ;;  %1841 = vmatmul.bf16.gmra.mxu1 %v6742_v21 }
 0x177   : > { %2456 = vmatmul.bf16.gmra.mxu3 %v6817_v13  ;;  %v2096_v52 = vrot.slane %v2094_v45, 5  ;;  %v2186_v23 = vunpack.c.l.b16 %v2083_v48  ;;  %v2091_v57 = vor.u32 %v2090_v6, %v2087_v15  ;;  %v1901_v45 = vld [vmem:[#allocation2 + $0xc8] sm:$0xf]  ;;  %v1186_v6 = vadd.f32 %v1185_v59, %v6800_v37 }
 0x179   : > { %v1084_v7 = vpop.f32.mrf.mxu0  ;;  %v2092_v2 = vrot.slane %v2091_v57, 4 }
 0x17a   : > { %v1532_v51 = vpop.f32.mrf.mxu3  ;;  %v1196_v58 = vadd.f32 %v6638_v43, %v1084_v7  ;;  %v2185_v43 = vunpack.c.l.b16 %v2073_v42 }
 0x17b   : > { %v6852_v34 = vadd.f32 %v1532_v51, %v6769_v55  ;;  %v2100_v55 = vrot.slane %v2098_v32, 4  ;;  %v1902_v32 = vld [vmem:[#allocation2 + $0xcc] sm:$0xf]  ;;  %v1350_v15 = vpop.f32.mrf.mxu2 }
 0x17c   : > { %v6855_v33 = vadd.f32 %v1345_v17, %v1196_v58  ;;  %v6866_v14 = vpack.c.b16 %v2186_v23, %v2185_v43  ;;  %v2106_v58 = vrot.slane %v2104_v36, 5  ;;  %v2109_v43 = vshrl.u32 %v1901_v45, 16 }
 0x17d   : > { %v2101_v7 = vor.u32 %v2100_v55, %v2096_v52  ;;  %v2118_v23 = vshll.u32 %v1902_v32, 16  ;;  %v2122_v3 = vshrl.u32 %v1902_v32, 16 }
 0x17e   : > { %v2111_v37 = vrot.slane %v2109_v43, 4  ;;  %v1905_v43 = vld [vmem:[#allocation2 + $0xe4] sm:$0xf] }
 0x17f   : > { %v2102_v24 = vrot.slane %v2101_v7, 4  ;;  %v2124_v36 = vrot.slane %v2122_v3, 4 }
 0x180   : > { %2299 = vmatmul.bf16.gmra.mxu2 %v6866_v14 }
 0x181   : > { %v1087_v51 = vpop.f32.mrf.mxu0 }
 0x182   : > { %v1534_v31 = vpop.f32.mrf.mxu3  ;;  %v1199_v61 = vadd.f32 %v6669_v47, %v1087_v51  ;;  %v1366_v51 = vadd.f32 %v6785_v35, %v1186_v6 }
 0x183   : > { %v6863_v17 = vadd.f32 %v1534_v31, %v1364_v10  ;;  %v2097_v10 = vsel %vm6695_vm5, %v2092_v2, %v2096_v52  ;;  %v1903_v52 = vld [vmem:[#allocation2 + $0xd0] sm:$0x1] }
 0x184   : > { %v6868_v38 = vadd.f32 %v1348_v30, %v1199_v61  ;;  %1676 = vmatmul.bf16.gmra.mxu0 %v6566_v41  ;;  %v5921_v41 = vld [vmem:[%s7623_s3 + $0x210] sm:$0xff]  ;;  %v2107_v30 = vsel %vm6695_vm5, %v2102_v24, %v2106_v58  ;;  %v2187_v61 = vunpack.c.l.b16 %v2097_v10 }
 0x185   : > { %2610 = vmatpush.bf16.msrb.mxu0 %v5921_v41  ;;  %v2188_v57 = vunpack.c.l.b16 %v2107_v30  ;;  %v1904_v30 = vld [vmem:[#allocation2 + $0xe0] sm:$0xf] }
 0x187   : > { %2461 = vmatmul.bf16.gmra.mxu3 %v6840_v63 }
 0x189   : > { %v1089_v48 = vpop.f32.mrf.mxu0 }
 0x18a   : > { %v1537_v47 = vpop.f32.mrf.mxu3  ;;  %v1201_v55 = vadd.f32 %v6709_v27, %v1089_v48  ;;  %v2120_v27 = vrot.slane %v2118_v23, 5  ;;  %v2128_v48 = vshll.u32 %v1903_v52, 16  ;;  %v1191_v23 = vadd.f32 %v6584_v50, %v6828_v60 }
 0x18b   : > { %v6875_v42 = vadd.f32 %v1537_v47, %v6791_v25  ;;  %v2112_v25 = vshll.u32 %v1901_v45, 16  ;;  %v6894_v47 = vpack.c.b16 %v2188_v57, %v2187_v61  ;;  %v2146_v61 = vshrl.u32 %v1905_v43, 16 }
 0x18c   : > { %v6886_v31 = vadd.f32 %v1350_v15, %v1201_v55  ;;  %v2125_v32 = vor.u32 %v2124_v36, %v2120_v27  ;;  %v2130_v41 = vrot.slane %v2128_v48, 5  ;;  %v1368_v57 = vadd.f32 %v6811_v20, %v1191_v23 }
 0x18d   : > { %v2114_v7 = vrot.slane %v2112_v25, 5  ;;  %v5920_v25 = vld [vmem:[%s7623_s3 + $0x208] sm:$0xff]  ;;  %v2148_v50 = vrot.slane %v2146_v61, 4 }
 0x18e   : > { %v2126_v15 = vrot.slane %v2125_v32, 4  ;;  %2611 = vmatpush.bf16.msrb.mxu0 %v5920_v25 }
 0x18f   : > { %v2115_v45 = vor.u32 %v2114_v7, %v2111_v37 }
 0x190   : > { %2304 = vmatmul.bf16.gmra.mxu2 %v6894_v47 }
 0x191   : > { %v1303_v24 = vpop.f32.mrf.mxu0  ;;  %v2116_v35 = vrot.slane %v2115_v45, 4  ;;  %v1906_v45 = vld [vmem:[#allocation2 + $0xe8] sm:$0x1] }
 0x192   : > { %v1539_v59 = vpop.f32.mrf.mxu3  ;;  %v6892_v58 = vadd.f32 %v1303_v24, %v6568_v44  ;;  %v1156_v44 = vadd.f32 %v6579_v49, %v6577_v54  ;;  %v2131_v54 = vsel %vm6695_vm5, %v2126_v15, %v2130_v41  ;;  %v2133_v49 = vshrl.u32 %v1904_v30, 16  ;;  %v6927_v41 = vld [vmem:[#allocation2 + $0xf8] sm:$0xff] }
 0x193   : > { %v6889_v2 = vadd.f32 %v1539_v59, %v1366_v51  ;;  %v2121_v3 = vsel %vm6695_vm5, %v2116_v35, %v2120_v27  ;;  %v2142_v51 = vshll.u32 %v1905_v43, 16  ;;  %v2190_v7 = vunpack.c.l.b16 %v2131_v54  ;;  %1846 = vmatmul.bf16.gmra.mxu1 %v6927_v41 }
 0x194   : > { %1681 = vmatmul.bf16.gmra.mxu0 %v6589_v53  ;;  %v2189_v37 = vunpack.c.l.b16 %v2121_v3  ;;  %v2135_v59 = vrot.slane %v2133_v49, 4  ;;  %v2152_v15 = vshll.u32 %v1906_v45, 16 }
 0x195   : > { %v2144_v24 = vrot.slane %v2142_v51, 5 }
 0x196   : > { %v6922_v48 = vpack.c.b16 %v2190_v7, %v2189_v37  ;;  %v1907_v37 = vld [vmem:[#allocation2 + $0xf8] sm:$0xf]  ;;  %v1166_v7 = vadd.f32 %v6679_v29, %v6677_v46 }
 0x197   : > { %2466 = vmatmul.bf16.gmra.mxu3 %v6866_v14  ;;  %v2149_v20 = vor.u32 %v2148_v50, %v2144_v24  ;;  %v2344_v50 = vshll.u32 %v1907_v37, 16 }
 0x199   : > { %v1305_v10 = vpop.f32.mrf.mxu0 }
 0x19a   : > { %v1542_v6 = vpop.f32.mrf.mxu3  ;;  %v6905_v53 = vadd.f32 %v1305_v10, %v1156_v44  ;;  %v1161_v44 = vadd.f32 %v6618_v5, %v6616_v4  ;;  %v2150_v10 = vrot.slane %v2149_v20, 4 }
 0x19b   : > { %v6903_v55 = vadd.f32 %v1542_v6, %v6819_v26  ;;  %v2136_v26 = vshll.u32 %v1904_v30, 16  ;;  %v2154_v30 = vrot.slane %v2152_v15, 5 }
 0x19d   : > { %v2138_v52 = vrot.slane %v2136_v26, 5  ;;  %v2155_v3 = vsel %vm6695_vm5, %v2150_v10, %v2154_v30 }
 0x19e   : > { %v2192_v49 = vunpack.c.l.b16 %v2155_v3 }
 0x19f   : > { %v2139_v35 = vor.u32 %v2138_v52, %v2135_v59  ;;  %v2341_v52 = vshrl.u32 %v1907_v37, 16 }
 0x1a0   : > { %2309 = vmatmul.bf16.gmra.mxu2 %v6922_v48 }
 0x1a1   : > { %v1308_v27 = vpop.f32.mrf.mxu0  ;;  %v2140_v6 = vrot.slane %v2139_v35, 4  ;;  %v2343_v45 = vrot.slane %v2341_v52, 4  ;;  %v2346_v35 = vrot.slane %v2344_v50, 5 }
 0x1a2   : > { %v1544_v36 = vpop.f32.mrf.mxu3  ;;  %v6920_v32 = vadd.f32 %v1308_v27, %v6591_v22 }
 0x1a3   : > { %v6917_v60 = vadd.f32 %v1544_v36, %v1368_v57  ;;  %v2145_v23 = vsel %vm6695_vm5, %v2140_v6, %v2144_v24  ;;  %v5854_v57 = vld [vmem:[#allocation2 + $0x110] sm:$0xff]  ;;  %v1557_v6 = vadd.f32 %v6730_v62, %v6892_v58  ;;  %v2347_v10 = vor.u32 %v2346_v35, %v2343_v45  ;;  %v7640_v45 = vld [vmem:[#allocation7_spill] sm:$0xff] }
 0x1a4   : > { %1686 = vmatmul.bf16.gmra.mxu0 %v6645_v16  ;;  %v2191_v54 = vunpack.c.l.b16 %v2145_v23  ;;  %1851 = vmatmul.bf16.gmra.mxu1 %v5854_v57 }
 0x1a5   : > { %v2348_v23 = vrot.slane %v2347_v10, 4 }
 0x1a6   : > { %v6946_v61 = vpack.c.b16 %v2192_v49, %v2191_v54  ;;  %v1558_v49 = vadd.f32 %v6740_v28, %v6905_v53  ;;  %v7638_v28 = vld [vmem:[#allocation5_spill] sm:$0xff] }
 0x1a7   : > { %2471 = vmatmul.bf16.gmra.mxu3 %v6894_v47 }
 0x1a9   : > { %v1310_v43 = vpop.f32.mrf.mxu0 }
 0x1aa   : > { %v1547_v22 = vpop.f32.mrf.mxu3  ;;  %v1356_v25 = vadd.f32 %v1310_v43, %v1161_v44  ;;  %v1909_v44 = vld [vmem:[#allocation2 + $0x100] sm:$0x1] }
 0x1ab   : > { %v6933_v16 = vadd.f32 %v1547_v22, %v6842_v0  ;;  %v5919_v0 = vld [vmem:[%s7623_s3 + $0x200] sm:$0xff]  ;;  %v2360_v43 = vshll.u32 %v1909_v44, 16 }
 0x1ac   : > { %2612 = vmatpush.bf16.msrb.mxu0 %v5919_v0  ;;  %v1560_v53 = vadd.f32 %v7638_v28, %v1356_v25 }
 0x1ad   : > { %v2362_v54 = vrot.slane %v2360_v43, 5 }
 0x1b0   : > { %2314 = vmatmul.bf16.gmra.mxu2 %v6946_v61 }
 0x1b1   : > { %v1313_v5 = vpop.f32.mrf.mxu0 }
 0x1b2   : > { %v1549_v26 = vpop.f32.mrf.mxu3  ;;  %v1357_v51 = vadd.f32 %v1313_v5, %v6647_v18 }
 0x1b3   : > { %v6940_v4 = vadd.f32 %v1549_v26, %v6855_v33  ;;  %v1908_v33 = vld [vmem:[#allocation2 + $0xfc] sm:$0xf] }
 0x1b4   : > { %1691 = vmatmul.bf16.gmra.mxu0 %v6714_v9  ;;  %v2350_v9 = vshll.u32 %v1908_v33, 16  ;;  %v2354_v27 = vshrl.u32 %v1908_v33, 16 }
 0x1b6   : > { %v2352_v20 = vrot.slane %v2350_v9, 5  ;;  %v2356_v15 = vrot.slane %v2354_v27, 4 }
 0x1b7   : > { %2476 = vmatmul.bf16.gmra.mxu3 %v6922_v48 }
 0x1b8   : > { %v2357_v30 = vor.u32 %v2356_v15, %v2352_v20 }
 0x1b9   : > { %v1315_v18 = vpop.f32.mrf.mxu0 }
 0x1ba   : > { %v1552_v36 = vpop.f32.mrf.mxu3  ;;  %v1358_v24 = vadd.f32 %v1315_v18, %v1166_v7  ;;  %v2358_v3 = vrot.slane %v2357_v30, 4  ;;  %v7639_v18 = vld [vmem:[#allocation6_spill] sm:$0xff] }
 0x1bb   : > { %v6954_v59 = vadd.f32 %v1552_v36, %v6868_v38  ;;  %v1561_v52 = vadd.f32 %v7639_v18, %v1357_v51 }
 0x1bc   : > { %v2363_v26 = vsel %vm6695_vm5, %v2358_v3, %v2362_v54 }
 0x1bd   : > { %v2382_v0 = vunpack.c.l.b16 %v2363_v26 }
 0x1c1   : > { %v1657_v29 = vpop.f32.mrf.mxu0 }
 0x1c2   : > { %v1554_v22 = vpop.f32.mrf.mxu3  ;;  %v6961_v38 = vadd.f32 %v1657_v29, %v1557_v6  ;;  %v1807_v6 = vpop.f32.mrf.mxu1 }
 0x1c3   : > { %v6959_v46 = vadd.f32 %v1554_v22, %v6886_v31  ;;  %v2353_v31 = vsel %vm6695_vm5, %v2348_v23, %v2352_v20 }
 0x1c4   : > { %1696 = vmatmul.bf16.gmra.mxu0 %v6742_v21  ;;  %v2381_v5 = vunpack.c.l.b16 %v2353_v31  ;;  %v1559_v21 = vadd.f32 %v6750_v1, %v6920_v32  ;;  %v1562_v1 = vadd.f32 %v6787_v19, %v1358_v24 }
 0x1c6   : > { %v6975_v37 = vpack.c.b16 %v2382_v0, %v2381_v5  ;;  %v1911_v0 = vld [vmem:[#allocation2 + $0x114] sm:$0xf] }
 0x1c7   : > { %2481 = vmatmul.bf16.gmra.mxu3 %v6946_v61 }
 0x1c9   : > { %v1659_v62 = vpop.f32.mrf.mxu0 }
 0x1ca   : > { %v6967_v58 = vadd.f32 %v1659_v62, %v1558_v49  ;;  %v1809_v10 = vpop.f32.mrf.mxu1 }
 0x1d1   : > { %v1662_v57 = vpop.f32.mrf.mxu0 }
 0x1d2   : > { %v6977_v33 = vadd.f32 %v1662_v57, %v1559_v21  ;;  %v1812_v3 = vpop.f32.mrf.mxu1 }
 0x1d4   : > { %1701 = vmatmul.bf16.gmra.mxu0 %v6927_v41 }
 0x1d7   : > { %2486 = vmatmul.bf16.gmra.mxu3 %v6975_v37 }
 0x1d9   : > { %v1664_v7 = vpop.f32.mrf.mxu0 }
 0x1da   : > { %v6982_v36 = vadd.f32 %v1664_v7, %v1560_v53  ;;  %v1814_v62 = vpop.f32.mrf.mxu1  ;;  %v2522_v53 = vshll.u32 %v1911_v0, 16 }
 0x1e1   : > { %v1667_v50 = vpop.f32.mrf.mxu0 }
 0x1e2   : > { %v6985_v9 = vadd.f32 %v1667_v50, %v1561_v52  ;;  %v7037_v21 = vpop.f32.mrf.mxu1  ;;  %v1857_v52 = vadd.f32 %v1807_v6, %v6961_v38 }
 0x1e4   : > { %2613 = vmatmul.bf16.vlgmr.msrb.gmra.mxu0 %v6767_v40 }
 0x1e9   : > { %v1669_v32 = vpop.f32.mrf.mxu0 }
 0x1ea   : > { %v6989_v27 = vadd.f32 %v1669_v32, %v1562_v1  ;;  %v2524_v1 = vrot.slane %v2522_v53, 5  ;;  %v1912_v32 = vld [vmem:[#allocation2 + $0x118] sm:$0x1] }
 0x1f1   : > { %v1672_v41 = vpop.f32.mrf.mxu0 }
 0x1f2   : > { %v6992_v35 = vadd.f32 %v1672_v41, %v7640_v45 }
 0x1f4   : > { %2618 = vmatmul.bf16.gmra.mxu0 %v6789_v11 }
 0x1f9   : > { %v1674_v25 = vpop.f32.mrf.mxu0 }
 0x1fa   : > { %v6996_v20 = vadd.f32 %v1674_v25, %v6809_v8  ;;  %v1858_v25 = vadd.f32 %v1809_v10, %v6967_v58 }
 0x201   : > { %v1677_v51 = vpop.f32.mrf.mxu0 }
 0x202   : > { %v6999_v15 = vadd.f32 %v1677_v51, %v6826_v56  ;;  %v1819_v51 = vpop.f32.mrf.mxu1 }
 0x204   : > { %2623 = vmatmul.bf16.gmra.mxu0 %v6817_v13 }
 0x209   : > { %v1679_v40 = vpop.f32.mrf.mxu0 }
 0x20a   : > { %v7003_v19 = vadd.f32 %v1679_v40, %v6837_v39 }
 0x211   : > { %v1682_v24 = vpop.f32.mrf.mxu0 }
 0x212   : > { %v7006_v44 = vadd.f32 %v1682_v24, %v6852_v34 }
 0x214   : > { %2628 = vmatmul.bf16.gmra.mxu0 %v6840_v63  ;;  %v2270_v63 = vpop.f32.mrf.mxu2 }
 0x215   : > { %v2320_v45 = vadd.f32 %v2270_v63, %v1857_v52  ;;  %v7048_v63 = vld [vmem:[%s7624_s4] ss:$0 sm:$0xff] }
 0x219   : > { %v1684_v11 = vpop.f32.mrf.mxu0 }
 0x21a   : > { %v7010_v8 = vadd.f32 %v1684_v11, %v6863_v17  ;;  %v2442_v17 = vpop.f32.mrf.mxu3 }
 0x21c   : > { %v2272_v43 = vpop.f32.mrf.mxu2 }
 0x221   : > { %v1687_v22 = vpop.f32.mrf.mxu0 }
 0x222   : > { %v7013_v56 = vadd.f32 %v1687_v22, %v6875_v42  ;;  %v2532_v22 = vshll.u32 %v1912_v32, 16 }
 0x224   : > { %2633 = vmatmul.bf16.gmra.mxu0 %v6866_v14  ;;  %v2444_v14 = vpop.f32.mrf.mxu3 }
 0x229   : > { %v1689_v13 = vpop.f32.mrf.mxu0 }
 0x22a   : > { %v7017_v39 = vadd.f32 %v1689_v13, %v6889_v2  ;;  %v2492_v13 = vadd.f32 %v2442_v17, %v2320_v45 }
 0x231   : > { %v1692_v29 = vpop.f32.mrf.mxu0 }
 0x232   : > { %v7020_v34 = vadd.f32 %v1692_v29, %v6903_v55  ;;  %v2275_v55 = vpop.f32.mrf.mxu2 }
 0x234   : > { %2638 = vmatmul.bf16.gmra.mxu0 %v6894_v47  ;;  %v2447_v47 = vpop.f32.mrf.mxu3 }
 0x239   : > { %v1694_v30 = vpop.f32.mrf.mxu0 }
 0x23a   : > { %v7024_v42 = vadd.f32 %v1694_v30, %v6917_v60  ;;  %v2277_v31 = vpop.f32.mrf.mxu2  ;;  %v2534_v30 = vrot.slane %v2532_v22, 5 }
 0x23c   : > { %v2449_v5 = vpop.f32.mrf.mxu3 }
 0x241   : > { %v1697_v23 = vpop.f32.mrf.mxu0 }
 0x242   : > { %v7027_v2 = vadd.f32 %v1697_v23, %v6933_v16  ;;  %v1910_v16 = vld [vmem:[#allocation2 + $0x110] sm:$0xf]  ;;  %v2280_v18 = vpop.f32.mrf.mxu2 }
 0x243   : > { %v2513_v57 = vshrl.u32 %v1910_v16, 16  ;;  %v2516_v28 = vshll.u32 %v1910_v16, 16  ;;  %v1822_v16 = vpop.f32.mrf.mxu1 }
 0x244   : > { %2643 = vmatmul.bf16.gmra.mxu0 %v6922_v48  ;;  %v2452_v41 = vpop.f32.mrf.mxu3 }
 0x245   : > { %v2518_v50 = vrot.slane %v2516_v28, 5 }
 0x249   : > { %v1699_v54 = vpop.f32.mrf.mxu0 }
 0x24a   : > { %v7031_v49 = vadd.f32 %v1699_v54, %v6940_v4  ;;  %v2526_v4 = vshrl.u32 %v1911_v0, 16  ;;  %v2282_v29 = vpop.f32.mrf.mxu2  ;;  %v1859_v0 = vadd.f32 %v1812_v3, %v6977_v33 }
 0x24c   : > { %v2454_v10 = vpop.f32.mrf.mxu3  ;;  %v2322_v52 = vadd.f32 %v2275_v55, %v1859_v0  ;;  %v1861_v55 = vadd.f32 %v7037_v21, %v6985_v9 }
 0x24e   : > { %v2494_v45 = vadd.f32 %v2447_v47, %v2322_v52  ;;  %v2324_v47 = vadd.f32 %v2280_v18, %v1861_v55 }
 0x251   : > { %v1702_v26 = vpop.f32.mrf.mxu0 }
 0x252   : > { %v7034_v60 = vadd.f32 %v1702_v26, %v6954_v59  ;;  %v2515_v59 = vrot.slane %v2513_v57, 4 }
 0x254   : > { %2648 = vmatmul.bf16.gmra.mxu0 %v6946_v61  ;;  %v2528_v61 = vrot.slane %v2526_v4, 4  ;;  %v2519_v24 = vor.u32 %v2518_v50, %v2515_v59  ;;  %v2285_v4 = vpop.f32.mrf.mxu2  ;;  %v1860_v59 = vadd.f32 %v1814_v62, %v6982_v36  ;;  %v2457_v32 = vpop.f32.mrf.mxu3 }
 0x256   : > { %v2529_v11 = vor.u32 %v2528_v61, %v2524_v1  ;;  %v2520_v38 = vrot.slane %v2519_v24, 4 }
 0x258   : > { %v2530_v6 = vrot.slane %v2529_v11, 4  ;;  %v2525_v26 = vsel %vm6695_vm5, %v2520_v38, %v2524_v1 }
 0x259   : > { %v1704_v48 = vpop.f32.mrf.mxu0  ;;  %v2553_v57 = vunpack.c.l.b16 %v2525_v26 }
 0x25a   : > { %v7040_v7 = vadd.f32 %v1704_v48, %v6959_v46  ;;  %v2321_v46 = vadd.f32 %v2272_v43, %v1858_v25  ;;  %v2535_v17 = vsel %vm6695_vm5, %v2530_v6, %v2534_v30  ;;  %v2323_v25 = vadd.f32 %v2277_v31, %v1860_v59 }
 0x25b   : > { %v2554_v28 = vunpack.c.l.b16 %v2535_v17  ;;  %v1862_v31 = vadd.f32 %v1819_v51, %v6989_v27 }
 0x25c   : > { %v2493_v58 = vadd.f32 %v2444_v14, %v2321_v46  ;;  %v2495_v3 = vadd.f32 %v2449_v5, %v2323_v25  ;;  %v2287_v24 = vpop.f32.mrf.mxu2  ;;  %v2459_v62 = vpop.f32.mrf.mxu3 }
 0x25d   : > { %v2555_v1 = vpack.c.b16 %v2554_v28, %v2553_v57 }
 0x261   : > { %v2614_v40 = vpop.f32.mrf.mxu0 }
 0x262   : > { %v2664_v23 = vadd.f32 %v2614_v40, %v2492_v13  ;;  %v1824_v40 = vpop.f32.mrf.mxu1 }
 0x264   : > { %2653 = vmatmul.bf16.gmra.mxu0 %v6975_v37  ;;  %v2688_v37 = vadd.f32 %v7048_v63, %v2664_v23  ;;  %v2290_v5 = vpop.f32.mrf.mxu2  ;;  %v2462_v17 = vpop.f32.mrf.mxu3 }
 0x266   : > { %v2708_v53 = vmax.f32 %v2688_v37, 0.0 }
 0x269   : > { %v2616_v54 = vpop.f32.mrf.mxu0 }
 0x26a   : > { %v2665_v43 = vadd.f32 %v2616_v54, %v2493_v58  ;;  %v1827_v6 = vpop.f32.mrf.mxu1  ;;  %v2496_v58 = vadd.f32 %v2452_v41, %v2324_v47  ;;  %v2325_v54 = vadd.f32 %v2282_v29, %v1862_v31 }
 0x26c   : > { %v2689_v48 = vadd.f32 %v7048_v63, %v2665_v43  ;;  %v2497_v37 = vadd.f32 %v2454_v10, %v2325_v54  ;;  %v2292_v57 = vpop.f32.mrf.mxu2  ;;  %v2464_v29 = vpop.f32.mrf.mxu3 }
 0x26e   : > { %v2709_v14 = vmax.f32 %v2689_v48, 0.0  ;;  %v1863_v48 = vadd.f32 %v1822_v16, %v6992_v35 }
 0x270   : > { %v6012_v50 = vpack.c.bf16 %v2709_v14, %v2708_v53  ;;  %v2326_v28 = vadd.f32 %v2285_v4, %v1863_v48  ;;  %v1864_v53 = vadd.f32 %v1824_v40, %v6996_v20 }
 0x271   : > { %v2619_v61 = vpop.f32.mrf.mxu0 }
 0x272   : > { %6059 = vst [vmem:[#allocation3 + $0x8] sm:$0xff] %v6012_v50   ;;  %v2666_v33 = vadd.f32 %v2619_v61, %v2494_v45  ;;  %v1829_v43 = vpop.f32.mrf.mxu1  ;;  %v2498_v52 = vadd.f32 %v2457_v32, %v2326_v28  ;;  %v2327_v59 = vadd.f32 %v2287_v24, %v1864_v53 }
 0x274   : > { %2658 = vmatmul.bf16.gmra.mxu0 %v2555_v1  ;;  %v2690_v22 = vadd.f32 %v7048_v63, %v2666_v33  ;;  %v2295_v1 = vpop.f32.mrf.mxu2  ;;  %v2499_v61 = vadd.f32 %v2459_v62, %v2327_v59  ;;  %v2467_v25 = vpop.f32.mrf.mxu3  ;;  %v1865_v33 = vadd.f32 %v1827_v6, %v6999_v15 }
 0x276   : > { %v2710_v46 = vmax.f32 %v2690_v22, 0.0  ;;  %v1866_v22 = vadd.f32 %v1829_v43, %v7003_v19 }
 0x279   : > { %v2621_v11 = vpop.f32.mrf.mxu0 }
 0x27a   : > { %v2667_v13 = vadd.f32 %v2621_v11, %v2495_v3  ;;  %v1832_v10 = vpop.f32.mrf.mxu1  ;;  %v2328_v11 = vadd.f32 %v2290_v5, %v1865_v33 }
 0x27c   : > { %v2691_v36 = vadd.f32 %v7048_v63, %v2667_v13  ;;  %v2297_v24 = vpop.f32.mrf.mxu2  ;;  %v2500_v55 = vadd.f32 %v2462_v17, %v2328_v11  ;;  %v2469_v62 = vpop.f32.mrf.mxu3 }
 0x27e   : > { %v2711_v38 = vmax.f32 %v2691_v36, 0.0  ;;  %v2329_v36 = vadd.f32 %v2292_v57, %v1866_v22 }
 0x280   : > { %v6017_v30 = vpack.c.bf16 %v2711_v38, %v2710_v46  ;;  %v2501_v47 = vadd.f32 %v2464_v29, %v2329_v36 }
 0x281   : > { %v2624_v23 = vpop.f32.mrf.mxu0 }
 0x282   : > { %6060 = vst [vmem:[#allocation3 + $0x20] sm:$0xff] %v6017_v30   ;;  %v2668_v26 = vadd.f32 %v2624_v23, %v2496_v58  ;;  %v1834_v20 = vpop.f32.mrf.mxu1  ;;  %v1867_v23 = vadd.f32 %v1832_v10, %v7006_v44 }
 0x283   : > { %v1868_v17 = vadd.f32 %v1834_v20, %v7010_v8 }
 0x284   : > { %v2692_v21 = vadd.f32 %v7048_v63, %v2668_v26  ;;  %v2300_v30 = vpop.f32.mrf.mxu2  ;;  %v2472_v54 = vpop.f32.mrf.mxu3  ;;  %v2330_v26 = vadd.f32 %v2295_v1, %v1867_v23 }
 0x286   : > { %v2712_v27 = vmax.f32 %v2692_v21, 0.0  ;;  %v2502_v21 = vadd.f32 %v2467_v25, %v2330_v26 }
 0x289   : > { %v2626_v9 = vpop.f32.mrf.mxu0 }
 0x28a   : > { %v2669_v0 = vadd.f32 %v2626_v9, %v2497_v37  ;;  %v1837_v38 = vpop.f32.mrf.mxu1 }
 0x28c   : > { %v2693_v18 = vadd.f32 %v7048_v63, %v2669_v0  ;;  %v2331_v0 = vadd.f32 %v2297_v24, %v1868_v17  ;;  %v2302_v48 = vpop.f32.mrf.mxu2 }
 0x28e   : > { %v2713_v51 = vmax.f32 %v2693_v18, 0.0  ;;  %v2503_v57 = vadd.f32 %v2469_v62, %v2331_v0 }
 0x290   : > { %v6022_v41 = vpack.c.bf16 %v2713_v51, %v2712_v27  ;;  %v2474_v27 = vpop.f32.mrf.mxu3 }
 0x291   : > { %v2629_v14 = vpop.f32.mrf.mxu0 }
 0x292   : > { %6061 = vst [vmem:[#allocation3 + $0x38] sm:$0xff] %v6022_v41   ;;  %v2670_v50 = vadd.f32 %v2629_v14, %v2498_v52  ;;  %v1839_v43 = vpop.f32.mrf.mxu1  ;;  %v1869_v41 = vadd.f32 %v1837_v38, %v7013_v56 }
 0x293   : > { %v1870_v59 = vadd.f32 %v1839_v43, %v7017_v39 }
 0x294   : > { %v2694_v35 = vadd.f32 %v7048_v63, %v2670_v50  ;;  %v2305_v10 = vpop.f32.mrf.mxu2  ;;  %v2332_v52 = vadd.f32 %v2300_v30, %v1869_v41 }
 0x296   : > { %v2714_v40 = vmax.f32 %v2694_v35, 0.0  ;;  %v2333_v35 = vadd.f32 %v2302_v48, %v1870_v59 }
 0x298   : > { %v2505_v33 = vadd.f32 %v2474_v27, %v2333_v35 }
 0x299   : > { %v2631_v45 = vpop.f32.mrf.mxu0 }
 0x29a   : > { %v2671_v16 = vadd.f32 %v2631_v45, %v2499_v61  ;;  %v1842_v53 = vpop.f32.mrf.mxu1  ;;  %v2477_v61 = vpop.f32.mrf.mxu3  ;;  %v2504_v45 = vadd.f32 %v2472_v54, %v2332_v52 }
 0x29c   : > { %v2695_v4 = vadd.f32 %v7048_v63, %v2671_v16 }
 0x29e   : > { %v2715_v3 = vmax.f32 %v2695_v4, 0.0  ;;  %v2307_v4 = vpop.f32.mrf.mxu2 }
 0x2a0   : > { %v6027_v32 = vpack.c.bf16 %v2715_v3, %v2714_v40  ;;  %v1871_v3 = vadd.f32 %v1842_v53, %v7020_v34 }
 0x2a1   : > { %v2634_v13 = vpop.f32.mrf.mxu0 }
 0x2a2   : > { %6062 = vst [vmem:[#allocation3 + $0x50] sm:$0xff] %v6027_v32   ;;  %v2672_v46 = vadd.f32 %v2634_v13, %v2500_v55  ;;  %v1844_v16 = vpop.f32.mrf.mxu1  ;;  %v2479_v22 = vpop.f32.mrf.mxu3  ;;  %v2334_v13 = vadd.f32 %v2305_v10, %v1871_v3 }
 0x2a3   : > { %v1872_v55 = vadd.f32 %v1844_v16, %v7024_v42 }
 0x2a4   : > { %v2696_v15 = vadd.f32 %v7048_v63, %v2672_v46  ;;  %v2506_v38 = vadd.f32 %v2477_v61, %v2334_v13 }
 0x2a6   : > { %v2716_v19 = vmax.f32 %v2696_v15, 0.0  ;;  %v2310_v46 = vpop.f32.mrf.mxu2 }
 0x2a9   : > { %v2636_v31 = vpop.f32.mrf.mxu0 }
 0x2aa   : > { %v2673_v6 = vadd.f32 %v2636_v31, %v2501_v47  ;;  %v1847_v24 = vpop.f32.mrf.mxu1  ;;  %v2335_v47 = vadd.f32 %v2307_v4, %v1872_v55  ;;  %v2482_v15 = vpop.f32.mrf.mxu3 }
 0x2ac   : > { %v2697_v5 = vadd.f32 %v7048_v63, %v2673_v6  ;;  %v2507_v6 = vadd.f32 %v2479_v22, %v2335_v47 }
 0x2ae   : > { %v2717_v58 = vmax.f32 %v2697_v5, 0.0  ;;  %v2312_v54 = vpop.f32.mrf.mxu2 }
 0x2b0   : > { %v6032_v37 = vpack.c.bf16 %v2717_v58, %v2716_v19  ;;  %v1873_v19 = vadd.f32 %v1847_v24, %v7027_v2 }
 0x2b1   : > { %v2639_v9 = vpop.f32.mrf.mxu0 }
 0x2b2   : > { %6063 = vst [vmem:[#allocation3 + $0x68] sm:$0xff] %v6032_v37   ;;  %v2674_v18 = vadd.f32 %v2639_v9, %v2502_v21  ;;  %v1849_v30 = vpop.f32.mrf.mxu1  ;;  %v2336_v17 = vadd.f32 %v2310_v46, %v1873_v19  ;;  %v2484_v9 = vpop.f32.mrf.mxu3 }
 0x2b3   : > { %v1874_v37 = vadd.f32 %v1849_v30, %v7031_v49 }
 0x2b4   : > { %v2698_v44 = vadd.f32 %v7048_v63, %v2674_v18  ;;  %v2508_v48 = vadd.f32 %v2482_v15, %v2336_v17 }
 0x2b5   : > { %v2337_v18 = vadd.f32 %v2312_v54, %v1874_v37 }
 0x2b6   : > { %v2718_v8 = vmax.f32 %v2698_v44, 0.0  ;;  %v2315_v27 = vpop.f32.mrf.mxu2 }
 0x2b9   : > { %v2641_v51 = vpop.f32.mrf.mxu0 }
 0x2ba   : > { %v2675_v28 = vadd.f32 %v2641_v51, %v2503_v57  ;;  %v1852_v0 = vpop.f32.mrf.mxu1  ;;  %v2509_v51 = vadd.f32 %v2484_v9, %v2337_v18  ;;  %v2487_v53 = vpop.f32.mrf.mxu3 }
 0x2bb   : > { %v1875_v41 = vadd.f32 %v1852_v0, %v7034_v60 }
 0x2bc   : > { %v2699_v29 = vadd.f32 %v7048_v63, %v2675_v28 }
 0x2bd   : > { %v2338_v10 = vadd.f32 %v2315_v27, %v1875_v41 }
 0x2be   : > { %v2719_v14 = vmax.f32 %v2699_v29, 0.0 }
 0x2bf   : > { %v2510_v61 = vadd.f32 %v2487_v53, %v2338_v10 }
 0x2c0   : > { %v6037_v50 = vpack.c.bf16 %v2719_v14, %v2718_v8 }
 0x2c1   : > { %v2644_v1 = vpop.f32.mrf.mxu0 }
 0x2c2   : > { %6064 = vst [vmem:[#allocation3 + $0x80] sm:$0xff] %v6037_v50   ;;  %v2676_v25 = vadd.f32 %v2644_v1, %v2504_v45  ;;  %v1854_v49 = vpop.f32.mrf.mxu1  ;;  %v2317_v50 = vpop.f32.mrf.mxu2 }
 0x2c3   : > { %v1876_v52 = vadd.f32 %v1854_v49, %v7040_v7  ;;  %v2489_v35 = vpop.f32.mrf.mxu3 }
 0x2c4   : > { %v2700_v56 = vadd.f32 %v7048_v63, %v2676_v25 }
 0x2c5   : > { %v2339_v45 = vadd.f32 %v2317_v50, %v1876_v52 }
 0x2c6   : > { %v2720_v39 = vmax.f32 %v2700_v56, 0.0 }
 0x2c7   : > { %v2511_v25 = vadd.f32 %v2489_v35, %v2339_v45 }
 0x2c9   : > { %v2646_v20 = vpop.f32.mrf.mxu0 }
 0x2ca   : > { %v2677_v40 = vadd.f32 %v2646_v20, %v2505_v33 }
 0x2cc   : > { %v2701_v11 = vadd.f32 %v7048_v63, %v2677_v40 }
 0x2ce   : > { %v2721_v32 = vmax.f32 %v2701_v11, 0.0 }
 0x2d0   : > { %v6042_v36 = vpack.c.bf16 %v2721_v32, %v2720_v39 }
 0x2d1   : > { %v2649_v62 = vpop.f32.mrf.mxu0 }
 0x2d2   : > { %6065 = vst [vmem:[#allocation3 + $0x98] sm:$0xff] %v6042_v36   ;;  %v2678_v31 = vadd.f32 %v2649_v62, %v2506_v38 }
 0x2d4   : > { %v2702_v23 = vadd.f32 %v7048_v63, %v2678_v31 }
 0x2d6   : > { %v2722_v42 = vmax.f32 %v2702_v23, 0.0 }
 0x2d9   : > { %v2651_v34 = vpop.f32.mrf.mxu0 }
 0x2da   : > { %v2679_v5 = vadd.f32 %v2651_v34, %v2507_v6 }
 0x2dc   : > { %v2703_v58 = vadd.f32 %v7048_v63, %v2679_v5 }
 0x2de   : > { %v2723_v26 = vmax.f32 %v2703_v58, 0.0 }
 0x2e0   : > { %v6047_v43 = vpack.c.bf16 %v2723_v26, %v2722_v42 }
 0x2e1   : > { %v2654_v21 = vpop.f32.mrf.mxu0 }
 0x2e2   : > { %6066 = vst [vmem:[#allocation3 + $0xb0] sm:$0xff] %v6047_v43   ;;  %v2680_v57 = vadd.f32 %v2654_v21, %v2508_v48 }
 0x2e4   : > { %v2704_v2 = vadd.f32 %v7048_v63, %v2680_v57 }
 0x2e6   : > { %v2724_v8 = vmax.f32 %v2704_v2, 0.0 }
 0x2e9   : > { %v2656_v44 = vpop.f32.mrf.mxu0 }
 0x2ea   : > { %v2681_v28 = vadd.f32 %v2656_v44, %v2509_v51 }
 0x2ec   : > { %v2705_v29 = vadd.f32 %v7048_v63, %v2681_v28 }
 0x2ee   : > { %v2725_v14 = vmax.f32 %v2705_v29, 0.0 }
 0x2f0   : > { %v6052_v59 = vpack.c.bf16 %v2725_v14, %v2724_v8 }
 0x2f1   : > { %v2659_v1 = vpop.f32.mrf.mxu0 }
 0x2f2   : > { %6067 = vst [vmem:[#allocation3 + $0xc8] sm:$0xff] %v6052_v59   ;;  %v2682_v16 = vadd.f32 %v2659_v1, %v2510_v61 }
 0x2f4   : > { %v2706_v60 = vadd.f32 %v7048_v63, %v2682_v16 }
 0x2f6   : > { %v2726_v56 = vmax.f32 %v2706_v60, 0.0 }
 0x2f9   : > { %v2661_v33 = vpop.f32.mrf.mxu0 }
 0x2fa   : > { %v2683_v4 = vadd.f32 %v2661_v33, %v2511_v25 }
 0x2fc   : > { %v2707_v20 = vadd.f32 %v7048_v63, %v2683_v4 }
 0x2fe   : > { %v2727_v40 = vmax.f32 %v2707_v20, 0.0  ;;  %2810 = sbr.rel (%p4888_p12) target bundleno = 774 (0x306), region = 72 }
 0x300   : > { %v6057_v3 = vpack.c.bf16 %v2727_v40, %v2726_v56 }
 0x302   : > { %6068 = vst [vmem:[#allocation3 + $0xe0] sm:$0xff] %v6057_v3  }
 0x303   : > { %v6175_v7 = vmov 0  }
 0x304   : > { %2811 = vst [vmem:[#allocation3 + $0x8] sm:$0xf] %v6175_v7 }
 0x305   : > { %2812 = vst [vmem:[#allocation3 + $0xc] sm:$0xf] %v6175_v7 }
 0x306 PF: > { %2815 = sbr.rel (%p4890_p0) target bundleno = 782 (0x30e), region = 76 }
 0x30b   : > { %v6176_v11 = vmov 0  }
 0x30c   : > { %2817 = vst [vmem:[#allocation3 + $0xe0] sm:$0xf] %v6176_v11 }
 0x30d   : > { %2818 = vst [vmem:[#allocation3 + $0xe4] sm:$0xf] %v6176_v11 }
 0x30e PF: > { %v5952_v63 = vld [vmem:[%s7625_s5 + $0xf8] sm:$0xff]  ;;  %v5951_v32 = vld [vmem:[%s7625_s5 + $0xf0] sm:$0xff]  ;;  %v5950_v55 = vld [vmem:[%s7625_s5 + $0xe8] sm:$0xff] }
 0x30f   : > { %v5944_v22 = vld [vmem:[%s7625_s5 + $0x38] sm:$0xff]  ;;  %3163 = vmatpush.bf16.msra.mxu1 %v5952_v63  ;;  %v5943_v24 = vld [vmem:[%s7625_s5 + $0x30] sm:$0xff]  ;;  %v5942_v36 = vld [vmem:[%s7625_s5 + $0x28] sm:$0xff] }
 0x310   : > { %v5960_v39 = vld [vmem:[%s7625_s5 + $0x1b8] sm:$0xff]  ;;  %3264 = vmatpush.bf16.msra.mxu2 %v5944_v22  ;;  %v5959_v13 = vld [vmem:[%s7625_s5 + $0x1b0] sm:$0xff]  ;;  %v5958_v62 = vld [vmem:[%s7625_s5 + $0x1a8] sm:$0xff] }
 0x311   : > { %3404 = vmatpush.bf16.msrb.mxu3 %v5960_v39  ;;  %v2822_v46 = vld [vmem:[#allocation3 + $0x1c] sm:$0x8]  ;;  %v2823_v38 = vld [vmem:[#allocation3 + $0x20] sm:$0xf]  ;;  %v2824_v47 = vld [vmem:[#allocation3 + $0x24] sm:$0xf] }
 0x312   : > { %v5949_v31 = vld [vmem:[%s7625_s5 + $0xe0] sm:$0xff]  ;;  %v2880_v15 = vshrl.u32 %v2823_v38, 16  ;;  %v2889_v6 = vshrl.u32 %v2824_v47, 16  ;;  %v2820_v23 = vld [vmem:[#allocation3 + $0x8] sm:$0xf]  ;;  %v2875_v58 = vshrl.u32 %v2822_v46, 16 }
 0x313   : > { %3164 = vmatpush.bf16.msra.mxu1 %v5951_v32  ;;  %v2819_v30 = vld [vmem:[#allocation3 + $0x4] sm:$0x8]  ;;  %v2821_v5 = vld [vmem:[#allocation3 + $0xc] sm:$0xf]  ;;  %v2858_v54 = vshrl.u32 %v2820_v23, 16  ;;  %v5948_v42 = vld [vmem:[%s7625_s5 + $0xd8] sm:$0xff] }
 0x314   : > { %3265 = vmatpush.bf16.msra.mxu2 %v5943_v24  ;;  %v5941_v34 = vld [vmem:[%s7625_s5 + $0x20] sm:$0xff]  ;;  %v2882_v26 = vrot.slane %v2880_v15, 7  ;;  %v2883_v17 = vshll.u32 %v2823_v38, 16  ;;  %v2853_v37 = vshrl.u32 %v2819_v30, 16  ;;  %v2867_v43 = vshrl.u32 %v2821_v5, 16  ;;  %v5940_v21 = vld [vmem:[%s7625_s5 + $0x18] sm:$0xff] }
 0x315   : > { %3405 = vmatpush.bf16.msrb.mxu3 %v5959_v13  ;;  %v5957_v19 = vld [vmem:[%s7625_s5 + $0x1a0] sm:$0xff]  ;;  %v2825_v9 = vld [vmem:[#allocation3 + $0x34] sm:$0x8]  ;;  %v2891_v0 = vrot.slane %v2889_v6, 7  ;;  %v2892_v48 = vshll.u32 %v2824_v47, 16  ;;  %v2861_v18 = vshll.u32 %v2820_v23, 16 }
 0x316   : > { %v2826_v57 = vld [vmem:[#allocation3 + $0x38] sm:$0xf]  ;;  %v2860_v27 = vrot.slane %v2858_v54, 7  ;;  %v2869_v51 = vrot.slane %v2867_v43, 7  ;;  %v2870_v44 = vshll.u32 %v2821_v5, 16  ;;  %v2897_v41 = vshrl.u32 %v2825_v9, 16 }
 0x317   : > { %3165 = vmatpush.bf16.msra.mxu1 %v5950_v55  ;;  %v2827_v2 = vld [vmem:[#allocation3 + $0x3c] sm:$0xf]  ;;  %v2902_v28 = vshrl.u32 %v2826_v57, 16  ;;  %v2905_v29 = vshll.u32 %v2826_v57, 16  ;;  %v5370_v49 = vrot.slane %v2875_v58, 11  ;;  %v2885_v8 = vor.u32 %v2883_v17, %v2882_v26  ;;  %v5947_v1 = vld [vmem:[%s7625_s5 + $0xd0] sm:$0xff] }
 0x318   : > { %3266 = vmatpush.bf16.msra.mxu2 %v5942_v36  ;;  %v5956_v53 = vld [vmem:[%s7625_s5 + $0x198] sm:$0xff]  ;;  %v5369_v14 = vrot.slane %v2853_v37, 11  ;;  %v2887_v10 = vrot.slane %v2882_v26, 4  ;;  %v2911_v59 = vshrl.u32 %v2827_v2, 16  ;;  %v2914_v50 = vshll.u32 %v2827_v2, 16  ;;  %v5939_v61 = vld [vmem:[%s7625_s5 + $0x10] sm:$0xff] }
 0x319   : > { %3406 = vmatpush.bf16.msrb.mxu3 %v5958_v62  ;;  %v2904_v52 = vrot.slane %v2902_v28, 7  ;;  %v2894_v45 = vor.u32 %v2892_v48, %v2891_v0  ;;  %v2863_v35 = vor.u32 %v2861_v18, %v2860_v27  ;;  %v2865_v16 = vrot.slane %v2860_v27, 4  ;;  %v5955_v33 = vld [vmem:[%s7625_s5 + $0x190] sm:$0xff]  ;;  %v5946_v11 = vld [vmem:[%s7625_s5 + $0xc8] sm:$0xff]  ;;  %v5945_v15 = vld [vmem:[%s7625_s5 + $0xc0] sm:$0xff] }
 0x31a   : > { %v2872_v25 = vor.u32 %v2870_v44, %v2869_v51  ;;  %v5371_v60 = vrot.slane %v2897_v41, 11  ;;  %v2913_v56 = vrot.slane %v2911_v59, 7  ;;  %v2886_v3 = vsel %vm6360_vm2, %v5370_v49, %v2885_v8  ;;  %v5938_v63 = vld [vmem:[%s7625_s5 + $0x8] sm:$0xff]  ;;  %v2829_v36 = vld [vmem:[#allocation3 + $0x50] sm:$0xf]  ;;  %v5937_v6 = vld [vmem:[%s7625_s5] sm:$0xff] }
 0x31b   : > { %3166 = vmatpush.bf16.msra.mxu1 %v5949_v31  ;;  %v2907_v4 = vor.u32 %v2905_v29, %v2904_v52  ;;  %v2909_v20 = vrot.slane %v2904_v52, 4  ;;  %v2895_v22 = vsel %vm6360_vm2, %v2887_v10, %v2894_v45  ;;  %v2864_v39 = vsel %vm6360_vm2, %v5369_v14, %v2863_v35  ;;  %v5954_v24 = vld [vmem:[%s7625_s5 + $0x188] sm:$0xff]  ;;  %v2830_v62 = vld [vmem:[#allocation3 + $0x54] sm:$0xf]  ;;  %v5953_v23 = vld [vmem:[%s7625_s5 + $0x180] sm:$0xff] }
 0x31c   : > { %3267 = vmatpush.bf16.msra.mxu2 %v5941_v34  ;;  %v2916_v7 = vor.u32 %v2914_v50, %v2913_v56  ;;  %v2873_v32 = vsel %vm6360_vm2, %v2865_v16, %v2872_v25  ;;  %v3083_v46 = vunpack.c.l.b16 %v2886_v3  ;;  %v3084_v38 = vunpack.c.l.b16 %v2895_v22  ;;  %v5976_v5 = vld [vmem:[%s7625_s5 + $0x138] sm:$0xff]  ;;  %v5975_v9 = vld [vmem:[%s7625_s5 + $0x130] sm:$0xff]  ;;  %v5974_v28 = vld [vmem:[%s7625_s5 + $0x128] sm:$0xff] }
 0x31d   : > { %3407 = vmatpush.bf16.msrb.mxu3 %v5957_v19  ;;  %v2908_v13 = vsel %vm6360_vm2, %v5371_v60, %v2907_v4  ;;  %v3212_v47 = vunpack.c.l.b16 %v2864_v39  ;;  %v3213_v31 = vunpack.c.l.b16 %v2873_v32  ;;  %v2828_v19 = vld [vmem:[#allocation3 + $0x4c] sm:$0x8]  ;;  %v2924_v58 = vshrl.u32 %v2829_v36, 16  ;;  %v5967_v57 = vld [vmem:[%s7625_s5 + $0x70] sm:$0xff]  ;;  %v2832_v41 = vld [vmem:[#allocation3 + $0x68] sm:$0xf] }
 0x31e   : > { %v2917_v55 = vsel %vm6360_vm2, %v2909_v20, %v2916_v7  ;;  %v3085_v30 = vunpack.c.l.b16 %v2908_v13  ;;  %v2933_v54 = vshrl.u32 %v2830_v62, 16  ;;  %v3099_v26 = vpack.c.b16 %v3084_v38, %v3083_v46  ;;  %v2833_v8 = vld [vmem:[#allocation3 + $0x6c] sm:$0xf]  ;;  %v2831_v59 = vld [vmem:[#allocation3 + $0x64] sm:$0x8] }
 0x31f   : > { %3167 = vmatpush.bf16.msra.mxu1 %v5948_v42  ;;  %v3086_v34 = vunpack.c.l.b16 %v2917_v55  ;;  %v5968_v42 = vld [vmem:[%s7625_s5 + $0x78] sm:$0xff]  ;;  %v3214_v17 = vpack.c.b16 %v3213_v31, %v3212_v47  ;;  %v2919_v43 = vshrl.u32 %v2828_v19, 16  ;;  %v2927_v0 = vshll.u32 %v2829_v36, 16  ;;  %v5965_v3 = vld [vmem:[%s7625_s5 + $0x60] sm:$0xff] }
 0x320   : > { %3268 = vmatpush.bf16.msra.mxu2 %v5940_v21  ;;  %v2926_v21 = vrot.slane %v2924_v58, 7  ;;  %v2935_v48 = vrot.slane %v2933_v54, 7  ;;  %v2936_v18 = vshll.u32 %v2830_v62, 16  ;;  %v2946_v14 = vshrl.u32 %v2832_v41, 16  ;;  %v2836_v22 = vld [vmem:[#allocation3 + $0x84] sm:$0xf] }
 0x321   : > { %3408 = vmatpush.bf16.msrb.mxu3 %v5956_v53  ;;  %v7187_v37 = vpack.c.b16 %v3086_v34, %v3085_v30  ;;  %v5372_v27 = vrot.slane %v2919_v43, 11  ;;  %v5966_v53 = vld [vmem:[%s7625_s5 + $0x68] sm:$0xff]  ;;  %v2955_v50 = vshrl.u32 %v2833_v8, 16  ;;  %v2949_v35 = vshll.u32 %v2832_v41, 16  ;;  %v2838_v54 = vld [vmem:[#allocation3 + $0x98] sm:$0xf] }
 0x322   : > { %v2929_v51 = vor.u32 %v2927_v0, %v2926_v21  ;;  %v2931_v44 = vrot.slane %v2926_v21, 4  ;;  %v2938_v2 = vor.u32 %v2936_v18, %v2935_v48  ;;  %v2958_v25 = vshll.u32 %v2833_v8, 16  ;;  %v5963_v41 = vld [vmem:[%s7625_s5 + $0x50] sm:$0xff] }
 0x323   : > { %3168 = vmatpush.bf16.msra.mxu1 %v5947_v1  ;;  %v2941_v1 = vshrl.u32 %v2831_v59, 16  ;;  %v2957_v16 = vrot.slane %v2955_v50, 7  ;;  %v2977_v55 = vshrl.u32 %v2836_v22, 16  ;;  %v2980_v31 = vshll.u32 %v2836_v22, 16  ;;  %v2841_v8 = vld [vmem:[#allocation3 + $0xb0] sm:$0xf] }
 0x324   : > { %3269 = vmatpush.bf16.msra.mxu2 %v5939_v61  ;;  %v2930_v29 = vsel %vm6360_vm2, %v5372_v27, %v2929_v51  ;;  %v2939_v49 = vsel %vm6360_vm2, %v2931_v44, %v2938_v2  ;;  %v2948_v61 = vrot.slane %v2946_v14, 7  ;;  %v2990_v43 = vshrl.u32 %v2838_v54, 16  ;;  %v5971_v51 = vld [vmem:[%s7625_s5 + $0x110] sm:$0xff]  ;;  %v2840_v59 = vld [vmem:[#allocation3 + $0xac] sm:$0x8] }
 0x325   : > { %3409 = vmatpush.bf16.msrb.mxu3 %v5955_v33  ;;  %v3087_v10 = vunpack.c.l.b16 %v2930_v29  ;;  %v3088_v52 = vunpack.c.l.b16 %v2939_v49  ;;  %v5973_v33 = vld [vmem:[%s7625_s5 + $0x120] sm:$0xff]  ;;  %v5373_v60 = vrot.slane %v2941_v1, 11  ;;  %v2960_v56 = vor.u32 %v2958_v25, %v2957_v16  ;;  %v2842_v14 = vld [vmem:[#allocation3 + $0xb4] sm:$0xf] }
 0x326   : > { %v2951_v4 = vor.u32 %v2949_v35, %v2948_v61  ;;  %v2953_v20 = vrot.slane %v2948_v61, 4  ;;  %v2979_v47 = vrot.slane %v2977_v55, 7  ;;  %v2992_v48 = vrot.slane %v2990_v43, 7  ;;  %v5983_v22 = vld [vmem:[%s7625_s5 + $0x1f0] sm:$0xff]  ;;  %v2845_v55 = vld [vmem:[#allocation3 + $0xcc] sm:$0xf] }
 0x327   : > { %3169 = vmatpush.bf16.msra.mxu1 %v5946_v11  ;;  %v3101_v45 = vpack.c.b16 %v3088_v52, %v3087_v10  ;;  %v2993_v18 = vshll.u32 %v2838_v54, 16  ;;  %v3012_v50 = vshrl.u32 %v2841_v8, 16  ;;  %v3021_v1 = vshrl.u32 %v2842_v14, 16  ;;  %v5990_v43 = vld [vmem:[%s7625_s5 + $0xa8] sm:$0xff] }
 0x328   : > { %3270 = vmatpush.bf16.msra.mxu2 %v5938_v63  ;;  %v2952_v7 = vsel %vm6360_vm2, %v5373_v60, %v2951_v4  ;;  %v2961_v11 = vsel %vm6360_vm2, %v2953_v20, %v2960_v56  ;;  %v2835_v63 = vld [vmem:[#allocation3 + $0x80] sm:$0xf]  ;;  %v3015_v16 = vshll.u32 %v2841_v8, 16  ;;  %v5970_v60 = vld [vmem:[%s7625_s5 + $0x108] sm:$0xff] }
 0x329   : > { %3410 = vmatpush.bf16.msrb.mxu3 %v5954_v24  ;;  %v3089_v39 = vunpack.c.l.b16 %v2952_v7  ;;  %v3090_v32 = vunpack.c.l.b16 %v2961_v11  ;;  %v2834_v24 = vld [vmem:[#allocation3 + $0x7c] sm:$0x8]  ;;  %v2968_v13 = vshrl.u32 %v2835_v63, 16  ;;  %v2971_v38 = vshll.u32 %v2835_v63, 16  ;;  %v5962_v11 = vld [vmem:[%s7625_s5 + $0x48] sm:$0xff] }
 0x32a   : > { %v2963_v62 = vshrl.u32 %v2834_v24, 16  ;;  %v2995_v2 = vor.u32 %v2993_v18, %v2992_v48  ;;  %v3014_v35 = vrot.slane %v3012_v50, 7  ;;  %v3023_v25 = vrot.slane %v3021_v1, 7  ;;  %v5984_v7 = vld [vmem:[%s7625_s5 + $0x1f8] sm:$0xff]  ;;  %v3920_v50 = vld [vmem:[#allocation3 + $0xc] sm:$0xf] }
 0x32b   : > { %3170 = vmatpush.bf16.msra.mxu1 %v5945_v15  ;;  %v3102_v36 = vpack.c.b16 %v3090_v32, %v3089_v39  ;;  %v2970_v46 = vrot.slane %v2968_v13, 7  ;;  %v5972_v15 = vld [vmem:[%s7625_s5 + $0x118] sm:$0xff]  ;;  %v5991_v39 = vld [vmem:[%s7625_s5 + $0xb0] sm:$0xff]  ;;  %v2844_v13 = vld [vmem:[#allocation3 + $0xc8] sm:$0xf] }
 0x32c   : > { %3271 = vmatpush.bf16.msra.mxu2 %v5937_v6  ;;  %v5374_v6 = vrot.slane %v2963_v62, 11  ;;  %v3017_v20 = vor.u32 %v3015_v16, %v3014_v35  ;;  %v3019_v56 = vrot.slane %v3014_v35, 4  ;;  %v5992_v63 = vld [vmem:[%s7625_s5 + $0xb8] sm:$0xff]  ;;  %v5987_v35 = vld [vmem:[%s7625_s5 + $0x90] sm:$0xff] }
 0x32d   : > { %3411 = vmatpush.bf16.msrb.mxu3 %v5953_v23  ;;  %v2973_v30 = vor.u32 %v2971_v38, %v2970_v46  ;;  %v2975_v34 = vrot.slane %v2970_v46, 4  ;;  %v2982_v23 = vor.u32 %v2980_v31, %v2979_v47  ;;  %4241 = vmatpush.bf16.msra.mxu0 %v5992_v63  ;;  %v2843_v38 = vld [vmem:[#allocation3 + $0xc4] sm:$0x8]  ;;  %v3050_v47 = vshrl.u32 %v2844_v13, 16  ;;  %v3921_v63 = vld [vmem:[#allocation3 + $0x10] sm:$0x1] }
 0x32e   : > { %3171 = vmatmul.bf16.vlgmr.msra.gmra.mxu1 %v3099_v26  ;;  %v3059_v31 = vshrl.u32 %v2845_v55, 16 }
 0x32f   : > { %3582 = vmatpush.bf16.msrb.mxu1 %v5968_v42  ;;  %3272 = vmatmul.bf16.vlgmr.msra.gmra.mxu2 %v3214_v17  ;;  %v2974_v19 = vsel %vm6360_vm2, %v5374_v6, %v2973_v30  ;;  %v2983_v58 = vsel %vm6360_vm2, %v2975_v34, %v2982_v23  ;;  %v2839_v42 = vld [vmem:[#allocation3 + $0x9c] sm:$0xf]  ;;  %v3045_v30 = vshrl.u32 %v2843_v38, 16  ;;  %v3052_v34 = vrot.slane %v3050_v47, 7 }
 0x330   : > { %3718 = vmatpush.bf16.msrb.mxu2 %v5976_v5  ;;  %3412 = vmatmul.bf16.vlgmr.msrb.gmra.mxu3 %v7187_v37  ;;  %v5964_v5 = vld [vmem:[%s7625_s5 + $0x58] sm:$0xff]  ;;  %v3092_v17 = vunpack.c.l.b16 %v2983_v58  ;;  %v3002_v27 = vshll.u32 %v2839_v42, 16  ;;  %v3053_v23 = vshll.u32 %v2844_v13, 16  ;;  %v5969_v58 = vld [vmem:[%s7625_s5 + $0x100] sm:$0xff] }
 0x331   : > { %3854 = vmatpush.bf16.msra.mxu3 %v5984_v7  ;;  %4242 = vmatpush.bf16.msra.mxu0 %v5991_v39  ;;  %v5377_v54 = vrot.slane %v3045_v30, 11 }
 0x333   : > { %3583 = vmatpush.bf16.msrb.mxu1 %v5967_v57 }
 0x334   : > { %3719 = vmatpush.bf16.msrb.mxu2 %v5975_v9  ;;  %v2999_v9 = vshrl.u32 %v2839_v42, 16  ;;  %v3055_v42 = vor.u32 %v3053_v23, %v3052_v34 }
 0x335   : > { %3855 = vmatpush.bf16.msra.mxu3 %v5983_v22  ;;  %4243 = vmatpush.bf16.msra.mxu0 %v5990_v43 }
 0x336   : > { %v3001_v57 = vrot.slane %v2999_v9, 7  ;;  %v5961_v9 = vld [vmem:[%s7625_s5 + $0x40] sm:$0xff]  ;;  %v3056_v18 = vsel %vm6360_vm2, %v5377_v54, %v3055_v42 }
 0x337   : > { %3584 = vmatpush.bf16.msrb.mxu1 %v5966_v53  ;;  %v3922_v42 = vld [vmem:[#allocation3 + $0x20] sm:$0xf] }
 0x338   : > { %3720 = vmatpush.bf16.msrb.mxu2 %v5974_v28  ;;  %v2997_v28 = vrot.slane %v2992_v48, 4  ;;  %v3004_v53 = vor.u32 %v3002_v27, %v3001_v57  ;;  %v2847_v48 = vld [vmem:[#allocation3 + $0xe0] sm:$0xf]  ;;  %v2848_v27 = vld [vmem:[#allocation3 + $0xe4] sm:$0xf] }
 0x339   : > { %v3331_v1 = vshll.u32 %v2848_v27, 16 }
 0x33a   : > { %v3005_v49 = vsel %vm6360_vm2, %v2997_v28, %v3004_v53  ;;  %v3097_v28 = vunpack.c.l.b16 %v3056_v18 }
 0x33b   : > { %3585 = vmatpush.bf16.msrb.mxu1 %v5965_v3  ;;  %v3094_v52 = vunpack.c.l.b16 %v3005_v49 }
 0x33c   : > { %3721 = vmatpush.bf16.msrb.mxu2 %v5973_v33  ;;  %v3024_v33 = vshll.u32 %v2842_v14, 16 }
 0x33e   : > { %3176 = vmatmul.bf16.gmra.mxu1 %v7187_v37  ;;  %v3026_v3 = vor.u32 %v3024_v33, %v3023_v25  ;;  %v3962_v33 = vshll.u32 %v3920_v50, 16 }
 0x33f   : > { %3277 = vmatmul.bf16.gmra.mxu2 %v3099_v26  ;;  %3586 = vmatpush.bf16.msrb.mxu1 %v5964_v5  ;;  %v3091_v26 = vunpack.c.l.b16 %v2974_v19  ;;  %v3061_v5 = vrot.slane %v3059_v31, 7  ;;  %v3062_v19 = vshll.u32 %v2845_v55, 16  ;;  %v3972_v55 = vshll.u32 %v3921_v63, 16 }
 0x340   : > { %3417 = vmatmul.bf16.gmra.mxu3 %v3101_v45  ;;  %3722 = vmatpush.bf16.msrb.mxu2 %v5972_v15  ;;  %v3027_v24 = vsel %vm6360_vm2, %v3019_v56, %v3026_v3  ;;  %v5981_v15 = vld [vmem:[%s7625_s5 + $0x1e0] sm:$0xff]  ;;  %v3964_v56 = vrot.slane %v3962_v33, 5 }
 0x341   : > { %v7228_v21 = vpack.c.b16 %v3092_v17, %v3091_v26  ;;  %v3096_v46 = vunpack.c.l.b16 %v3027_v24  ;;  %v3057_v26 = vrot.slane %v3052_v34, 4  ;;  %v3064_v17 = vor.u32 %v3062_v19, %v3061_v5  ;;  %v5986_v24 = vld [vmem:[%s7625_s5 + $0x88] sm:$0xff] }
 0x343   : > { %3587 = vmatpush.bf16.msrb.mxu1 %v5963_v41  ;;  %v3065_v57 = vsel %vm6360_vm2, %v3057_v26, %v3064_v17  ;;  %v2846_v41 = vld [vmem:[#allocation3 + $0xdc] sm:$0x8]  ;;  %v3923_v26 = vld [vmem:[#allocation3 + $0x24] sm:$0xf]  ;;  %v3977_v17 = vshrl.u32 %v3922_v42, 16 }
 0x344   : > { %3723 = vmatpush.bf16.msrb.mxu2 %v5971_v51  ;;  %v3319_v51 = vshrl.u32 %v2847_v48, 16  ;;  %v3098_v53 = vunpack.c.l.b16 %v3065_v57  ;;  %v3314_v49 = vshrl.u32 %v2846_v41, 16  ;;  %v3986_v43 = vshll.u32 %v3923_v26, 16  ;;  %v6007_v57 = vld [vmem:[%s7625_s5 + $0x230] sm:$0xff] }
 0x346   : > { %v3321_v8 = vrot.slane %v3319_v51, 7  ;;  %v3106_v14 = vpack.c.b16 %v3098_v53, %v3097_v28  ;;  %v5458_v3 = vrot.slane %v3314_v49, 11 }
 0x347   : > { %3588 = vmatpush.bf16.msrb.mxu1 %v5962_v11  ;;  %v6008_v11 = vld [vmem:[%s7625_s5 + $0x238] sm:$0xff] }
 0x348   : > { %3724 = vmatpush.bf16.msrb.mxu2 %v5970_v60  ;;  %v3966_v60 = vshrl.u32 %v3920_v50, 16  ;;  %v3326_v39 = vrot.slane %v3321_v8, 4  ;;  %v3925_v50 = vld [vmem:[#allocation3 + $0x38] sm:$0xf] }
 0x34a   : > { %v3968_v22 = vrot.slane %v3966_v60, 4 }
 0x34b   : > { %3589 = vmatpush.bf16.msrb.mxu1 %v5961_v9  ;;  %v3990_v9 = vshrl.u32 %v3923_v26, 16 }
 0x34c   : > { %3725 = vmatpush.bf16.msrb.mxu2 %v5969_v58 }
 0x34d   : > { %v3992_v18 = vrot.slane %v3990_v9, 4 }
 0x34e   : > { %3181 = vmatmul.bf16.gmra.mxu1 %v3101_v45 }
 0x34f   : > { %3282 = vmatmul.bf16.gmra.mxu2 %v7187_v37  ;;  %v2837_v37 = vld [vmem:[#allocation3 + $0x94] sm:$0x8] }
 0x350   : > { %3422 = vmatmul.bf16.gmra.mxu3 %v3102_v36  ;;  %v2985_v0 = vshrl.u32 %v2837_v37, 16  ;;  %v5980_v37 = vld [vmem:[%s7625_s5 + $0x1d8] sm:$0xff]  ;;  %4557 = vmatpush.bf16.msra.mxu2 %v6008_v11  ;;  %v3927_v11 = vld [vmem:[#allocation3 + $0x40] sm:$0x1] }
 0x352   : > { %v5375_v44 = vrot.slane %v2985_v0, 11  ;;  %v5989_v0 = vld [vmem:[%s7625_s5 + $0xa0] sm:$0xff] }
 0x353   : > { %4244 = vmatpush.bf16.msra.mxu0 %v5989_v0 }
 0x354   : > { %v2996_v29 = vsel %vm6360_vm2, %v5375_v44, %v2995_v2  ;;  %v5978_v44 = vld [vmem:[%s7625_s5 + $0x1c8] sm:$0xff]  ;;  %v5988_v2 = vld [vmem:[%s7625_s5 + $0x98] sm:$0xff]  ;;  %4558 = vmatpush.bf16.msra.mxu2 %v6007_v57  ;;  %v6005_v57 = vld [vmem:[%s7625_s5 + $0x220] sm:$0xff] }
 0x355   : > { %v3093_v10 = vunpack.c.l.b16 %v2996_v29  ;;  %v3328_v29 = vshrl.u32 %v2848_v27, 16  ;;  %v3924_v27 = vld [vmem:[#allocation3 + $0x28] sm:$0x1] }
 0x357   : > { %v7241_v61 = vpack.c.b16 %v3094_v52, %v3093_v10  ;;  %4245 = vmatpush.bf16.msra.mxu0 %v5988_v2  ;;  %v3322_v10 = vshll.u32 %v2847_v48, 16  ;;  %v3330_v52 = vrot.slane %v3328_v29, 7  ;;  %v3988_v48 = vrot.slane %v3986_v43, 5  ;;  %v5999_v29 = vld [vmem:[%s7625_s5 + $0x170] sm:$0xff] }
 0x358   : > { %v3996_v2 = vshll.u32 %v3924_v27, 16  ;;  %v3930_v27 = vld [vmem:[#allocation3 + $0x58] sm:$0x1] }
 0x359   : > { %v3324_v7 = vor.u32 %v3322_v10, %v3321_v8 }
 0x35a   : > { %v3998_v41 = vrot.slane %v3996_v2, 5  ;;  %v4044_v2 = vshll.u32 %v3930_v27, 16 }
 0x35b   : > { %4246 = vmatpush.bf16.msra.mxu0 %v5987_v35  ;;  %v3325_v47 = vsel %vm6360_vm2, %v5458_v3, %v3324_v7  ;;  %v7348_v35 = vld [vmem:[#allocation3 + $0x38] sm:$0xff]  ;;  %v6006_v7 = vld [vmem:[%s7625_s5 + $0x228] sm:$0xff] }
 0x35c   : > { %v3352_v19 = vunpack.c.l.b16 %v3325_v47  ;;  %4559 = vmatpush.bf16.msra.mxu2 %v6006_v7 }
 0x35e   : > { %3186 = vmatmul.bf16.gmra.mxu1 %v3102_v36 }
 0x35f   : > { %3287 = vmatmul.bf16.gmra.mxu2 %v3101_v45  ;;  %v3007_v45 = vshrl.u32 %v2840_v59, 16  ;;  %v3919_v59 = vld [vmem:[#allocation3 + $0x8] sm:$0xf]  ;;  %4247 = vmatpush.bf16.msra.mxu0 %v5986_v24 }
 0x360   : > { %3427 = vmatmul.bf16.gmra.mxu3 %v7228_v21  ;;  %v3953_v16 = vshrl.u32 %v3919_v59, 16  ;;  %v3956_v25 = vshll.u32 %v3919_v59, 16  ;;  %v5928_v59 = vld [vmem:[#allocation3 + $0x20] sm:$0xff]  ;;  %4560 = vmatpush.bf16.msra.mxu2 %v6005_v57 }
 0x361   : > { %v5376_v4 = vrot.slane %v3007_v45, 11  ;;  %v5977_v45 = vld [vmem:[%s7625_s5 + $0x1c0] sm:$0xff] }
 0x362   : > { %v3935_v57 = vld [vmem:[#allocation3 + $0x84] sm:$0xf] }
 0x363   : > { %v3018_v32 = vsel %vm6360_vm2, %v5376_v4, %v3017_v20  ;;  %v3955_v4 = vrot.slane %v3953_v16, 4  ;;  %v3958_v20 = vrot.slane %v3956_v25, 5  ;;  %v4001_v16 = vshrl.u32 %v3925_v50, 16 }
 0x364   : > { %v3095_v62 = vunpack.c.l.b16 %v3018_v32  ;;  %v3333_v32 = vor.u32 %v3331_v1, %v3330_v52  ;;  %v5927_v52 = vld [vmem:[#allocation3 + $0x8] sm:$0xff]  ;;  %v3926_v1 = vld [vmem:[#allocation3 + $0x3c] sm:$0xf]  ;;  %v4004_v25 = vshll.u32 %v3925_v50, 16 }
 0x365   : > { %v3959_v13 = vor.u32 %v3958_v20, %v3955_v4  ;;  %v4010_v33 = vshll.u32 %v3926_v1, 16  ;;  %v4014_v60 = vshrl.u32 %v3926_v1, 16  ;;  %v4003_v4 = vrot.slane %v4001_v16, 4 }
 0x366   : > { %v7273_v6 = vpack.c.b16 %v3096_v46, %v3095_v62  ;;  %v3974_v62 = vrot.slane %v3972_v55, 5  ;;  %v6000_v46 = vld [vmem:[%s7625_s5 + $0x178] sm:$0xff]  ;;  %v3334_v31 = vsel %vm6360_vm2, %v3326_v39, %v3333_v32  ;;  %v4006_v20 = vrot.slane %v4004_v25, 5 }
 0x367   : > { %4399 = vmatpush.bf16.msra.mxu1 %v6000_v46  ;;  %v3353_v58 = vunpack.c.l.b16 %v3334_v31  ;;  %v4016_v3 = vrot.slane %v4014_v60, 4  ;;  %v4020_v39 = vshll.u32 %v3927_v11, 16 }
 0x368   : > { %v4007_v63 = vor.u32 %v4006_v20, %v4003_v4  ;;  %v3931_v4 = vld [vmem:[#allocation3 + $0x68] sm:$0xf]  ;;  %v3932_v20 = vld [vmem:[#allocation3 + $0x6c] sm:$0xf] }
 0x369   : > { %v3354_v40 = vpack.c.b16 %v3353_v58, %v3352_v19  ;;  %v4022_v55 = vrot.slane %v4020_v39, 5  ;;  %v3928_v58 = vld [vmem:[#allocation3 + $0x50] sm:$0xf]  ;;  %v4049_v7 = vshrl.u32 %v3931_v4, 16  ;;  %v4052_v11 = vshll.u32 %v3931_v4, 16 }
 0x36a   : > { %v4008_v24 = vrot.slane %v4007_v63, 4  ;;  %v4025_v26 = vshrl.u32 %v3928_v58, 16  ;;  %v4058_v63 = vshll.u32 %v3932_v20, 16 }
 0x36b   : > { %4400 = vmatpush.bf16.msra.mxu1 %v5999_v29  ;;  %v4046_v29 = vrot.slane %v4044_v2, 5 }
 0x36e   : > { %3191 = vmatmul.bf16.gmra.mxu1 %v7228_v21 }
 0x36f   : > { %3292 = vmatmul.bf16.gmra.mxu2 %v3102_v36  ;;  %v5982_v36 = vld [vmem:[%s7625_s5 + $0x1e8] sm:$0xff] }
 0x370   : > { %3432 = vmatmul.bf16.gmra.mxu3 %v7241_v61 }
 0x371   : > { %3856 = vmatpush.bf16.msra.mxu3 %v5982_v36  ;;  %v3969_v36 = vor.u32 %v3968_v22, %v3964_v56 }
 0x373   : > { %v3970_v38 = vrot.slane %v3969_v36, 4 }
 0x375   : > { %3857 = vmatpush.bf16.msra.mxu3 %v5981_v15  ;;  %v5985_v15 = vld [vmem:[%s7625_s5 + $0x80] sm:$0xff]  ;;  %v3975_v34 = vsel %vm6695_vm5, %v3970_v38, %v3974_v62  ;;  %v5998_v62 = vld [vmem:[%s7625_s5 + $0x168] sm:$0xff] }
 0x376   : > { %4248 = vmatpush.bf16.msra.mxu0 %v5985_v15  ;;  %v4162_v5 = vunpack.c.l.b16 %v3975_v34  ;;  %4401 = vmatpush.bf16.msra.mxu1 %v5998_v62 }
 0x379   : > { %3858 = vmatpush.bf16.msra.mxu3 %v5980_v37  ;;  %v3980_v37 = vshll.u32 %v3922_v42, 16  ;;  %v7366_v42 = vld [vmem:[#allocation3 + $0x50] sm:$0xff] }
 0x37b   : > { %v3982_v0 = vrot.slane %v3980_v37, 5 }
 0x37e   : > { %3196 = vmatmul.bf16.gmra.mxu1 %v7241_v61 }
 0x37f   : > { %3297 = vmatmul.bf16.gmra.mxu2 %v7228_v21  ;;  %v5979_v21 = vld [vmem:[%s7625_s5 + $0x1d0] sm:$0xff] }
 0x380   : > { %3437 = vmatmul.bf16.gmra.mxu3 %v7273_v6 }
 0x381   : > { %3859 = vmatpush.bf16.msra.mxu3 %v5979_v21  ;;  %v3979_v21 = vrot.slane %v3977_v17, 4  ;;  %v4028_v17 = vshll.u32 %v3928_v58, 16 }
 0x383   : > { %v3983_v51 = vor.u32 %v3982_v0, %v3979_v21  ;;  %v4027_v21 = vrot.slane %v4025_v26, 4  ;;  %v4030_v0 = vrot.slane %v4028_v17, 5 }
 0x385   : > { %3860 = vmatpush.bf16.msra.mxu3 %v5978_v44  ;;  %v3993_v44 = vor.u32 %v3992_v18, %v3988_v48  ;;  %v3984_v28 = vrot.slane %v3983_v51, 4  ;;  %v4031_v51 = vor.u32 %v4030_v0, %v4027_v21 }
 0x387   : > { %v3994_v53 = vrot.slane %v3993_v44, 4 }
 0x389   : > { %3861 = vmatpush.bf16.msra.mxu3 %v5977_v45  ;;  %v3999_v49 = vsel %vm6695_vm5, %v3994_v53, %v3998_v41  ;;  %v4032_v53 = vrot.slane %v4031_v51, 4  ;;  %v7409_v51 = vld [vmem:[#allocation3 + $0x80] sm:$0xff] }
 0x38e   : > { %3201 = vmatmul.bf16.gmra.mxu1 %v7273_v6 }
 0x38f   : > { %3302 = vmatmul.bf16.gmra.mxu2 %v7241_v61  ;;  %v3960_v61 = vrot.slane %v3959_v13, 4 }
 0x390   : > { %3442 = vmatmul.bf16.gmra.mxu3 %v3106_v14 }
 0x391   : > { %v3965_v30 = vsel %vm6695_vm5, %v3960_v61, %v3964_v56  ;;  %v4012_v56 = vrot.slane %v4010_v33, 5 }
 0x392   : > { %v4161_v23 = vunpack.c.l.b16 %v3965_v30 }
 0x393   : > { %v4017_v22 = vor.u32 %v4016_v3, %v4012_v56  ;;  %v4013_v38 = vsel %vm6695_vm5, %v4008_v24, %v4012_v56  ;;  %v7387_v3 = vld [vmem:[#allocation3 + $0x68] sm:$0xff]  ;;  %v4054_v24 = vrot.slane %v4052_v11, 5 }
 0x394   : > { %v4177_v54 = vpack.c.b16 %v4162_v5, %v4161_v23  ;;  %v4165_v15 = vunpack.c.l.b16 %v4013_v38 }
 0x395   : > { %v4018_v13 = vrot.slane %v4017_v22, 4  ;;  %v4062_v22 = vshrl.u32 %v3932_v20, 16 }
 0x396   : > { %4249 = vmatmul.bf16.vlgmr.msra.gmra.mxu0 %v4177_v54  ;;  %v3929_v54 = vld [vmem:[#allocation3 + $0x54] sm:$0xf] }
 0x397   : > { %v4023_v47 = vsel %vm6695_vm5, %v4018_v13, %v4022_v55  ;;  %v4034_v37 = vshll.u32 %v3929_v54, 16  ;;  %v4038_v43 = vshrl.u32 %v3929_v54, 16  ;;  %v4060_v13 = vrot.slane %v4058_v63, 5 }
 0x398   : > { %v4166_v30 = vunpack.c.l.b16 %v4023_v47  ;;  %v4064_v55 = vrot.slane %v4062_v22, 4 }
 0x399   : > { %v4040_v18 = vrot.slane %v4038_v43, 4 }
 0x39a   : > { %v7363_v34 = vpack.c.b16 %v4166_v30, %v4165_v15 }
 0x39e   : > { %3206 = vmatmul.bf16.gmra.mxu1 %v3106_v14  ;;  %v4164_v14 = vunpack.c.l.b16 %v3999_v49 }
 0x39f   : > { %3307 = vmatmul.bf16.gmra.mxu2 %v7273_v6  ;;  %v3989_v6 = vsel %vm6695_vm5, %v3984_v28, %v3988_v48  ;;  %v4036_v48 = vrot.slane %v4034_v37, 5 }
 0x3a0   : > { %3447 = vmatmul.bf16.gmra.mxu3 %v3354_v40  ;;  %v4163_v8 = vunpack.c.l.b16 %v3989_v6 }
 0x3a1   : > { %v4041_v44 = vor.u32 %v4040_v18, %v4036_v48  ;;  %v3934_v18 = vld [vmem:[#allocation3 + $0x80] sm:$0xf] }
 0x3a2   : > { %v7345_v10 = vpack.c.b16 %v4164_v14, %v4163_v8  ;;  %v5997_v8 = vld [vmem:[%s7625_s5 + $0x160] sm:$0xff]  ;;  %v4076_v2 = vshll.u32 %v3934_v18, 16 }
 0x3a3   : > { %v4042_v41 = vrot.slane %v4041_v44, 4  ;;  %4402 = vmatpush.bf16.msra.mxu1 %v5997_v8  ;;  %v4073_v44 = vshrl.u32 %v3934_v18, 16 }
 0x3a6   : > { %4254 = vmatmul.bf16.gmra.mxu0 %v7345_v10 }
 0x3ab   : > { %v3172_v45 = vpop.f32.mrf.mxu1 }
 0x3ae   : > { %3590 = vmatmul.bf16.vlgmr.msrb.gmra.mxu1 %v5927_v52  ;;  %v4037_v52 = vsel %vm6695_vm5, %v4032_v53, %v4036_v48  ;;  %v4086_v53 = vshrl.u32 %v3935_v57, 16 }
 0x3af   : > { %3726 = vmatmul.bf16.vlgmr.msrb.gmra.mxu2 %v5928_v59  ;;  %v4167_v1 = vunpack.c.l.b16 %v4037_v52  ;;  %v3936_v52 = vld [vmem:[#allocation3 + $0x88] sm:$0x1] }
 0x3b0   : > { %3862 = vmatmul.bf16.vlgmr.msra.gmra.mxu3 %v7348_v35  ;;  %v4088_v8 = vrot.slane %v4086_v53, 4 }
 0x3b2   : > { %v3273_v32 = vpop.f32.mrf.mxu2 }
 0x3b3   : > { %v3274_v36 = vadd.f32 %v3273_v32, %v3172_v45  ;;  %v3413_v61 = vpop.f32.mrf.mxu3  ;;  %v3174_v46 = vpop.f32.mrf.mxu1  ;;  %v4051_v32 = vrot.slane %v4049_v7, 4 }
 0x3b5   : > { %v7361_v31 = vadd.f32 %v3413_v61, %v3274_v36  ;;  %v6004_v36 = vld [vmem:[%s7625_s5 + $0x218] sm:$0xff]  ;;  %v3933_v61 = vld [vmem:[#allocation3 + $0x70] sm:$0x1]  ;;  %v4055_v62 = vor.u32 %v4054_v24, %v4051_v32 }
 0x3b6   : > { %4259 = vmatmul.bf16.gmra.mxu0 %v7363_v34  ;;  %v4068_v38 = vshll.u32 %v3933_v61, 16  ;;  %4561 = vmatpush.bf16.msra.mxu2 %v6004_v36 }
 0x3b7   : > { %v4056_v15 = vrot.slane %v4055_v62, 4  ;;  %v3937_v62 = vld [vmem:[#allocation3 + $0x98] sm:$0xf] }
 0x3b9   : > { %v4061_v54 = vsel %vm6695_vm5, %v4056_v15, %v4060_v13  ;;  %v4097_v15 = vshrl.u32 %v3937_v62, 16 }
 0x3ba   : > { %v3275_v23 = vpop.f32.mrf.mxu2  ;;  %v4169_v17 = vunpack.c.l.b16 %v4061_v54 }
 0x3bb   : > { %v3276_v5 = vadd.f32 %v3275_v23, %v3174_v46  ;;  %v3415_v19 = vpop.f32.mrf.mxu3  ;;  %v3177_v40 = vpop.f32.mrf.mxu1  ;;  %v4065_v46 = vor.u32 %v4064_v55, %v4060_v13  ;;  %v4070_v23 = vrot.slane %v4068_v38, 5 }
 0x3bd   : > { %v7368_v9 = vadd.f32 %v3415_v19, %v3276_v5  ;;  %v4066_v30 = vrot.slane %v4065_v46, 4  ;;  %v3938_v46 = vld [vmem:[#allocation3 + $0x9c] sm:$0xf] }
 0x3be   : > { %3595 = vmatmul.bf16.gmra.mxu1 %v5928_v59  ;;  %v4047_v59 = vsel %vm6695_vm5, %v4042_v41, %v4046_v29  ;;  %v4075_v29 = vrot.slane %v4073_v44, 4 }
 0x3bf   : > { %3731 = vmatmul.bf16.gmra.mxu2 %v7348_v35  ;;  %v4168_v45 = vunpack.c.l.b16 %v4047_v59 }
 0x3c0   : > { %3867 = vmatmul.bf16.gmra.mxu3 %v7366_v42 }
 0x3c1   : > { %v7384_v16 = vpack.c.b16 %v4168_v45, %v4167_v1  ;;  %v4092_v45 = vshll.u32 %v3936_v52, 16 }
 0x3c2   : > { %v3278_v28 = vpop.f32.mrf.mxu2 }
 0x3c3   : > { %v3279_v6 = vadd.f32 %v3278_v28, %v3177_v40  ;;  %v3418_v49 = vpop.f32.mrf.mxu3  ;;  %v3179_v14 = vpop.f32.mrf.mxu1  ;;  %v4071_v40 = vsel %vm6695_vm5, %v4066_v30, %v4070_v23  ;;  %v4082_v28 = vshll.u32 %v3935_v57, 16  ;;  %v4094_v4 = vrot.slane %v4092_v45, 5 }
 0x3c4   : > { %v4170_v37 = vunpack.c.l.b16 %v4071_v40  ;;  %v4100_v30 = vshll.u32 %v3937_v62, 16  ;;  %v4106_v23 = vshll.u32 %v3938_v46, 16 }
 0x3c5   : > { %v7382_v50 = vadd.f32 %v3418_v49, %v3279_v6  ;;  %v4078_v6 = vrot.slane %v4076_v2, 5  ;;  %v4084_v49 = vrot.slane %v4082_v28, 5 }
 0x3c6   : > { %4264 = vmatmul.bf16.gmra.mxu0 %v7384_v16  ;;  %v7406_v43 = vpack.c.b16 %v4170_v37, %v4169_v17  ;;  %v4108_v54 = vrot.slane %v4106_v23, 5  ;;  %v6002_v17 = vld [vmem:[%s7625_s5 + $0x208] sm:$0xff]  ;;  %v3939_v37 = vld [vmem:[#allocation3 + $0xa0] sm:$0x1] }
 0x3c7   : > { %v4079_v59 = vor.u32 %v4078_v6, %v4075_v29  ;;  %v4089_v1 = vor.u32 %v4088_v8, %v4084_v49 }
 0x3ca   : > { %v3280_v25 = vpop.f32.mrf.mxu2 }
 0x3cb   : > { %v3281_v33 = vadd.f32 %v3280_v25, %v3179_v14  ;;  %v3420_v60 = vpop.f32.mrf.mxu3  ;;  %v3182_v56 = vpop.f32.mrf.mxu1  ;;  %v6003_v14 = vld [vmem:[%s7625_s5 + $0x210] sm:$0xff] }
 0x3cc   : > { %4562 = vmatpush.bf16.msra.mxu2 %v6003_v14 }
 0x3cd   : > { %v7389_v39 = vadd.f32 %v3420_v60, %v3281_v33  ;;  %v4080_v33 = vrot.slane %v4079_v59, 4  ;;  %v4090_v60 = vrot.slane %v4089_v1, 4 }
 0x3ce   : > { %3600 = vmatmul.bf16.gmra.mxu1 %v7348_v35  ;;  %v5996_v35 = vld [vmem:[%s7625_s5 + $0x158] sm:$0xff] }
 0x3cf   : > { %3736 = vmatmul.bf16.gmra.mxu2 %v7366_v42  ;;  %4403 = vmatpush.bf16.msra.mxu1 %v5996_v35  ;;  %v4085_v11 = vsel %vm6695_vm5, %v4080_v33, %v4084_v49  ;;  %v4095_v63 = vsel %vm6695_vm5, %v4090_v60, %v4094_v4  ;;  %v4099_v35 = vrot.slane %v4097_v15, 4  ;;  %v3941_v33 = vld [vmem:[#allocation3 + $0xb4] sm:$0xf] }
 0x3d0   : > { %3872 = vmatmul.bf16.gmra.mxu3 %v7387_v3  ;;  %v4171_v32 = vunpack.c.l.b16 %v4085_v11  ;;  %v4172_v24 = vunpack.c.l.b16 %v4095_v63  ;;  %4563 = vmatpush.bf16.msra.mxu2 %v6002_v17  ;;  %v5934_v4 = vld [vmem:[#allocation3 + $0xb0] sm:$0xff] }
 0x3d2   : > { %v3283_v47 = vpop.f32.mrf.mxu2  ;;  %v7428_v13 = vpack.c.b16 %v4172_v24, %v4171_v32 }
 0x3d3   : > { %v3284_v5 = vadd.f32 %v3283_v47, %v3182_v56  ;;  %v3423_v19 = vpop.f32.mrf.mxu3  ;;  %v3184_v58 = vpop.f32.mrf.mxu1  ;;  %v7431_v47 = vld [vmem:[#allocation3 + $0x98] sm:$0xff] }
 0x3d5   : > { %v7404_v26 = vadd.f32 %v3423_v19, %v3284_v5  ;;  %v4110_v5 = vshrl.u32 %v3938_v46, 16 }
 0x3d6   : > { %4269 = vmatmul.bf16.gmra.mxu0 %v7406_v43 }
 0x3d7   : > { %v4112_v40 = vrot.slane %v4110_v5, 4 }
 0x3da   : > { %v3285_v21 = vpop.f32.mrf.mxu2 }
 0x3db   : > { %v3286_v0 = vadd.f32 %v3285_v21, %v3184_v58  ;;  %v3425_v48 = vpop.f32.mrf.mxu3  ;;  %v3187_v27 = vpop.f32.mrf.mxu1  ;;  %v4102_v58 = vrot.slane %v4100_v30, 5 }
 0x3dd   : > { %v7411_v41 = vadd.f32 %v3425_v48, %v3286_v0  ;;  %v4103_v21 = vor.u32 %v4102_v58, %v4099_v35  ;;  %v4113_v0 = vor.u32 %v4112_v40, %v4108_v54  ;;  %v4116_v48 = vshll.u32 %v3939_v37, 16 }
 0x3de   : > { %3605 = vmatmul.bf16.gmra.mxu1 %v7366_v42  ;;  %v5995_v42 = vld [vmem:[%s7625_s5 + $0x150] sm:$0xff] }
 0x3df   : > { %3741 = vmatmul.bf16.gmra.mxu2 %v7387_v3  ;;  %4404 = vmatpush.bf16.msra.mxu1 %v5995_v42  ;;  %v4104_v57 = vrot.slane %v4103_v21, 4  ;;  %v4118_v44 = vrot.slane %v4116_v48, 5  ;;  %v4130_v42 = vshll.u32 %v3941_v33, 16 }
 0x3e0   : > { %3877 = vmatmul.bf16.gmra.mxu3 %v7409_v51 }
 0x3e1   : > { %v4109_v29 = vsel %vm6695_vm5, %v4104_v57, %v4108_v54  ;;  %v4132_v24 = vrot.slane %v4130_v42, 5 }
 0x3e2   : > { %v3288_v25 = vpop.f32.mrf.mxu2  ;;  %v4173_v8 = vunpack.c.l.b16 %v4109_v29 }
 0x3e3   : > { %v3289_v20 = vadd.f32 %v3288_v25, %v3187_v27  ;;  %v3428_v56 = vpop.f32.mrf.mxu3  ;;  %v3189_v7 = vpop.f32.mrf.mxu1  ;;  %v4114_v27 = vrot.slane %v4113_v0, 4  ;;  %v3940_v25 = vld [vmem:[#allocation3 + $0xb0] sm:$0xf] }
 0x3e5   : > { %v7426_v22 = vadd.f32 %v3428_v56, %v3289_v20  ;;  %v4119_v6 = vsel %vm6695_vm5, %v4114_v27, %v4118_v44  ;;  %v4121_v20 = vshrl.u32 %v3940_v25, 16  ;;  %v4124_v56 = vshll.u32 %v3940_v25, 16  ;;  %v5936_v25 = vld [vmem:[#allocation3 + $0xe0] sm:$0xff] }
 0x3e6   : > { %4274 = vmatmul.bf16.gmra.mxu0 %v7428_v13  ;;  %v4174_v14 = vunpack.c.l.b16 %v4119_v6 }
 0x3e7   : > { %v4123_v63 = vrot.slane %v4121_v20, 4  ;;  %v4126_v32 = vrot.slane %v4124_v56, 5 }
 0x3e8   : > { %v7450_v52 = vpack.c.b16 %v4174_v14, %v4173_v8 }
 0x3e9   : > { %v4127_v62 = vor.u32 %v4126_v32, %v4123_v63 }
 0x3ea   : > { %v3290_v55 = vpop.f32.mrf.mxu2 }
 0x3eb   : > { %v3291_v36 = vadd.f32 %v3290_v55, %v3189_v7  ;;  %v3430_v61 = vpop.f32.mrf.mxu3  ;;  %v3192_v38 = vpop.f32.mrf.mxu1  ;;  %v4134_v7 = vshrl.u32 %v3941_v33, 16  ;;  %v4128_v30 = vrot.slane %v4127_v62, 4 }
 0x3ed   : > { %v7433_v19 = vadd.f32 %v3430_v61, %v3291_v36  ;;  %v4136_v55 = vrot.slane %v4134_v7, 4  ;;  %v6001_v36 = vld [vmem:[%s7625_s5 + $0x200] sm:$0xff]  ;;  %v3942_v61 = vld [vmem:[#allocation3 + $0xb8] sm:$0x1]  ;;  %v4133_v40 = vsel %vm6695_vm5, %v4128_v30, %v4132_v24 }
 0x3ee   : > { %3610 = vmatmul.bf16.gmra.mxu1 %v7387_v3  ;;  %v5994_v3 = vld [vmem:[%s7625_s5 + $0x148] sm:$0xff]  ;;  %4564 = vmatpush.bf16.msra.mxu2 %v6001_v36  ;;  %v4175_v21 = vunpack.c.l.b16 %v4133_v40 }
 0x3ef   : > { %3746 = vmatmul.bf16.gmra.mxu2 %v7409_v51  ;;  %4405 = vmatpush.bf16.msra.mxu1 %v5994_v3  ;;  %v4137_v46 = vor.u32 %v4136_v55, %v4132_v24 }
 0x3f0   : > { %3882 = vmatmul.bf16.gmra.mxu3 %v7431_v47 }
 0x3f1   : > { %v4138_v23 = vrot.slane %v4137_v46, 4 }
 0x3f2   : > { %v3293_v18 = vpop.f32.mrf.mxu2 }
 0x3f3   : > { %v3294_v2 = vadd.f32 %v3293_v18, %v3192_v38  ;;  %v3433_v28 = vpop.f32.mrf.mxu3  ;;  %v3194_v53 = vpop.f32.mrf.mxu1  ;;  %v4140_v38 = vshll.u32 %v3942_v61, 16 }
 0x3f5   : > { %v7448_v49 = vadd.f32 %v3433_v28, %v3294_v2  ;;  %v4142_v5 = vrot.slane %v4140_v38, 5  ;;  %v5935_v2 = vld [vmem:[#allocation3 + $0xc8] sm:$0xff] }
 0x3f6   : > { %4279 = vmatmul.bf16.gmra.mxu0 %v7450_v52 }
 0x3f7   : > { %v4143_v17 = vsel %vm6695_vm5, %v4138_v23, %v4142_v5 }
 0x3f8   : > { %v4176_v0 = vunpack.c.l.b16 %v4143_v17 }
 0x3fa   : > { %v3295_v59 = vpop.f32.mrf.mxu2  ;;  %v7469_v48 = vpack.c.b16 %v4176_v0, %v4175_v21 }
 0x3fb   : > { %v3296_v1 = vadd.f32 %v3295_v59, %v3194_v53  ;;  %v3435_v45 = vpop.f32.mrf.mxu3  ;;  %v3197_v60 = vpop.f32.mrf.mxu1 }
 0x3fd   : > { %v7453_v11 = vadd.f32 %v3435_v45, %v3296_v1 }
 0x3fe   : > { %3615 = vmatmul.bf16.gmra.mxu1 %v7409_v51  ;;  %v5993_v51 = vld [vmem:[%s7625_s5 + $0x140] sm:$0xff] }
 0x3ff   : > { %3751 = vmatmul.bf16.gmra.mxu2 %v7431_v47  ;;  %4406 = vmatpush.bf16.msra.mxu1 %v5993_v51 }
 0x400   : > { %3887 = vmatmul.bf16.gmra.mxu3 %v5934_v4 }
 0x402   : > { %v3298_v15 = vpop.f32.mrf.mxu2 }
 0x403   : > { %v3299_v35 = vadd.f32 %v3298_v15, %v3197_v60  ;;  %v3438_v58 = vpop.f32.mrf.mxu3  ;;  %v3199_v54 = vpop.f32.mrf.mxu1 }
 0x405   : > { %v7467_v37 = vadd.f32 %v3438_v58, %v3299_v35 }
 0x406   : > { %4284 = vmatmul.bf16.gmra.mxu0 %v7469_v48 }
 0x40a   : > { %v3300_v18 = vpop.f32.mrf.mxu2 }
 0x40b   : > { %v3301_v57 = vadd.f32 %v3300_v18, %v3199_v54  ;;  %v3440_v27 = vpop.f32.mrf.mxu3  ;;  %v3202_v44 = vpop.f32.mrf.mxu1 }
 0x40d   : > { %v7472_v28 = vadd.f32 %v3440_v27, %v3301_v57 }
 0x40e   : > { %3620 = vmatmul.bf16.gmra.mxu1 %v7431_v47 }
 0x40f   : > { %3756 = vmatmul.bf16.gmra.mxu2 %v5934_v4 }
 0x410   : > { %3892 = vmatmul.bf16.gmra.mxu3 %v5935_v2 }
 0x412   : > { %v3303_v3 = vpop.f32.mrf.mxu2 }
 0x413   : > { %v3304_v53 = vadd.f32 %v3303_v3, %v3202_v44  ;;  %v3443_v29 = vpop.f32.mrf.mxu3  ;;  %v3204_v6 = vpop.f32.mrf.mxu1 }
 0x415   : > { %v7475_v8 = vadd.f32 %v3443_v29, %v3304_v53 }
 0x41a   : > { %v3305_v14 = vpop.f32.mrf.mxu2 }
 0x41b   : > { %v3306_v59 = vadd.f32 %v3305_v14, %v3204_v6  ;;  %v3445_v1 = vpop.f32.mrf.mxu3  ;;  %v3207_v45 = vpop.f32.mrf.mxu1 }
 0x41d   : > { %v7477_v33 = vadd.f32 %v3445_v1, %v3306_v59 }
 0x41e   : > { %3625 = vmatmul.bf16.gmra.mxu1 %v5934_v4 }
 0x41f   : > { %3761 = vmatmul.bf16.gmra.mxu2 %v5935_v2 }
 0x420   : > { %3897 = vmatmul.bf16.gmra.mxu3 %v5936_v25 }
 0x422   : > { %v3308_v60 = vpop.f32.mrf.mxu2 }
 0x423   : > { %v3309_v47 = vadd.f32 %v3308_v60, %v3207_v45  ;;  %v3448_v20 = vpop.f32.mrf.mxu3  ;;  %v3209_v56 = vpop.f32.mrf.mxu1 }
 0x425   : > { %v7479_v42 = vadd.f32 %v3448_v20, %v3309_v47  ;;  %v3945_v20 = vld [vmem:[#allocation3 + $0xd0] sm:$0x1] }
 0x42a   : > { %v3310_v7 = vpop.f32.mrf.mxu2 }
 0x42b   : > { %v3311_v63 = vadd.f32 %v3310_v7, %v3209_v56  ;;  %v3450_v32 = vpop.f32.mrf.mxu3  ;;  %v3591_v24 = vpop.f32.mrf.mxu1 }
 0x42c   : > { %v3631_v36 = vadd.f32 %v3591_v24, %v7361_v31 }
 0x42d   : > { %v7481_v55 = vadd.f32 %v3450_v32, %v3311_v63  ;;  %v4326_v32 = vshll.u32 %v3945_v20, 16 }
 0x42e   : > { %4407 = vmatmul.bf16.vlgmr.msra.gmra.mxu1 %v7345_v10 }
 0x42f   : > { %4565 = vmatmul.bf16.vlgmr.msra.gmra.mxu2 %v7363_v34 }
 0x432   : > { %v3727_v4 = vpop.f32.mrf.mxu2 }
 0x433   : > { %v7486_v61 = vadd.f32 %v3727_v4, %v3631_v36  ;;  %v3593_v62 = vpop.f32.mrf.mxu1 }
 0x434   : > { %v3632_v46 = vadd.f32 %v3593_v62, %v7368_v9  ;;  %v4328_v62 = vrot.slane %v4326_v32, 5 }
 0x43a   : > { %v3729_v38 = vpop.f32.mrf.mxu2 }
 0x43b   : > { %v7489_v15 = vadd.f32 %v3729_v38, %v3632_v46  ;;  %v3596_v30 = vpop.f32.mrf.mxu1  ;;  %v3946_v46 = vld [vmem:[#allocation3 + $0xe0] sm:$0xf]  ;;  %v3947_v38 = vld [vmem:[#allocation3 + $0xe4] sm:$0xf] }
 0x43c   : > { %v3633_v23 = vadd.f32 %v3596_v30, %v7382_v50 }
 0x43e   : > { %4412 = vmatmul.bf16.gmra.mxu1 %v7363_v34 }
 0x43f   : > { %4570 = vmatmul.bf16.gmra.mxu2 %v7384_v16 }
 0x442   : > { %v3732_v31 = vpop.f32.mrf.mxu2 }
 0x443   : > { %v7494_v10 = vadd.f32 %v3732_v31, %v3633_v23  ;;  %v3598_v5 = vpop.f32.mrf.mxu1 }
 0x444   : > { %v3634_v35 = vadd.f32 %v3598_v5, %v7389_v39 }
 0x44a   : > { %v3734_v58 = vpop.f32.mrf.mxu2 }
 0x44b   : > { %v7497_v51 = vadd.f32 %v3734_v58, %v3634_v35  ;;  %v3601_v9 = vpop.f32.mrf.mxu1  ;;  %v4468_v58 = vshll.u32 %v3946_v46, 16 }
 0x44c   : > { %v3635_v54 = vadd.f32 %v3601_v9, %v7404_v26  ;;  %v4478_v9 = vshrl.u32 %v3947_v38, 16 }
 0x44e   : > { %4417 = vmatmul.bf16.gmra.mxu1 %v7384_v16 }
 0x44f   : > { %4575 = vmatmul.bf16.gmra.mxu2 %v7406_v43 }
 0x452   : > { %v3737_v50 = vpop.f32.mrf.mxu2 }
 0x453   : > { %v7502_v34 = vadd.f32 %v3737_v50, %v3635_v54  ;;  %v3603_v40 = vpop.f32.mrf.mxu1 }
 0x454   : > { %v3636_v17 = vadd.f32 %v3603_v40, %v7411_v41 }
 0x45a   : > { %v3739_v21 = vpop.f32.mrf.mxu2 }
 0x45b   : > { %v7505_v0 = vadd.f32 %v3739_v21, %v3636_v17  ;;  %v3606_v39 = vpop.f32.mrf.mxu1  ;;  %v4470_v21 = vrot.slane %v4468_v58, 5 }
 0x45c   : > { %v3637_v18 = vadd.f32 %v3606_v39, %v7426_v22  ;;  %v3943_v22 = vld [vmem:[#allocation3 + $0xc8] sm:$0xf] }
 0x45d   : > { %v4307_v29 = vshrl.u32 %v3943_v22, 16  ;;  %v4310_v14 = vshll.u32 %v3943_v22, 16 }
 0x45e   : > { %4422 = vmatmul.bf16.gmra.mxu1 %v7406_v43  ;;  %v3944_v43 = vld [vmem:[#allocation3 + $0xcc] sm:$0xf] }
 0x45f   : > { %4580 = vmatmul.bf16.gmra.mxu2 %v7428_v13  ;;  %v4316_v59 = vshll.u32 %v3944_v43, 16  ;;  %v4320_v1 = vshrl.u32 %v3944_v43, 16  ;;  %v4309_v25 = vrot.slane %v4307_v29, 4  ;;  %v4312_v60 = vrot.slane %v4310_v14, 5  ;;  %v4250_v14 = vpop.f32.mrf.mxu0 }
 0x461   : > { %v4318_v47 = vrot.slane %v4316_v59, 5  ;;  %v4313_v7 = vor.u32 %v4312_v60, %v4309_v25 }
 0x462   : > { %v3742_v26 = vpop.f32.mrf.mxu2 }
 0x463   : > { %v7510_v16 = vadd.f32 %v3742_v26, %v3637_v18  ;;  %v3608_v57 = vpop.f32.mrf.mxu1  ;;  %v4314_v4 = vrot.slane %v4313_v7, 4  ;;  %v4480_v18 = vrot.slane %v4478_v9, 4  ;;  %v3948_v26 = vld [vmem:[#allocation3 + $0xe8] sm:$0x1] }
 0x464   : > { %v3638_v27 = vadd.f32 %v3608_v57, %v7433_v19  ;;  %v3863_v57 = vpop.f32.mrf.mxu3 }
 0x465   : > { %v4319_v31 = vsel %vm6695_vm5, %v4314_v4, %v4318_v47 }
 0x466   : > { %v4347_v50 = vunpack.c.l.b16 %v4319_v31  ;;  %v3903_v31 = vadd.f32 %v3863_v57, %v7486_v61 }
 0x46a   : > { %v3744_v44 = vpop.f32.mrf.mxu2 }
 0x46b   : > { %v7513_v2 = vadd.f32 %v3744_v44, %v3638_v27  ;;  %v3611_v41 = vpop.f32.mrf.mxu1 }
 0x46c   : > { %v3639_v3 = vadd.f32 %v3611_v41, %v7448_v49  ;;  %v4322_v49 = vrot.slane %v4320_v1, 4  ;;  %v3865_v25 = vpop.f32.mrf.mxu3 }
 0x46e   : > { %4427 = vmatmul.bf16.gmra.mxu1 %v7428_v13  ;;  %v4323_v63 = vor.u32 %v4322_v49, %v4318_v47 }
 0x46f   : > { %4585 = vmatmul.bf16.gmra.mxu2 %v7450_v52 }
 0x472   : > { %v3747_v53 = vpop.f32.mrf.mxu2 }
 0x473   : > { %v7518_v6 = vadd.f32 %v3747_v53, %v3639_v3  ;;  %v3613_v19 = vpop.f32.mrf.mxu1  ;;  %v4484_v53 = vshll.u32 %v3948_v26, 16 }
 0x474   : > { %v3640_v45 = vadd.f32 %v3613_v19, %v7453_v11  ;;  %v4324_v11 = vrot.slane %v4323_v63, 4  ;;  %v3868_v4 = vpop.f32.mrf.mxu3 }
 0x475   : > { %v4486_v1 = vrot.slane %v4484_v53, 5  ;;  %v3905_v57 = vadd.f32 %v3868_v4, %v7494_v10 }
 0x476   : > { %v4329_v5 = vsel %vm6695_vm5, %v4324_v11, %v4328_v62 }
 0x477   : > { %v4348_v40 = vunpack.c.l.b16 %v4329_v5 }
 0x479   : > { %v4349_v41 = vpack.c.b16 %v4348_v40, %v4347_v50 }
 0x47a   : > { %v3749_v13 = vpop.f32.mrf.mxu2 }
 0x47b   : > { %v7521_v56 = vadd.f32 %v3749_v13, %v3640_v45  ;;  %v3616_v24 = vpop.f32.mrf.mxu1 }
 0x47c   : > { %v3641_v36 = vadd.f32 %v3616_v24, %v7467_v37  ;;  %v4465_v37 = vshrl.u32 %v3946_v46, 16 }
 0x47e   : > { %4432 = vmatmul.bf16.gmra.mxu1 %v7450_v52  ;;  %v4474_v52 = vshll.u32 %v3947_v38, 16  ;;  %v4467_v17 = vrot.slane %v4465_v37, 4  ;;  %v3870_v38 = vpop.f32.mrf.mxu3 }
 0x47f   : > { %4590 = vmatmul.bf16.gmra.mxu2 %v7469_v48 }
 0x480   : > { %v4476_v39 = vrot.slane %v4474_v52, 5  ;;  %v4471_v22 = vor.u32 %v4470_v21, %v4467_v17  ;;  %v7556_v52 = vld [vmem:[%s7626_s6] ss:$0 sm:$0xff] }
 0x482   : > { %v3752_v30 = vpop.f32.mrf.mxu2  ;;  %v4481_v43 = vor.u32 %v4480_v18, %v4476_v39 }
 0x483   : > { %v7526_v23 = vadd.f32 %v3752_v30, %v3641_v36  ;;  %v3618_v35 = vpop.f32.mrf.mxu1 }
 0x484   : > { %v3642_v54 = vadd.f32 %v3618_v35, %v7472_v28  ;;  %v4472_v28 = vrot.slane %v4471_v22, 4  ;;  %v4482_v59 = vrot.slane %v4481_v43, 4 }
 0x486   : > { %v4477_v47 = vsel %vm6695_vm5, %v4472_v28, %v4476_v39  ;;  %v4487_v49 = vsel %vm6695_vm5, %v4482_v59, %v4486_v1  ;;  %v3873_v9 = vpop.f32.mrf.mxu3  ;;  %v3906_v28 = vadd.f32 %v3870_v38, %v7497_v51 }
 0x487   : > { %v4505_v20 = vunpack.c.l.b16 %v4477_v47  ;;  %v4506_v13 = vunpack.c.l.b16 %v4487_v49 }
 0x489   : > { %v4507_v32 = vpack.c.b16 %v4506_v13, %v4505_v20  ;;  %v3907_v20 = vadd.f32 %v3873_v9, %v7502_v34 }
 0x48a   : > { %v3754_v27 = vpop.f32.mrf.mxu2 }
 0x48b   : > { %v7533_v44 = vadd.f32 %v3754_v27, %v3642_v54  ;;  %v3621_v3 = vpop.f32.mrf.mxu1 }
 0x48c   : > { %v3643_v29 = vadd.f32 %v3621_v3, %v7475_v8 }
 0x48e   : > { %4437 = vmatmul.bf16.gmra.mxu1 %v7469_v48  ;;  %v4252_v48 = vpop.f32.mrf.mxu0 }
 0x48f   : > { %4595 = vmatmul.bf16.gmra.mxu2 %v4349_v41 }
 0x492   : > { %v3757_v19 = vpop.f32.mrf.mxu2 }
 0x493   : > { %v7537_v45 = vadd.f32 %v3757_v19, %v3643_v29  ;;  %v3623_v60 = vpop.f32.mrf.mxu1 }
 0x494   : > { %v3644_v8 = vadd.f32 %v3623_v60, %v7477_v33 }
 0x496   : > { %v4255_v11 = vpop.f32.mrf.mxu0 }
 0x49a   : > { %v3759_v7 = vpop.f32.mrf.mxu2 }
 0x49b   : > { %v7544_v63 = vadd.f32 %v3759_v7, %v3644_v8  ;;  %v3626_v24 = vpop.f32.mrf.mxu1 }
 0x49c   : > { %v3645_v36 = vadd.f32 %v3626_v24, %v7479_v42  ;;  %v4290_v42 = vadd.f32 %v4250_v14, %v3903_v31 }
 0x49e   : > { %4442 = vmatmul.bf16.gmra.mxu1 %v4349_v41  ;;  %v4257_v35 = vpop.f32.mrf.mxu0  ;;  %v3875_v41 = vpop.f32.mrf.mxu3 }
 0x49f   : > { %4600 = vmatmul.bf16.gmra.mxu2 %v4507_v32 }
 0x4a2   : > { %v3762_v62 = vpop.f32.mrf.mxu2 }
 0x4a3   : > { %v7547_v46 = vadd.f32 %v3762_v62, %v3645_v36  ;;  %v3628_v12 = vpop.f32.mrf.mxu1 }
 0x4a4   : > { %v3646_v33 = vadd.f32 %v3628_v12, %v7481_v55  ;;  %v3904_v55 = vadd.f32 %v3865_v25, %v7489_v15  ;;  %v4292_v15 = vadd.f32 %v4255_v11, %v3905_v57  ;;  %v4293_v25 = vadd.f32 %v4257_v35, %v3906_v28 }
 0x4a5   : > { %v3908_v11 = vadd.f32 %v3875_v41, %v7505_v0 }
 0x4a6   : > { %v4260_v17 = vpop.f32.mrf.mxu0  ;;  %v4291_v21 = vadd.f32 %v4252_v48, %v3904_v55  ;;  %v3878_v10 = vpop.f32.mrf.mxu3 }
 0x4a7   : > { %v4294_v51 = vadd.f32 %v4260_v17, %v3907_v20 }
 0x4aa   : > { %v3764_v30 = vpop.f32.mrf.mxu2 }
 0x4ab   : > { %v7551_v5 = vadd.f32 %v3764_v30, %v3646_v33  ;;  %v4408_v37 = vpop.f32.mrf.mxu1 }
 0x4ac   : > { %v4448_v58 = vadd.f32 %v4408_v37, %v4290_v42  ;;  %v3909_v42 = vadd.f32 %v3878_v10, %v7510_v16 }
 0x4ae   : > { %v4262_v53 = vpop.f32.mrf.mxu0  ;;  %v3880_v24 = vpop.f32.mrf.mxu3 }
 0x4af   : > { %v4295_v34 = vadd.f32 %v4262_v53, %v3908_v11  ;;  %v3910_v17 = vadd.f32 %v3880_v24, %v7513_v2 }
 0x4b2   : > { %v4566_v54 = vpop.f32.mrf.mxu2 }
 0x4b3   : > { %v4606_v50 = vadd.f32 %v4566_v54, %v4448_v58  ;;  %v4410_v40 = vpop.f32.mrf.mxu1 }
 0x4b4   : > { %v4449_v18 = vadd.f32 %v4410_v40, %v4291_v21 }
 0x4b5   : > { %v4626_v61 = vadd.f32 %v7556_v52, %v4606_v50 }
 0x4b6   : > { %v4265_v49 = vpop.f32.mrf.mxu0  ;;  %v3883_v35 = vpop.f32.mrf.mxu3 }
 0x4b7   : > { %v4642_v39 = vmax.f32 %v4626_v61, 0.0  ;;  %v4296_v55 = vadd.f32 %v4265_v49, %v3909_v42 }
 0x4b9   : > { %4658 = vst [vmem:[%s6262_s19] sm:$0xff] %v4642_v39 }
 0x4ba   : > { %v4568_v26 = vpop.f32.mrf.mxu2 }
 0x4bb   : > { %v4607_v27 = vadd.f32 %v4568_v26, %v4449_v18  ;;  %v4413_v3 = vpop.f32.mrf.mxu1 }
 0x4bc   : > { %v4450_v29 = vadd.f32 %v4413_v3, %v4292_v15 }
 0x4bd   : > { %v4627_v22 = vadd.f32 %v7556_v52, %v4607_v27 }
 0x4be   : > { %v4267_v12 = vpop.f32.mrf.mxu0  ;;  %v3885_v39 = vpop.f32.mrf.mxu3 }
 0x4bf   : > { %v4643_v43 = vmax.f32 %v4627_v22, 0.0  ;;  %v4297_v16 = vadd.f32 %v4267_v12, %v3910_v17  ;;  %v3911_v22 = vadd.f32 %v3883_v35, %v7518_v6 }
 0x4c1   : > { %4659 = vst [vmem:[%s6262_s19 + $0x8] sm:$0xff] %v4643_v43 }
 0x4c2   : > { %v4571_v14 = vpop.f32.mrf.mxu2 }
 0x4c3   : > { %v4608_v59 = vadd.f32 %v4571_v14, %v4450_v29  ;;  %v4415_v1 = vpop.f32.mrf.mxu1 }
 0x4c4   : > { %v4451_v47 = vadd.f32 %v4415_v1, %v4293_v25 }
 0x4c5   : > { %v4628_v19 = vadd.f32 %v7556_v52, %v4608_v59 }
 0x4c6   : > { %v4270_v0 = vpop.f32.mrf.mxu0  ;;  %v3888_v2 = vpop.f32.mrf.mxu3 }
 0x4c7   : > { %v4644_v60 = vmax.f32 %v4628_v19, 0.0  ;;  %v4298_v29 = vadd.f32 %v4270_v0, %v3911_v22  ;;  %v3912_v19 = vadd.f32 %v3885_v39, %v7521_v56 }
 0x4c9   : > { %4660 = vst [vmem:[%s6262_s19 + $0x10] sm:$0xff] %v4644_v60 }
 0x4ca   : > { %v4573_v8 = vpop.f32.mrf.mxu2 }
 0x4cb   : > { %v4609_v13 = vadd.f32 %v4573_v8, %v4451_v47  ;;  %v4418_v48 = vpop.f32.mrf.mxu1 }
 0x4cc   : > { %v4452_v36 = vadd.f32 %v4418_v48, %v4294_v51 }
 0x4cd   : > { %v4629_v7 = vadd.f32 %v7556_v52, %v4609_v13  ;;  %v3913_v13 = vadd.f32 %v3888_v2, %v7526_v23 }
 0x4ce   : > { %v4272_v27 = vpop.f32.mrf.mxu0  ;;  %v3890_v49 = vpop.f32.mrf.mxu3 }
 0x4cf   : > { %v4645_v32 = vmax.f32 %v4629_v7, 0.0  ;;  %v4299_v6 = vadd.f32 %v4272_v27, %v3912_v19 }
 0x4d1   : > { %4661 = vst [vmem:[%s6262_s19 + $0x18] sm:$0xff] %v4645_v32 }
 0x4d2   : > { %v4576_v4 = vpop.f32.mrf.mxu2 }
 0x4d3   : > { %v4610_v62 = vadd.f32 %v4576_v4, %v4452_v36  ;;  %v4420_v33 = vpop.f32.mrf.mxu1 }
 0x4d4   : > { %v4453_v31 = vadd.f32 %v4420_v33, %v4295_v34 }
 0x4d5   : > { %v4630_v38 = vadd.f32 %v7556_v52, %v4610_v62  ;;  %v3914_v62 = vadd.f32 %v3890_v49, %v7533_v44 }
 0x4d6   : > { %v4275_v59 = vpop.f32.mrf.mxu0  ;;  %v3893_v4 = vpop.f32.mrf.mxu3 }
 0x4d7   : > { %v4646_v30 = vmax.f32 %v4630_v38, 0.0  ;;  %v4300_v56 = vadd.f32 %v4275_v59, %v3913_v13 }
 0x4d9   : > { %4662 = vst [vmem:[%s6262_s19 + $0x20] sm:$0xff] %v4646_v30 }
 0x4da   : > { %v4578_v37 = vpop.f32.mrf.mxu2 }
 0x4db   : > { %v4611_v58 = vadd.f32 %v4578_v37, %v4453_v31  ;;  %v4423_v9 = vpop.f32.mrf.mxu1  ;;  %v3915_v37 = vadd.f32 %v3893_v4, %v7537_v45 }
 0x4dc   : > { %v4454_v40 = vadd.f32 %v4423_v9, %v4296_v55 }
 0x4dd   : > { %v4631_v54 = vadd.f32 %v7556_v52, %v4611_v58 }
 0x4de   : > { %v4277_v7 = vpop.f32.mrf.mxu0  ;;  %v3895_v58 = vpop.f32.mrf.mxu3 }
 0x4df   : > { %v4647_v50 = vmax.f32 %v4631_v54, 0.0  ;;  %v4301_v34 = vadd.f32 %v4277_v7, %v3914_v62 }
 0x4e1   : > { %4663 = vst [vmem:[%s6262_s19 + $0x28] sm:$0xff] %v4647_v50 }
 0x4e2   : > { %v4581_v61 = vpop.f32.mrf.mxu2 }
 0x4e3   : > { %v4612_v21 = vadd.f32 %v4581_v61, %v4454_v40  ;;  %v4425_v18 = vpop.f32.mrf.mxu1  ;;  %v3916_v61 = vadd.f32 %v3895_v58, %v7544_v63 }
 0x4e4   : > { %v4455_v41 = vadd.f32 %v4425_v18, %v4297_v16 }
 0x4e5   : > { %v4632_v26 = vadd.f32 %v7556_v52, %v4612_v21 }
 0x4e6   : > { %v4280_v23 = vpop.f32.mrf.mxu0  ;;  %v3898_v45 = vpop.f32.mrf.mxu3 }
 0x4e7   : > { %v4648_v57 = vmax.f32 %v4632_v26, 0.0  ;;  %v4302_v44 = vadd.f32 %v4280_v23, %v3915_v37 }
 0x4e9   : > { %4664 = vst [vmem:[%s6262_s19 + $0x30] sm:$0xff] %v4648_v57 }
 0x4ea   : > { %v4583_v3 = vpop.f32.mrf.mxu2 }
 0x4eb   : > { %v4613_v15 = vadd.f32 %v4583_v3, %v4455_v41  ;;  %v4428_v43 = vpop.f32.mrf.mxu1  ;;  %v3917_v41 = vadd.f32 %v3898_v45, %v7547_v46 }
 0x4ec   : > { %v4456_v28 = vadd.f32 %v4428_v43, %v4298_v29 }
 0x4ed   : > { %v4633_v53 = vadd.f32 %v7556_v52, %v4613_v15 }
 0x4ee   : > { %v4282_v55 = vpop.f32.mrf.mxu0 }
 0x4ef   : > { %v4649_v14 = vmax.f32 %v4633_v53, 0.0  ;;  %v4303_v18 = vadd.f32 %v4282_v55, %v3916_v61  ;;  %v3900_v53 = vpop.f32.mrf.mxu3 }
 0x4f1   : > { %4665 = vst [vmem:[%s6262_s19 + $0x38] sm:$0xff] %v4649_v14  ;;  %v3918_v14 = vadd.f32 %v3900_v53, %v7551_v5 }
 0x4f2   : > { %v4586_v1 = vpop.f32.mrf.mxu2 }
 0x4f3   : > { %v4614_v10 = vadd.f32 %v4586_v1, %v4456_v28  ;;  %v4430_v25 = vpop.f32.mrf.mxu1 }
 0x4f4   : > { %v4457_v8 = vadd.f32 %v4430_v25, %v4299_v6 }
 0x4f5   : > { %v4634_v60 = vadd.f32 %v7556_v52, %v4614_v10 }
 0x4f6   : > { %v4285_v57 = vpop.f32.mrf.mxu0 }
 0x4f7   : > { %v4650_v47 = vmax.f32 %v4634_v60, 0.0  ;;  %v4304_v63 = vadd.f32 %v4285_v57, %v3917_v41 }
 0x4f9   : > { %4666 = vst [vmem:[%s6262_s19 + $0x40] sm:$0xff] %v4650_v47 }
 0x4fa   : > { %v4588_v20 = vpop.f32.mrf.mxu2 }
 0x4fb   : > { %v4615_v48 = vadd.f32 %v4588_v20, %v4457_v8  ;;  %v4433_v51 = vpop.f32.mrf.mxu1 }
 0x4fc   : > { %v4458_v36 = vadd.f32 %v4433_v51, %v4300_v56 }
 0x4fd   : > { %v4635_v32 = vadd.f32 %v7556_v52, %v4615_v48 }
 0x4fe   : > { %v4287_v59 = vpop.f32.mrf.mxu0 }
 0x4ff   : > { %v4651_v24 = vmax.f32 %v4635_v32, 0.0  ;;  %v4305_v46 = vadd.f32 %v4287_v59, %v3918_v14 }
 0x501   : > { %4667 = vst [vmem:[%s6262_s19 + $0x48] sm:$0xff] %v4651_v24 }
 0x502   : > { %v4591_v11 = vpop.f32.mrf.mxu2 }
 0x503   : > { %v4616_v12 = vadd.f32 %v4591_v11, %v4458_v36  ;;  %v4435_v33 = vpop.f32.mrf.mxu1 }
 0x504   : > { %v4459_v31 = vadd.f32 %v4435_v33, %v4301_v34 }
 0x505   : > { %v4636_v38 = vadd.f32 %v7556_v52, %v4616_v12 }
 0x507   : > { %v4652_v30 = vmax.f32 %v4636_v38, 0.0 }
 0x509   : > { %4668 = vst [vmem:[%s6262_s19 + $0x50] sm:$0xff] %v4652_v30 }
 0x50a   : > { %v4593_v35 = vpop.f32.mrf.mxu2 }
 0x50b   : > { %v4617_v42 = vadd.f32 %v4593_v35, %v4459_v31  ;;  %v4438_v9 = vpop.f32.mrf.mxu1 }
 0x50c   : > { %v4460_v50 = vadd.f32 %v4438_v9, %v4302_v44 }
 0x50d   : > { %v4637_v54 = vadd.f32 %v7556_v52, %v4617_v42 }
 0x50f   : > { %v4653_v0 = vmax.f32 %v4637_v54, 0.0 }
 0x511   : > { %4669 = vst [vmem:[%s6262_s19 + $0x58] sm:$0xff] %v4653_v0 }
 0x512   : > { %v4596_v40 = vpop.f32.mrf.mxu2 }
 0x513   : > { %v4618_v17 = vadd.f32 %v4596_v40, %v4460_v50  ;;  %v4440_v21 = vpop.f32.mrf.mxu1 }
 0x514   : > { %v4461_v16 = vadd.f32 %v4440_v21, %v4303_v18 }
 0x515   : > { %v4638_v39 = vadd.f32 %v7556_v52, %v4618_v17 }
 0x517   : > { %v4654_v26 = vmax.f32 %v4638_v39, 0.0 }
 0x519   : > { %4670 = vst [vmem:[%s6262_s19 + $0x60] sm:$0xff] %v4654_v26 }
 0x51a   : > { %v4598_v27 = vpop.f32.mrf.mxu2 }
 0x51b   : > { %v4619_v3 = vadd.f32 %v4598_v27, %v4461_v16  ;;  %v4443_v22 = vpop.f32.mrf.mxu1 }
 0x51c   : > { %v4462_v2 = vadd.f32 %v4443_v22, %v4304_v63 }
 0x51d   : > { %v4639_v15 = vadd.f32 %v7556_v52, %v4619_v3 }
 0x51f   : > { %v4655_v43 = vmax.f32 %v4639_v15, 0.0 }
 0x521   : > { %4671 = vst [vmem:[%s6262_s19 + $0x68] sm:$0xff] %v4655_v43 }
 0x522   : > { %v4601_v29 = vpop.f32.mrf.mxu2 }
 0x523   : > { %v4620_v28 = vadd.f32 %v4601_v29, %v4462_v2  ;;  %v4445_v19 = vpop.f32.mrf.mxu1 }
 0x524   : > { %v4463_v25 = vadd.f32 %v4445_v19, %v4305_v46 }
 0x525   : > { %v4640_v1 = vadd.f32 %v7556_v52, %v4620_v28 }
 0x527   : > { %v4656_v10 = vmax.f32 %v4640_v1, 0.0 }
 0x529   : > { %4672 = vst [vmem:[%s6262_s19 + $0x70] sm:$0xff] %v4656_v10 }
 0x52a   : > { %v4603_v60 = vpop.f32.mrf.mxu2 }
 0x52b   : > { %v4621_v6 = vadd.f32 %v4603_v60, %v4463_v25 }
 0x52d   : > { %v4641_v47 = vadd.f32 %v7556_v52, %v4621_v6 }
 0x52f   : > { %v4657_v49 = vmax.f32 %v4641_v47, 0.0 }
 0x531   : > { %4673 = vst [vmem:[%s6262_s19 + $0x78] sm:$0xff] %v4657_v49 }
 0x532 PF: > { %s17_s28 = sadd.s32 1, %s6170_s28   ;;  %s7642_s24 = smov %s6162_s26 }
 0x533   : > { %p14_p1 = scmp.ge.s32.totalorder %s17_s28, 6   ;;  %s7643_s25 = smov %s6166_s27 }
 0x534   : > { %s7644_s26 = smov %s7647_s29  ;;  %s7645_s27 = smov %s7651_s30 }
 0x535   :  { %16 = sbr.rel (!%p14_p1) target bundleno = 3 (0x3), region = 138 }

</bundles_post_ra>
